<compile_context>
chip_gen: v5e
topology: v5e:2x2
jax: 0.10.0
libtpu: 0.0.40
codegen_flags: <defaults>
</compile_context>

<pallas_src>
from collections import OrderedDict
import functools

import jax
import jax.numpy as jnp
from jax.experimental import pallas as pl
from jax.experimental.pallas import tpu as pltpu


# ---------------------------------------------------------------------------
# Kernels
# ---------------------------------------------------------------------------
def _graph_loss_kernel(pred_ref, tgt_ref, per_ref):
    """Full-width rows per grid step: per-row sum of squared differences."""
    # Native-dtype DMA; upcast to f32 in vregs so subtract / square / row-sum
    # all accumulate in full precision.
    diff = pred_ref[...].astype(jnp.float32) - tgt_ref[...].astype(jnp.float32)
    per = jnp.sum(diff * diff, axis=1)           # (tile_t,) lane/XLU reduction
    per_ref[...] = per.reshape(per_ref.shape)    # lane-dense (1, tile_t) store


def _graph_loss_kernel_dtiled(pred_ref, tgt_ref, per_ref, *, d_total, tile_d):
    """D-tiled variant: accumulate partial row sums across the 'arbitrary' axis."""
    k = pl.program_id(1)

    @pl.when(k == 0)
    def _():
        per_ref[...] = jnp.zeros_like(per_ref)

    diff = pred_ref[...].astype(jnp.float32) - tgt_ref[...].astype(jnp.float32)
    if d_total % tile_d != 0:
        # Ragged last D block: zero out-of-range columns so garbage lanes
        # cannot pollute valid rows.
        col = jax.lax.broadcasted_iota(jnp.int32, diff.shape, 1) + k * tile_d
        diff = jnp.where(col < d_total, diff, 0.0)
    per_ref[...] += jnp.sum(diff * diff, axis=1).reshape(per_ref.shape)


# ---------------------------------------------------------------------------
# Tiling / wrapper
# ---------------------------------------------------------------------------
_SMALL_ELEMENT_THRESHOLD = 64 * 1024      # below this, XLA fusion wins
_MIN_SPLIT_BYTES = 4 * 1024 * 1024        # force >= 4 pipelined tiles above this
_MAX_BLOCK_BYTES = 8 * 1024 * 1024        # per-input per-buffer block target


def _round_up(x, m):
    return ((x + m - 1) // m) * m


def _round_down_mult(x, m):
    return (x // m) * m


@functools.lru_cache(maxsize=1)
def _vmem_limits():
    """Per-generation VMEM sizing (v5e/v6e: 128 MiB phys; v7x: 64 MiB per TC)."""
    phys = 64 * 1024 * 1024               # conservative (v7x per-TC) fallback
    try:
        info = pltpu.get_tpu_info()
        phys = int(getattr(info, "vmem_capacity_bytes", phys)) or phys
    except Exception:
        pass
    limit = min((phys * 3) // 4, 96 * 1024 * 1024)   # ~48 MiB v7x, ~96 MiB v5e/v6e
    # 2 inputs x 2 pipeline buffers must fit, with headroom for the output.
    block_budget = min(_MAX_BLOCK_BYTES, ((limit * 3) // 4) // 4)
    block_budget = max(block_budget, 512 * 1024)
    return limit, block_budget


def _choose_tiles(T, D, itemsize, block_budget):
    """Returns (tile_t, tile_d); tile_d == D means no feature-axis tiling."""
    bytes_per_row = D * itemsize
    rows_by_bytes = _round_down_mult(block_budget // max(bytes_per_row, 1), 128)
    if rows_by_bytes >= 128:
        total_bytes = T * bytes_per_row
        tile_t = rows_by_bytes
        if total_bytes >= _MIN_SPLIT_BYTES:
            # Force >= 4 grid steps so DMA / compute / writeback overlap and
            # the "parallel" axis can shard across both v7x TensorCores.
            tile_t = min(tile_t, max(128, _round_down_mult(T // 4, 128)))
        else:
            tile_t = min(tile_t, _round_up(T, 128))
        nt = pl.cdiv(T, tile_t)
        if nt >= 3 and nt % 2 == 1:
            # Prefer an even step count (2-core balance on v7x).
            cand = _round_up(pl.cdiv(T, nt + 1), 128)
            if cand >= 128 and pl.cdiv(T, cand) % 2 == 0:
                tile_t = cand
        return tile_t, D
    # Rows too wide for a whole-row block: tile the feature axis as well.
    tile_t = 128 if T >= 128 else _round_up(T, 8)
    tile_d = _round_down_mult(block_budget // max(tile_t * itemsize, 1), 128)
    tile_d = max(128, min(tile_d, _round_up(D, 128)))
    return tile_t, tile_d


def _graph_loss_reference(model_output, targets):
    diff = model_output.astype(jnp.float32) - targets.astype(jnp.float32)
    per = jnp.sum(diff * diff, axis=1)
    return per, jnp.sum(per)


def graph_loss_pallas(model_output, targets, *, tile_t=None, tile_d=None):
    """Returns (per_target_loss [T] f32, total_loss scalar f32)."""
    assert model_output.shape == targets.shape and model_output.ndim == 2
    T, D = model_output.shape
    itemsize = max(jnp.dtype(model_output.dtype).itemsize,
                   jnp.dtype(targets.dtype).itemsize)

    vmem_limit, block_budget = _vmem_limits()
    if tile_t is None or tile_d is None:
        auto_t, auto_d = _choose_tiles(T, D, itemsize, block_budget)
        if tile_d is None:
            tile_d = auto_d
        if tile_t is None:
            tile_t = auto_t if tile_d >= D else (128 if T >= 128 else _round_up(T, 8))

    grid_t = pl.cdiv(T, tile_t)
    t_pad = grid_t * tile_t

    cost = pl.CostEstimate(
        flops=3 * T * D,
        transcendentals=0,
        bytes_accessed=2 * T * D * itemsize + 4 * t_pad,
    )

    if tile_d >= D:
        # 1-D grid over rows; each block holds full-width rows.
        per_slab = pl.pallas_call(
            _graph_loss_kernel,
            out_shape=jax.ShapeDtypeStruct((1, t_pad), jnp.float32),
            grid_spec=pltpu.PrefetchScalarGridSpec(
                num_scalar_prefetch=0,
                grid=(grid_t,),
                in_specs=[
                    pl.BlockSpec((tile_t, D), lambda i: (i, 0)),
                    pl.BlockSpec((tile_t, D), lambda i: (i, 0)),
                ],
                out_specs=pl.BlockSpec((1, tile_t), lambda i: (0, i)),
            ),
            compiler_params=pltpu.CompilerParams(
                dimension_semantics=("parallel",),
                vmem_limit_bytes=vmem_limit,
            ),
            cost_estimate=cost,
        )(model_output, targets)
    else:
        # 2-D grid: rows "parallel", feature-axis reduction "arbitrary";
        # the (1, tile_t) output block stays resident and is accumulated into.
        grid_d = pl.cdiv(D, tile_d)
        kernel = functools.partial(
            _graph_loss_kernel_dtiled, d_total=D, tile_d=tile_d)
        per_slab = pl.pallas_call(
            kernel,
            out_shape=jax.ShapeDtypeStruct((1, t_pad), jnp.float32),
            grid_spec=pltpu.PrefetchScalarGridSpec(
                num_scalar_prefetch=0,
                grid=(grid_t, grid_d),
                in_specs=[
                    pl.BlockSpec((tile_t, tile_d), lambda i, k: (i, k)),
                    pl.BlockSpec((tile_t, tile_d), lambda i, k: (i, k)),
                ],
                out_specs=pl.BlockSpec((1, tile_t), lambda i, k: (0, i)),
            ),
            compiler_params=pltpu.CompilerParams(
                dimension_semantics=("parallel", "arbitrary"),
                vmem_limit_bytes=vmem_limit,
            ),
            cost_estimate=cost,
        )(model_output, targets)

    per = per_slab[0, :T]
    # Total from valid rows only (ragged-tail garbage rows were sliced off).
    return per, jnp.sum(per)


def graph_loss(model_output, targets):
    """Size-dispatched entry: plain XLA for tiny shapes, Pallas otherwise."""
    if model_output.size < _SMALL_ELEMENT_THRESHOLD:
        return _graph_loss_reference(model_output, targets)
    return graph_loss_pallas(model_output, targets)


# ---------------------------------------------------------------------------
# Module port
# ---------------------------------------------------------------------------
class _TargetName:
    def __init__(self, name):
        self.name = name


class GraphLossJAX:
    """JAX/Pallas port of GraphLoss.

    # TODO(synk): the PyTorch module accepts an arbitrary injected loss_fn;
    # this port fixes it to elementwise MSE (reduction='none').
    """

    def __init__(self, target_names=None, name="mse", as_dict=False):
        self.target_names = target_names
        self.name = name
        self.as_dict = as_dict

    def __call__(self, model_output, targets):
        per_target_loss, total = graph_loss(model_output, targets)

        loss_dict = OrderedDict()
        if self.target_names is not None:
            for i, target in enumerate(self.target_names):
                loss_dict[target.name + " " + self.name] = per_target_loss[i]

        if self.as_dict:
            return loss_dict
        if not loss_dict:
            return jnp.float32(0.0)
        if len(loss_dict) == per_target_loss.shape[0]:
            # Names cover every row uniquely -> dict-sum == full sum; use the
            # single fused reduction instead of T dynamic-slice + add ops.
            return total
        # General fallback (partial coverage / duplicate names).
        return sum(v for v in loss_dict.values())


# ---------------------------------------------------------------------------
# Demo / correctness checks
# ---------------------------------------------------------------------------
if __name__ == "__main__":
    key = jax.random.PRNGKey(0)
    k1, k2, k3, k4, k5, k6, k7, k8 = jax.random.split(key, 8)

    # 1) Auto-tiled streaming path: f32, (2048, 512) -> 4 even pipelined steps.
    T, D = 2048, 512
    pred = jax.random.normal(k1, (T, D), dtype=jnp.float32)
    tgt = jax.random.normal(k2, (T, D), dtype=jnp.float32)
    per, total = jax.block_until_ready(graph_loss_pallas(pred, tgt))
    ref_per, ref_total = _graph_loss_reference(pred, tgt)
    assert jnp.allclose(per, ref_per, rtol=1e-4, atol=1e-3), "auto-path per mismatch"
    assert jnp.allclose(total, ref_total, rtol=1e-4, atol=1e-1), (total, ref_total)

    # 2) Ragged last row-block, bf16 inputs, forced small tile (4 grid steps).
    T2, D2 = 500, 128
    pred2 = jax.random.normal(k3, (T2, D2), dtype=jnp.float32).astype(jnp.bfloat16)
    tgt2 = jax.random.normal(k4, (T2, D2), dtype=jnp.float32).astype(jnp.bfloat16)
    per2, total2 = jax.block_until_ready(
        graph_loss_pallas(pred2, tgt2, tile_t=128))
    ref_per2, ref_total2 = _graph_loss_reference(pred2, tgt2)
    assert jnp.allclose(per2, ref_per2, rtol=1e-4, atol=1e-3), "ragged-path per mismatch"
    assert jnp.allclose(total2, ref_total2, rtol=1e-4, atol=1e-1), (total2, ref_total2)

    # 3) D-tiled path with ragged last feature block (column mask + accumulate).
    T3, D3 = 128, 320
    pred3 = jax.random.normal(k5, (T3, D3), dtype=jnp.float32)
    tgt3 = jax.random.normal(k6, (T3, D3), dtype=jnp.float32)
    per3, total3 = jax.block_until_ready(
        graph_loss_pallas(pred3, tgt3, tile_t=128, tile_d=128))
    ref_per3, ref_total3 = _graph_loss_reference(pred3, tgt3)
    assert jnp.allclose(per3, ref_per3, rtol=1e-4, atol=1e-3), "d-tiled per mismatch"
    assert jnp.allclose(total3, ref_total3, rtol=1e-4, atol=1e-2), (total3, ref_total3)

    # 4) Module demo at the tiny PyTorch-ish shape (dispatches to plain XLA).
    T4, D4 = 8, 32
    model_output = jax.random.normal(k7, (T4, D4), dtype=jnp.float32)
    targets = jax.random.normal(k8, (T4, D4), dtype=jnp.float32)
    names = [_TargetName(f"t{i}") for i in range(T4)]
    loss_mod = GraphLossJAX(target_names=names, name="mse", as_dict=False)
    total4 = jax.block_until_ready(loss_mod(model_output, targets))
    ref4 = jnp.sum((model_output - targets) ** 2)
    assert jnp.allclose(total4, ref4, rtol=1e-5, atol=1e-5), (total4, ref4)

    print("KERNEL_OK")
</pallas_src>

<mosaic_0001>
module attributes {stable_mosaic.version = 11 : i64} {
  func.func @_graph_loss_kernel(%arg0: i32, %arg1: memref<512x512xf32, #tpu.memory_space<vmem>>, %arg2: memref<512x512xf32, #tpu.memory_space<vmem>>, %arg3: memref<1x512xf32, #tpu.memory_space<vmem>>) attributes {dimension_semantics = [#tpu.dimension_semantics<parallel>], iteration_bounds = array<i64: 4>, scalar_prefetch = 0 : i64, scratch_operands = 0 : i64, tpu.core_type = #tpu.core_type<tc>, window_params = [{transform_indices = @transform_0, window_bounds = array<i64: 512, 512>}, {transform_indices = @transform_1, window_bounds = array<i64: 512, 512>}, {transform_indices = @transform_2, window_bounds = array<i64: 1, 512>}]} {
    %c0 = arith.constant 0 : index
    %c0_0 = arith.constant 0 : index
    %0 = vector.load %arg1[%c0, %c0_0] : memref<512x512xf32, #tpu.memory_space<vmem>>, vector<512x512xf32>
    %c0_1 = arith.constant 0 : index
    %c0_2 = arith.constant 0 : index
    %1 = vector.load %arg2[%c0_1, %c0_2] : memref<512x512xf32, #tpu.memory_space<vmem>>, vector<512x512xf32>
    %2 = arith.subf %0, %1 : vector<512x512xf32>
    %3 = arith.mulf %2, %2 : vector<512x512xf32>
    %cst = arith.constant dense<0.000000e+00> : vector<512xf32>
    %4 = vector.multi_reduction <add>, %3, %cst [1] : vector<512x512xf32> to vector<512xf32>
    %5 = vector.shape_cast %4 : vector<512xf32> to vector<1x512xf32>
    %c0_3 = arith.constant 0 : index
    %c0_4 = arith.constant 0 : index
    %6 = vector.load %arg3[%c0_3, %c0_4] : memref<1x512xf32, #tpu.memory_space<vmem>>, vector<1x512xf32>
    tpu.vector_store %arg3[%c0_3, %c0_4], %5 {strides = array<i32>} : memref<1x512xf32, #tpu.memory_space<vmem>>, vector<1x512xf32>,
    return
  }
  func.func @transform_0(%arg0: i32) -> (i32, i32) {
    %c0_i32 = arith.constant 0 : i32
    %c0_i32_0 = arith.constant 0 : i32
    return %arg0, %c0_i32 : i32, i32
  }
  func.func @transform_1(%arg0: i32) -> (i32, i32) {
    %c0_i32 = arith.constant 0 : i32
    %c0_i32_0 = arith.constant 0 : i32
    return %arg0, %c0_i32 : i32, i32
  }
  func.func @transform_2(%arg0: i32) -> (i32, i32) {
    %c0_i32 = arith.constant 0 : i32
    %c0_i32_0 = arith.constant 0 : i32
    return %c0_i32, %arg0 : i32, i32
  }
}

</mosaic_0001>

<bundles_post_ra>
// kernel: tpu_custom_call.1
= control target key start
LH: loop header
LB: loop body
LE: loop exit
PB: predicated region body
PF: predicated region fallthrough
CT: control target
= control target key end

     0   :  { %7 = vsyncpa [#allocation3], 0  ;;  %s4692_s0 = inlined_call_operand.hbm [shape: f32[2048,512], index: 0, kind: input, shape index: {}]   ;;  %s4693_s1 = inlined_call_operand.hbm [shape: f32[2048,512], index: 1, kind: input, shape index: {}]   ;;  %s4694_s2 = inlined_call_operand.hbm [shape: f32[1,2048], index: 2, kind: output, shape index: {}]  }
   0x1   :  { %9 = vsyncpa [#allocation3 + $0x1], 0 }
   0x2   :  { %10 = vsyncpa [#allocation6], 0 }
   0x3   :  { %12 = vsyncpa [#allocation6 + $0x1], 0 }
   0x4   :  { %13 = vsyncpa [#allocation4], 0 }
   0x5   :  { %15 = vsyncpa [#allocation4 + $0x1], 0  ;;  %s3416_s9 = smov 0   ;;  %s3418_s10 = smov 0  }
   0x6   :  { %s3420_s11 = smov 0   ;;  %s3422_s12 = smov 0  }
   0x7 LB: > { %s3437_s13 = sadd.s32 4294967295, %s3396_s12   ;;  %s3186_s14 = sadd.s32 4294967294, %s3396_s12   ;;  %s3396_s12 = sphi %s3422_s12, %s4704_s12   ;;  %s3392_s11 = sphi %s3420_s11, %s4703_s11   ;;  %s3388_s10 = sphi %s3418_s10, %s4702_s10   ;;  %s3384_s9 = sphi %s3416_s9, %s4701_s9  }
   0x8   : > { %s3441_s15 = sadd.s32 1, %s3396_s12   ;;  %s28_s16 = sadd.s32 1, %s3392_s11 }
   0x9   : > { %s25_s17 = ssub.s32 %s3396_s12, %s3441_s15  ;;  %p35_p0 = scmp.ne.s32.totalorder %s3392_s11, %s3388_s10 }
   0xa   : > { %p26_p1 = scmp.eq.s32.totalorder %s25_s17, 0  ;;  %p36_p2 = scmp.eq.s32.totalorder %s3396_s12, 0 }
   0xb   : > { %p41_p3 = scmp.ne.s32.totalorder %s3388_s10, %s3384_s9  ;;  %p42_p4 = scmp.eq.s32.totalorder %s3437_s13, 0 }
   0xc   : > { %s3453_s18 = scalar_select %p26_p1, %s3392_s11, %s28_s16  }
   0xd   : > { %p3455_p5 = por %p36_p2, %p35_p0  ;;  %p3459_p6 = por %p42_p4, %p41_p3 }
   0xe   : > { %p91_p7 = scmp.eq.s32.totalorder %s3437_s13, 3  ;;  %p97_p8 = scmp.eq.s32.totalorder %s3186_s14, 3 }
   0xf   : > { %p3226_p9 = scmp.lt.s32.totalorder %s3396_s12, 4  ;;  %s3474_s23 = sand.u32 1, %s3392_s11  }
  0x10   : > { %p3465_p10 = por %p91_p7, %p35_p0  ;;  %p3469_p11 = por %p97_p8, %p41_p3 }
  0x11   : > { %s3206_s24 = sshll.u32 %s3396_s12, 11  ;;  %s3189_s25 = sshll.u32 %s3474_s23, 11 }
  0x12   : > { %s127_s28 = scalar_lea.hbm %s4692_s0, %s3206_s24  ;;  %s121_s30 = scalar_lea.vmem [#allocation2], %s3189_s25 }
  0x13   : > { %s128_s29 = sshll.u32 %s127_s28, 4  ;;  %s130_s3 = sshll.u32 %s121_s30, 4  ;;  %s129_s29 = int_to_ptr.hbm [resolvable:$true] %s128_s29  ;;  %s131_s3 = int_to_ptr.vmem [resolvable:$true] %s130_s3 }
  0x14   : > { %p3487_p12 = pnand %p3226_p9, %p3455_p5  ;;  %p3197_p13 = scmp.ge.s32.totalorder %s3396_s12, 1 }
  0x15   : > { %p161_p0 = scmp.lt.s32.totalorder %s3396_s12, 5  ;;  %s118_s5 = scalar_lea.sflag [#allocation3], %s3474_s23 }
  0x16   : > { %s3266_s6 = sshra.s32 %s129_s29, 4  ;;  %p3270_p2 = pneg %p3487_p12  ;;  %s3267_s6 = int_to_ptr.hbm [resolvable:$true] %s3266_s6 }
  0x17   : > { %s3268_s7 = scalar_lea.hbm %s3267_s6, 2048  ;;  %s3273_s16 = scalar_lea.hbm %s4692_s0, 8192 }
  0x18   : > { %p3269_p1 = scmp.ne.s32.totalorder %s3267_s6, %s3268_s7  ;;  %p3274_p5 = scmp.lt.s32.totalorder %s3267_s6, %s4692_s0 }
  0x19   : > { %p3275_p7 = scmp.lt.s32.totalorder %s3273_s16, %s3268_s7 }
  0x1a   : > { %p3271_p3 = pnand %p3270_p2, %p3269_p1 }
  0x1b   : > { %p3276_p8 = por %p3275_p7, %p3274_p5 }
  0x1c   : > { %p3272_p4 = pneg %p3271_p3 }
  0x1e   : > { %p3277_p9 = pnand %p3276_p8, %p3272_p4 }
  0x20   : > { %3280 = shalt.err (!%p3277_p9)
}
  0x21   : > { %s3398_s26 = smov 512   ;;  %s3399_s27 = smov 32  }
  0x22   : > { %3218 = dma.hbm_to_vmem [thread:$0]  (!%p3487_p12), %s129_s29, 32768, %s131_s3, %s118_s5, %s3398_s26, %s3398_s26, %s3399_s27  }
  0x23   : > { %p3511_p1 = pnand %p3197_p13, %p161_p0  ;;  %s150_s7 = scalar_lea.hbm %s4693_s1, %s3206_s24 }
  0x24   : > { %s151_s8 = sshll.u32 %s150_s7, 4  ;;  %s144_s14 = scalar_lea.vmem [#allocation5], %s3189_s25  ;;  %s152_s8 = int_to_ptr.hbm [resolvable:$true] %s151_s8 }
  0x25   : > { %s153_s16 = sshll.u32 %s144_s14, 4  ;;  %s141_s17 = scalar_lea.sflag [#allocation6], %s3474_s23  ;;  %s154_s16 = int_to_ptr.vmem [resolvable:$true] %s153_s16 }
  0x26   : > { %s3296_s19 = sshra.s32 %s152_s8, 4  ;;  %s3303_s30 = scalar_lea.hbm %s4693_s1, 8192  ;;  %s3297_s19 = int_to_ptr.hbm [resolvable:$true] %s3296_s19 }
  0x27   : > { %s3298_s29 = scalar_lea.hbm %s3297_s19, 2048  ;;  %p3304_p4 = scmp.lt.s32.totalorder %s3297_s19, %s4693_s1 }
  0x28   : > { %p3299_p3 = scmp.ne.s32.totalorder %s3297_s19, %s3298_s29  ;;  %p3305_p5 = scmp.lt.s32.totalorder %s3303_s30, %s3298_s29 }
  0x2a   : > { %p3301_p13 = pnand %p3299_p3, %p3270_p2  ;;  %p3306_p7 = por %p3305_p5, %p3304_p4 }
  0x2c   : > { %p3302_p0 = pneg %p3301_p13 }
  0x2e   : > { %p3307_p8 = pnand %p3306_p7, %p3302_p0 }
  0x30   : > { %3310 = shalt.err (!%p3307_p8)
}
  0x31   : > { %3221 = dma.hbm_to_vmem [thread:$0]  (!%p3487_p12), %s152_s8, 32768, %s154_s16, %s141_s17, %s3398_s26, %s3398_s26, %s3399_s27  }
  0x32   : > { %165 = sbr.rel (%p3511_p1) target bundleno = 1279 (0x4ff), region = 28  ;;  %s3537_s23 = sand.u32 (!%p3511_p1), 1, %s3388_s10  }
  0x33   : > { %s3198_s25 = sshll.u32 (!%p3511_p1), %s3537_s23, 11  ;;  %s168_s7 = scalar_lea.sflag (!%p3511_p1), [#allocation3], %s3537_s23 }
  0x34   : > { %s3541_s14 = scalar_lea.vmem (!%p3511_p1), [#allocation2], %s3198_s25 }
  0x37   : > { %3371 = dma.done.wait (%p3459_p6), %s168_s7, 32768  }
  0x38   : > { %3373 = vsyncadd (%p3459_p6), %s168_s7, 4294934528  ;;  %s178_s4 = scalar_lea.sflag [#allocation6], %s3537_s23  ;;  %s3548_s26 = scalar_lea.vmem [#allocation5], %s3198_s25 }
  0x39   : > { %3375 = dma.done.wait (%p3459_p6), %s178_s4, 32768  }
  0x3a   : > { %3377 = vsyncadd (%p3459_p6), %s178_s4, 4294934528  ;;  %v227_v0 = vld [vmem:[%s3541_s14 + $0x80] sm:$0xff]  ;;  %v228_v1 = vld [vmem:[%s3541_s14 + $0x88] sm:$0xff]  ;;  %vm2911_vm0 = vcmask 130112   ;;  %vm2915_vm1 = vcmask 195712   ;;  %vm2919_vm2 = vcmask 261312  }
  0x3b   : > { %v229_v2 = vld [vmem:[%s3541_s14 + $0x90] sm:$0xff]  ;;  %v230_v3 = vld [vmem:[%s3541_s14 + $0x98] sm:$0xff]  ;;  %v483_v4 = vld [vmem:[%s3548_s26 + $0x80] sm:$0xff]  ;;  %vm2923_vm3 = vcmask 326912   ;;  %vm2927_vm4 = vcmask 392512   ;;  %vm2931_vm5 = vcmask 458112  }
  0x3c   : > { %v484_v5 = vld [vmem:[%s3548_s26 + $0x88] sm:$0xff]  ;;  %v485_v6 = vld [vmem:[%s3548_s26 + $0x90] sm:$0xff]  ;;  %v486_v7 = vld [vmem:[%s3548_s26 + $0x98] sm:$0xff]  ;;  %v739_v8 = vsub.f32 %v227_v0, %v483_v4  ;;  %vm2935_vm6 = vcmask 523712   ;;  %vm2939_vm7 = vcmask 589312   ;;  %vm2943_vm8 = vcmask 654912  }
  0x3d   : > { %v740_v9 = vsub.f32 %v228_v1, %v484_v5  ;;  %v219_v10 = vld [vmem:[%s3541_s14 + $0x40] sm:$0xff]  ;;  %v741_v11 = vsub.f32 %v229_v2, %v485_v6  ;;  %v742_v12 = vsub.f32 %v230_v3, %v486_v7  ;;  %v220_v13 = vld [vmem:[%s3541_s14 + $0x48] sm:$0xff]  ;;  %v221_v14 = vld [vmem:[%s3541_s14 + $0x50] sm:$0xff]  ;;  %vm2947_vm9 = vcmask 720512   ;;  %s3200_s20 = sshll.u32 %s3537_s23, 2  ;;  %s3202_s27 = sshll.u32 %s3437_s13, 2 }
  0x3e   : > { %v222_v15 = vld [vmem:[%s3541_s14 + $0x58] sm:$0xff]  ;;  %v995_v16 = vmul.f32 %v739_v8, %v739_v8  ;;  %v475_v18 = vld [vmem:[%s3548_s26 + $0x40] sm:$0xff]  ;;  %v476_v19 = vld [vmem:[%s3548_s26 + $0x48] sm:$0xff]  ;;  %vm2951_vm10 = vcmask 786112   ;;  %vm2955_vm11 = vcmask 851712   ;;  %vm2959_vm12 = vcmask 917312   ;;  %s3088_s16 = scalar_lea.hbm %s4694_s2, %s3202_s27 }
  0x3f   : > { %v996_v17 = vmul.f32 %v740_v9, %v740_v9  ;;  %v477_v20 = vld [vmem:[%s3548_s26 + $0x50] sm:$0xff]  ;;  %v997_v21 = vmul.f32 %v741_v11, %v741_v11  ;;  %v478_v22 = vld [vmem:[%s3548_s26 + $0x58] sm:$0xff]  ;;  %v731_v23 = vsub.f32 %v219_v10, %v475_v18  ;;  %v732_v24 = vsub.f32 %v220_v13, %v476_v19  ;;  %v211_v25 = vld [vmem:[%s3541_s14] sm:$0xff]  ;;  %s207_s13 = scalar_lea.vmem [#allocation7], %s3200_s20  ;;  %s3092_s19 = sshll.u32 %s3088_s16, 4  ;;  %s3093_s19 = int_to_ptr.hbm [resolvable:$true] %s3092_s19 }
  0x40   : > { %v212_v26 = vld [vmem:[%s3541_s14 + $0x8] sm:$0xff]  ;;  %v998_v27 = vmul.f32 %v742_v12, %v742_v12  ;;  %v733_v29 = vsub.f32 %v221_v14, %v477_v20  ;;  %v734_v30 = vsub.f32 %v222_v15, %v478_v22  ;;  %v213_v31 = vld [vmem:[%s3541_s14 + $0x10] sm:$0xff]  ;;  %v214_v32 = vld [vmem:[%s3541_s14 + $0x18] sm:$0xff]  ;;  %vm2963_vm13 = vcmask 982912   ;;  %s3090_s17 = sshll.u32 %s207_s13, 4  ;;  %s3078_s29 = scalar_lea.sflag [#allocation4], %s3537_s23  ;;  %s3091_s17 = int_to_ptr.vmem [resolvable:$true] %s3090_s17 }
  0x41   : > { %v1255_v28 = vadd.f32 %v996_v17, %v995_v16  ;;  %v467_v33 = vld [vmem:[%s3548_s26] sm:$0xff]  ;;  %v987_v34 = vmul.f32 %v731_v23, %v731_v23  ;;  %v988_v35 = vmul.f32 %v732_v24, %v732_v24  ;;  %v468_v36 = vld [vmem:[%s3548_s26 + $0x8] sm:$0xff]  ;;  %v469_v37 = vld [vmem:[%s3548_s26 + $0x10] sm:$0xff]  ;;  %vm2967_vm14 = vcmask 1048512   ;;  %s3340_s3 = sshra.s32 %s3093_s19, 4  ;;  %s3346_s6 = scalar_lea.hbm %s4694_s2, 16  ;;  %s3341_s3 = int_to_ptr.hbm [resolvable:$true] %s3340_s3 }
  0x42   : > { %v470_v38 = vld [vmem:[%s3548_s26 + $0x18] sm:$0xff]  ;;  %v723_v39 = vsub.f32 %v211_v25, %v467_v33  ;;  %v989_v41 = vmul.f32 %v733_v29, %v733_v29  ;;  %v990_v42 = vmul.f32 %v734_v30, %v734_v30  ;;  %v724_v43 = vsub.f32 %v212_v26, %v468_v36  ;;  %v231_v44 = vld [vmem:[%s3541_s14 + $0xa0] sm:$0xff]  ;;  %v232_v45 = vld [vmem:[%s3541_s14 + $0xa8] sm:$0xff]  ;;  %s3342_s5 = scalar_lea.hbm %s3341_s3, 4  ;;  %p3347_p9 = scmp.lt.s32.totalorder %s3341_s3, %s4694_s2 }
  0x43   : > { %v1256_v40 = vadd.f32 %v1255_v28, %v997_v21  ;;  %v233_v46 = vld [vmem:[%s3541_s14 + $0xb0] sm:$0xff]  ;;  %v1245_v47 = vadd.f32 %v988_v35, %v987_v34  ;;  %v725_v48 = vsub.f32 %v213_v31, %v469_v37  ;;  %v726_v49 = vsub.f32 %v214_v32, %v470_v38  ;;  %v234_v51 = vld [vmem:[%s3541_s14 + $0xb8] sm:$0xff]  ;;  %v487_v52 = vld [vmem:[%s3548_s26 + $0xa0] sm:$0xff]  ;;  %p3343_p6 = scmp.ne.s32.totalorder %s3341_s3, %s3342_s5  ;;  %p3348_p1 = scmp.lt.s32.totalorder %s3346_s6, %s3342_s5 }
  0x44   : > { %v979_v50 = vmul.f32 %v723_v39, %v723_v39  ;;  %v488_v53 = vld [vmem:[%s3548_s26 + $0xa8] sm:$0xff]  ;;  %v980_v55 = vmul.f32 %v724_v43, %v724_v43  ;;  %v489_v56 = vld [vmem:[%s3548_s26 + $0xb0] sm:$0xff]  ;;  %v490_v57 = vld [vmem:[%s3548_s26 + $0xb8] sm:$0xff]  ;;  %v743_v58 = vsub.f32 %v231_v44, %v487_v52  ;;  %vm3065_vm15 = vcmask 1040384  }
  0x45   : > { %v1257_v54 = vadd.f32 %v1256_v40, %v998_v27  ;;  %v744_v59 = vsub.f32 %v232_v45, %v488_v53  ;;  %v223_v60 = vld [vmem:[%s3541_s14 + $0x60] sm:$0xff]  ;;  %v1246_v61 = vadd.f32 %v1245_v47, %v989_v41  ;;  %v981_v62 = vmul.f32 %v725_v48, %v725_v48  ;;  %v224_v1 = vld [vmem:[%s3541_s14 + $0x68] sm:$0xff]  ;;  %v225_v2 = vld [vmem:[%s3541_s14 + $0x70] sm:$0xff]  ;;  %p3344_p12 = pnand %p3343_p6, %p3465_p10  ;;  %p3349_p3 = por %p3348_p1, %p3347_p9 }
  0x46   : > { %v982_v63 = vmul.f32 %v726_v49, %v726_v49  ;;  %v745_v0 = vsub.f32 %v233_v46, %v489_v56  ;;  %v226_v3 = vld [vmem:[%s3541_s14 + $0x78] sm:$0xff]  ;;  %v1235_v4 = vadd.f32 %v980_v55, %v979_v50  ;;  %v746_v5 = vsub.f32 %v234_v51, %v490_v57  ;;  %v479_v8 = vld [vmem:[%s3548_s26 + $0x60] sm:$0xff]  ;;  %v480_v9 = vld [vmem:[%s3548_s26 + $0x68] sm:$0xff] }
  0x47   : > { %1258 = vadd.xlane.f32.xlu2 %v1257_v54  ;;  %v999_v6 = vmul.f32 %v743_v58, %v743_v58  ;;  %v1000_v7 = vmul.f32 %v744_v59, %v744_v59  ;;  %v481_v10 = vld [vmem:[%s3548_s26 + $0x70] sm:$0xff]  ;;  %v1247_v11 = vadd.f32 %v1246_v61, %v990_v42  ;;  %v482_v13 = vld [vmem:[%s3548_s26 + $0x78] sm:$0xff]  ;;  %v735_v14 = vsub.f32 %v223_v60, %v479_v8  ;;  %v215_v16 = vld [vmem:[%s3541_s14 + $0x20] sm:$0xff]  ;;  %p3345_p2 = pneg %p3344_p12 }
  0x48   : > { %v1001_v12 = vmul.f32 %v745_v0, %v745_v0  ;;  %v736_v15 = vsub.f32 %v224_v1, %v480_v9  ;;  %v216_v17 = vld [vmem:[%s3541_s14 + $0x28] sm:$0xff]  ;;  %v1236_v18 = vadd.f32 %v1235_v4, %v981_v62  ;;  %v1002_v19 = vmul.f32 %v746_v5, %v746_v5  ;;  %v217_v22 = vld [vmem:[%s3541_s14 + $0x30] sm:$0xff]  ;;  %v218_v23 = vld [vmem:[%s3541_s14 + $0x38] sm:$0xff] }
  0x49   : > { %v1260_v20 = vadd.f32 %v1000_v7, %v999_v6  ;;  %v737_v21 = vsub.f32 %v225_v2, %v481_v10  ;;  %v471_v24 = vld [vmem:[%s3548_s26 + $0x20] sm:$0xff]  ;;  %1248 = vadd.xlane.f32.xlu1 %v1247_v11  ;;  %v738_v25 = vsub.f32 %v226_v3, %v482_v13  ;;  %v991_v26 = vmul.f32 %v735_v14, %v735_v14  ;;  %v472_v28 = vld [vmem:[%s3548_s26 + $0x28] sm:$0xff]  ;;  %v473_v29 = vld [vmem:[%s3548_s26 + $0x30] sm:$0xff]  ;;  %p3350_p13 = pnand %p3349_p3, %p3345_p2 }
  0x4a   : > { %v992_v27 = vmul.f32 %v736_v15, %v736_v15  ;;  %v474_v30 = vld [vmem:[%s3548_s26 + $0x38] sm:$0xff]  ;;  %v727_v31 = vsub.f32 %v215_v16, %v471_v24  ;;  %v1237_v32 = vadd.f32 %v1236_v18, %v982_v63  ;;  %v728_v35 = vsub.f32 %v216_v17, %v472_v28  ;;  %v243_v36 = vld [vmem:[%s3541_s14 + $0x100] sm:$0xff]  ;;  %v244_v37 = vld [vmem:[%s3541_s14 + $0x108] sm:$0xff] }
  0x4b   : > { %v1261_v33 = vadd.f32 %v1260_v20, %v1001_v12  ;;  %v993_v34 = vmul.f32 %v737_v21, %v737_v21  ;;  %v245_v38 = vld [vmem:[%s3541_s14 + $0x110] sm:$0xff]  ;;  %v994_v39 = vmul.f32 %v738_v25, %v738_v25  ;;  %v729_v41 = vsub.f32 %v217_v22, %v473_v29  ;;  %v246_v43 = vld [vmem:[%s3541_s14 + $0x118] sm:$0xff]  ;;  %v499_v44 = vld [vmem:[%s3548_s26 + $0x100] sm:$0xff] }
  0x4c   : > { %v1250_v40 = vadd.f32 %v992_v27, %v991_v26  ;;  %v730_v42 = vsub.f32 %v218_v23, %v474_v30  ;;  %v500_v45 = vld [vmem:[%s3548_s26 + $0x108] sm:$0xff]  ;;  %1238 = vadd.xlane.f32.xlu0 %v1237_v32  ;;  %v983_v47 = vmul.f32 %v727_v31, %v727_v31  ;;  %v984_v48 = vmul.f32 %v728_v35, %v728_v35  ;;  %v501_v49 = vld [vmem:[%s3548_s26 + $0x110] sm:$0xff]  ;;  %v502_v50 = vld [vmem:[%s3548_s26 + $0x118] sm:$0xff] }
  0x4d   : > { %v1262_v46 = vadd.f32 %v1261_v33, %v1002_v19  ;;  %v755_v51 = vsub.f32 %v243_v36, %v499_v44  ;;  %v239_v52 = vld [vmem:[%s3541_s14 + $0xe0] sm:$0xff]  ;;  %v985_v54 = vmul.f32 %v729_v41, %v729_v41  ;;  %v756_v56 = vsub.f32 %v244_v37, %v500_v45  ;;  %v240_v57 = vld [vmem:[%s3541_s14 + $0xe8] sm:$0xff]  ;;  %v241_v58 = vld [vmem:[%s3541_s14 + $0xf0] sm:$0xff] }
  0x4e   : > { %v1251_v53 = vadd.f32 %v1250_v40, %v993_v34  ;;  %v986_v55 = vmul.f32 %v730_v42, %v730_v42  ;;  %v242_v59 = vld [vmem:[%s3541_s14 + $0xf8] sm:$0xff]  ;;  %v1240_v60 = vadd.f32 %v984_v48, %v983_v47  ;;  %v757_v61 = vsub.f32 %v245_v38, %v501_v49  ;;  %v495_v0 = vld [vmem:[%s3548_s26 + $0xe0] sm:$0xff]  ;;  %v496_v1 = vld [vmem:[%s3548_s26 + $0xe8] sm:$0xff] }
  0x4f   : > { %1263 = vadd.xlane.f32.xlu2 %v1262_v46  ;;  %v758_v62 = vsub.f32 %v246_v43, %v502_v50  ;;  %v1011_v63 = vmul.f32 %v755_v51, %v755_v51  ;;  %v497_v2 = vld [vmem:[%s3548_s26 + $0xf0] sm:$0xff]  ;;  %v1012_v4 = vmul.f32 %v756_v56, %v756_v56  ;;  %v498_v5 = vld [vmem:[%s3548_s26 + $0xf8] sm:$0xff]  ;;  %v751_v6 = vsub.f32 %v239_v52, %v495_v0  ;;  %v235_v8 = vld [vmem:[%s3541_s14 + $0xc0] sm:$0xff] }
  0x50   : > { %v1252_v3 = vadd.f32 %v1251_v53, %v994_v39  ;;  %v752_v7 = vsub.f32 %v240_v57, %v496_v1  ;;  %v236_v9 = vld [vmem:[%s3541_s14 + $0xc8] sm:$0xff]  ;;  %v1241_v10 = vadd.f32 %v1240_v60, %v985_v54  ;;  %v1013_v11 = vmul.f32 %v757_v61, %v757_v61  ;;  %v237_v14 = vld [vmem:[%s3541_s14 + $0xd0] sm:$0xff]  ;;  %v238_v15 = vld [vmem:[%s3541_s14 + $0xd8] sm:$0xff] }
  0x51   : > { %v1014_v12 = vmul.f32 %v758_v62, %v758_v62  ;;  %v753_v13 = vsub.f32 %v241_v58, %v497_v2  ;;  %v491_v16 = vld [vmem:[%s3548_s26 + $0xc0] sm:$0xff]  ;;  %v1275_v17 = vadd.f32 %v1012_v4, %v1011_v63  ;;  %v754_v18 = vsub.f32 %v242_v59, %v498_v5  ;;  %v492_v21 = vld [vmem:[%s3548_s26 + $0xc8] sm:$0xff]  ;;  %v493_v22 = vld [vmem:[%s3548_s26 + $0xd0] sm:$0xff] }
  0x52   : > { %1253 = vadd.xlane.f32.xlu1 %v1252_v3  ;;  %v1007_v19 = vmul.f32 %v751_v6, %v751_v6  ;;  %v1008_v20 = vmul.f32 %v752_v7, %v752_v7  ;;  %v494_v23 = vld [vmem:[%s3548_s26 + $0xd8] sm:$0xff]  ;;  %v1242_v24 = vadd.f32 %v1241_v10, %v986_v55  ;;  %v747_v26 = vsub.f32 %v235_v8, %v491_v16  ;;  %v255_v28 = vld [vmem:[%s3541_s14 + $0x160] sm:$0xff]  ;;  %v256_v29 = vld [vmem:[%s3541_s14 + $0x168] sm:$0xff] }
  0x53   : > { %v1009_v25 = vmul.f32 %v753_v13, %v753_v13  ;;  %v748_v27 = vsub.f32 %v236_v9, %v492_v21  ;;  %v257_v30 = vld [vmem:[%s3541_s14 + $0x170] sm:$0xff]  ;;  %v1276_v31 = vadd.f32 %v1275_v17, %v1013_v11  ;;  %v1010_v32 = vmul.f32 %v754_v18, %v754_v18  ;;  %v258_v35 = vld [vmem:[%s3541_s14 + $0x178] sm:$0xff]  ;;  %v511_v36 = vld [vmem:[%s3548_s26 + $0x160] sm:$0xff] }
  0x54   : > { %v1270_v33 = vadd.f32 %v1008_v20, %v1007_v19  ;;  %v749_v34 = vsub.f32 %v237_v14, %v493_v22  ;;  %v512_v37 = vld [vmem:[%s3548_s26 + $0x168] sm:$0xff]  ;;  %1243 = vadd.xlane.f32.xlu0 %v1242_v24  ;;  %v750_v38 = vsub.f32 %v238_v15, %v494_v23  ;;  %v1003_v39 = vmul.f32 %v747_v26, %v747_v26  ;;  %v513_v41 = vld [vmem:[%s3548_s26 + $0x170] sm:$0xff]  ;;  %v514_v42 = vld [vmem:[%s3548_s26 + $0x178] sm:$0xff] }
  0x55   : > { %v1004_v40 = vmul.f32 %v748_v27, %v748_v27  ;;  %v767_v43 = vsub.f32 %v255_v28, %v511_v36  ;;  %v251_v44 = vld [vmem:[%s3541_s14 + $0x140] sm:$0xff]  ;;  %v1277_v45 = vadd.f32 %v1276_v31, %v1014_v12  ;;  %v768_v48 = vsub.f32 %v256_v29, %v512_v37  ;;  %v252_v49 = vld [vmem:[%s3541_s14 + $0x148] sm:$0xff]  ;;  %v253_v50 = vld [vmem:[%s3541_s14 + $0x150] sm:$0xff] }
  0x56   : > { %v1271_v46 = vadd.f32 %v1270_v33, %v1009_v25  ;;  %v1005_v47 = vmul.f32 %v749_v34, %v749_v34  ;;  %v254_v51 = vld [vmem:[%s3541_s14 + $0x158] sm:$0xff]  ;;  %v1006_v52 = vmul.f32 %v750_v38, %v750_v38  ;;  %v769_v54 = vsub.f32 %v257_v30, %v513_v41  ;;  %v507_v56 = vld [vmem:[%s3548_s26 + $0x140] sm:$0xff]  ;;  %v508_v57 = vld [vmem:[%s3548_s26 + $0x148] sm:$0xff] }
  0x57   : > { %v1265_v53 = vadd.f32 %v1004_v40, %v1003_v39  ;;  %v770_v55 = vsub.f32 %v258_v35, %v514_v42  ;;  %v509_v58 = vld [vmem:[%s3548_s26 + $0x150] sm:$0xff]  ;;  %1278 = vadd.xlane.f32.xlu2 %v1277_v45  ;;  %v1023_v60 = vmul.f32 %v767_v43, %v767_v43  ;;  %v1024_v61 = vmul.f32 %v768_v48, %v768_v48  ;;  %v510_v62 = vld [vmem:[%s3548_s26 + $0x158] sm:$0xff]  ;;  %v247_v0 = vld [vmem:[%s3541_s14 + $0x120] sm:$0xff] }
  0x58   : > { %v1272_v59 = vadd.f32 %v1271_v46, %v1010_v32  ;;  %v763_v63 = vsub.f32 %v251_v44, %v507_v56  ;;  %v248_v1 = vld [vmem:[%s3541_s14 + $0x128] sm:$0xff]  ;;  %v1025_v3 = vmul.f32 %v769_v54, %v769_v54  ;;  %v764_v5 = vsub.f32 %v252_v49, %v508_v57  ;;  %v249_v6 = vld [vmem:[%s3541_s14 + $0x130] sm:$0xff]  ;;  %v250_v7 = vld [vmem:[%s3541_s14 + $0x138] sm:$0xff] }
  0x59   : > { %v1266_v2 = vadd.f32 %v1265_v53, %v1005_v47  ;;  %v1026_v4 = vmul.f32 %v770_v55, %v770_v55  ;;  %v503_v8 = vld [vmem:[%s3548_s26 + $0x120] sm:$0xff]  ;;  %v1290_v9 = vadd.f32 %v1024_v61, %v1023_v60  ;;  %v765_v10 = vsub.f32 %v253_v50, %v509_v58  ;;  %v504_v13 = vld [vmem:[%s3548_s26 + $0x128] sm:$0xff]  ;;  %v505_v14 = vld [vmem:[%s3548_s26 + $0x130] sm:$0xff] }
  0x5a   : > { %1273 = vadd.xlane.f32.xlu1 %v1272_v59  ;;  %v766_v11 = vsub.f32 %v254_v51, %v510_v62  ;;  %v1019_v12 = vmul.f32 %v763_v63, %v763_v63  ;;  %v506_v15 = vld [vmem:[%s3548_s26 + $0x138] sm:$0xff]  ;;  %v1020_v17 = vmul.f32 %v764_v5, %v764_v5  ;;  %v759_v18 = vsub.f32 %v247_v0, %v503_v8  ;;  %v267_v20 = vld [vmem:[%s3541_s14 + $0x1c0] sm:$0xff]  ;;  %v268_v21 = vld [vmem:[%s3541_s14 + $0x1c8] sm:$0xff] }
  0x5b   : > { %v1267_v16 = vadd.f32 %v1266_v2, %v1006_v52  ;;  %v760_v19 = vsub.f32 %v248_v1, %v504_v13  ;;  %v269_v22 = vld [vmem:[%s3541_s14 + $0x1d0] sm:$0xff]  ;;  %v1291_v23 = vadd.f32 %v1290_v9, %v1025_v3  ;;  %v1021_v24 = vmul.f32 %v765_v10, %v765_v10  ;;  %v270_v27 = vld [vmem:[%s3541_s14 + $0x1d8] sm:$0xff]  ;;  %v523_v28 = vld [vmem:[%s3548_s26 + $0x1c0] sm:$0xff] }
  0x5c   : > { %v1022_v25 = vmul.f32 %v766_v11, %v766_v11  ;;  %v761_v26 = vsub.f32 %v249_v6, %v505_v14  ;;  %v524_v29 = vld [vmem:[%s3548_s26 + $0x1c8] sm:$0xff]  ;;  %v1285_v30 = vadd.f32 %v1020_v17, %v1019_v12  ;;  %v762_v31 = vsub.f32 %v250_v7, %v506_v15  ;;  %v525_v34 = vld [vmem:[%s3548_s26 + $0x1d0] sm:$0xff]  ;;  %v526_v35 = vld [vmem:[%s3548_s26 + $0x1d8] sm:$0xff] }
  0x5d   : > { %1268 = vadd.xlane.f32.xlu0 %v1267_v16  ;;  %v1015_v32 = vmul.f32 %v759_v18, %v759_v18  ;;  %v1016_v33 = vmul.f32 %v760_v19, %v760_v19  ;;  %v263_v36 = vld [vmem:[%s3541_s14 + $0x1a0] sm:$0xff]  ;;  %v1292_v37 = vadd.f32 %v1291_v23, %v1026_v4  ;;  %v779_v39 = vsub.f32 %v267_v20, %v523_v28  ;;  %v264_v41 = vld [vmem:[%s3541_s14 + $0x1a8] sm:$0xff]  ;;  %v265_v42 = vld [vmem:[%s3541_s14 + $0x1b0] sm:$0xff] }
  0x5e   : > { %v1017_v38 = vmul.f32 %v761_v26, %v761_v26  ;;  %v780_v40 = vsub.f32 %v268_v21, %v524_v29  ;;  %v266_v43 = vld [vmem:[%s3541_s14 + $0x1b8] sm:$0xff]  ;;  %v1286_v44 = vadd.f32 %v1285_v30, %v1021_v24  ;;  %v1018_v45 = vmul.f32 %v762_v31, %v762_v31  ;;  %v519_v48 = vld [vmem:[%s3548_s26 + $0x1a0] sm:$0xff]  ;;  %v520_v49 = vld [vmem:[%s3548_s26 + $0x1a8] sm:$0xff] }
  0x5f   : > { %v1280_v46 = vadd.f32 %v1016_v33, %v1015_v32  ;;  %v781_v47 = vsub.f32 %v269_v22, %v525_v34  ;;  %v521_v50 = vld [vmem:[%s3548_s26 + $0x1b0] sm:$0xff]  ;;  %1293 = vadd.xlane.f32.xlu2 %v1292_v37  ;;  %v782_v51 = vsub.f32 %v270_v27, %v526_v35  ;;  %v1035_v52 = vmul.f32 %v779_v39, %v779_v39  ;;  %v522_v54 = vld [vmem:[%s3548_s26 + $0x1b8] sm:$0xff]  ;;  %v259_v56 = vld [vmem:[%s3541_s14 + $0x180] sm:$0xff] }
  0x60   : > { %v1036_v53 = vmul.f32 %v780_v40, %v780_v40  ;;  %v775_v55 = vsub.f32 %v263_v36, %v519_v48  ;;  %v260_v57 = vld [vmem:[%s3541_s14 + $0x188] sm:$0xff]  ;;  %v1287_v58 = vadd.f32 %v1286_v44, %v1022_v25  ;;  %v776_v61 = vsub.f32 %v264_v41, %v520_v49  ;;  %v261_v62 = vld [vmem:[%s3541_s14 + $0x190] sm:$0xff]  ;;  %v262_v63 = vld [vmem:[%s3541_s14 + $0x198] sm:$0xff] }
  0x61   : > { %v1281_v59 = vadd.f32 %v1280_v46, %v1017_v38  ;;  %v1037_v60 = vmul.f32 %v781_v47, %v781_v47  ;;  %v515_v0 = vld [vmem:[%s3548_s26 + $0x180] sm:$0xff]  ;;  %v1038_v1 = vmul.f32 %v782_v51, %v782_v51  ;;  %v777_v3 = vsub.f32 %v265_v42, %v521_v50  ;;  %v516_v5 = vld [vmem:[%s3548_s26 + $0x188] sm:$0xff]  ;;  %v517_v6 = vld [vmem:[%s3548_s26 + $0x190] sm:$0xff] }
  0x62   : > { %v1305_v2 = vadd.f32 %v1036_v53, %v1035_v52  ;;  %v778_v4 = vsub.f32 %v266_v43, %v522_v54  ;;  %v518_v7 = vld [vmem:[%s3548_s26 + $0x198] sm:$0xff]  ;;  %1288 = vadd.xlane.f32.xlu1 %v1287_v58  ;;  %v1031_v9 = vmul.f32 %v775_v55, %v775_v55  ;;  %v1032_v10 = vmul.f32 %v776_v61, %v776_v61  ;;  %v279_v12 = vld [vmem:[%s3541_s14 + $0x220] sm:$0xff]  ;;  %v280_v13 = vld [vmem:[%s3541_s14 + $0x228] sm:$0xff] }
  0x63   : > { %v1282_v8 = vadd.f32 %v1281_v59, %v1018_v45  ;;  %v771_v11 = vsub.f32 %v259_v56, %v515_v0  ;;  %v281_v14 = vld [vmem:[%s3541_s14 + $0x230] sm:$0xff]  ;;  %v1033_v16 = vmul.f32 %v777_v3, %v777_v3  ;;  %v772_v18 = vsub.f32 %v260_v57, %v516_v5  ;;  %v282_v19 = vld [vmem:[%s3541_s14 + $0x238] sm:$0xff]  ;;  %v535_v20 = vld [vmem:[%s3548_s26 + $0x220] sm:$0xff] }
  0x64   : > { %v1306_v15 = vadd.f32 %v1305_v2, %v1037_v60  ;;  %v1034_v17 = vmul.f32 %v778_v4, %v778_v4  ;;  %v536_v21 = vld [vmem:[%s3548_s26 + $0x228] sm:$0xff]  ;;  %v1300_v22 = vadd.f32 %v1032_v10, %v1031_v9  ;;  %v773_v23 = vsub.f32 %v261_v62, %v517_v6  ;;  %v537_v26 = vld [vmem:[%s3548_s26 + $0x230] sm:$0xff]  ;;  %v538_v27 = vld [vmem:[%s3548_s26 + $0x238] sm:$0xff] }
  0x65   : > { %1283 = vadd.xlane.f32.xlu0 %v1282_v8  ;;  %v774_v24 = vsub.f32 %v262_v63, %v518_v7  ;;  %v1027_v25 = vmul.f32 %v771_v11, %v771_v11  ;;  %v275_v28 = vld [vmem:[%s3541_s14 + $0x200] sm:$0xff]  ;;  %v1028_v30 = vmul.f32 %v772_v18, %v772_v18  ;;  %v791_v31 = vsub.f32 %v279_v12, %v535_v20  ;;  %v276_v33 = vld [vmem:[%s3541_s14 + $0x208] sm:$0xff]  ;;  %v277_v34 = vld [vmem:[%s3541_s14 + $0x210] sm:$0xff] }
  0x66   : > { %v1307_v29 = vadd.f32 %v1306_v15, %v1038_v1  ;;  %v792_v32 = vsub.f32 %v280_v13, %v536_v21  ;;  %v278_v35 = vld [vmem:[%s3541_s14 + $0x218] sm:$0xff]  ;;  %v1301_v36 = vadd.f32 %v1300_v22, %v1033_v16  ;;  %v1029_v37 = vmul.f32 %v773_v23, %v773_v23  ;;  %v531_v40 = vld [vmem:[%s3548_s26 + $0x200] sm:$0xff]  ;;  %v532_v41 = vld [vmem:[%s3548_s26 + $0x208] sm:$0xff] }
  0x67   : > { %v1030_v38 = vmul.f32 %v774_v24, %v774_v24  ;;  %v793_v39 = vsub.f32 %v281_v14, %v537_v26  ;;  %v533_v42 = vld [vmem:[%s3548_s26 + $0x210] sm:$0xff]  ;;  %v1295_v43 = vadd.f32 %v1028_v30, %v1027_v25  ;;  %v794_v44 = vsub.f32 %v282_v19, %v538_v27  ;;  %v534_v47 = vld [vmem:[%s3548_s26 + $0x218] sm:$0xff]  ;;  %v271_v48 = vld [vmem:[%s3541_s14 + $0x1e0] sm:$0xff] }
  0x68   : > { %1308 = vadd.xlane.f32.xlu2 %v1307_v29  ;;  %v1047_v45 = vmul.f32 %v791_v31, %v791_v31  ;;  %v1048_v46 = vmul.f32 %v792_v32, %v792_v32  ;;  %v272_v49 = vld [vmem:[%s3541_s14 + $0x1e8] sm:$0xff]  ;;  %v1302_v50 = vadd.f32 %v1301_v36, %v1034_v17  ;;  %v787_v52 = vsub.f32 %v275_v28, %v531_v40  ;;  %v273_v54 = vld [vmem:[%s3541_s14 + $0x1f0] sm:$0xff]  ;;  %v274_v55 = vld [vmem:[%s3541_s14 + $0x1f8] sm:$0xff] }
  0x69   : > { %v1049_v51 = vmul.f32 %v793_v39, %v793_v39  ;;  %v788_v53 = vsub.f32 %v276_v33, %v532_v41  ;;  %v527_v56 = vld [vmem:[%s3548_s26 + $0x1e0] sm:$0xff]  ;;  %v1296_v57 = vadd.f32 %v1295_v43, %v1029_v37  ;;  %v1050_v58 = vmul.f32 %v794_v44, %v794_v44  ;;  %v528_v61 = vld [vmem:[%s3548_s26 + $0x1e8] sm:$0xff]  ;;  %v529_v62 = vld [vmem:[%s3548_s26 + $0x1f0] sm:$0xff] }
  0x6a   : > { %v1320_v59 = vadd.f32 %v1048_v46, %v1047_v45  ;;  %v789_v60 = vsub.f32 %v277_v34, %v533_v42  ;;  %v530_v63 = vld [vmem:[%s3548_s26 + $0x1f8] sm:$0xff]  ;;  %1303 = vadd.xlane.f32.xlu1 %v1302_v50  ;;  %v790_v0 = vsub.f32 %v278_v35, %v534_v47  ;;  %v1043_v1 = vmul.f32 %v787_v52, %v787_v52  ;;  %v291_v4 = vld [vmem:[%s3541_s14 + $0x280] sm:$0xff]  ;;  %v292_v5 = vld [vmem:[%s3541_s14 + $0x288] sm:$0xff] }
  0x6b   : > { %v1044_v2 = vmul.f32 %v788_v53, %v788_v53  ;;  %v783_v3 = vsub.f32 %v271_v48, %v527_v56  ;;  %v1297_v6 = vadd.f32 %v1296_v57, %v1030_v38  ;;  %v784_v9 = vsub.f32 %v272_v49, %v528_v61  ;;  %v293_v10 = vld [vmem:[%s3541_s14 + $0x290] sm:$0xff]  ;;  %v547_v11 = vld [vmem:[%s3548_s26 + $0x280] sm:$0xff]  ;;  %v548_v12 = vld [vmem:[%s3548_s26 + $0x288] sm:$0xff] }
  0x6c   : > { %v1321_v7 = vadd.f32 %v1320_v59, %v1049_v51  ;;  %v1045_v8 = vmul.f32 %v789_v60, %v789_v60  ;;  %v1046_v13 = vmul.f32 %v790_v0, %v790_v0  ;;  %v785_v15 = vsub.f32 %v273_v54, %v529_v62  ;;  %v294_v17 = vld [vmem:[%s3541_s14 + $0x298] sm:$0xff]  ;;  %v549_v18 = vld [vmem:[%s3548_s26 + $0x290] sm:$0xff]  ;;  %v287_v24 = vld [vmem:[%s3541_s14 + $0x260] sm:$0xff] }
  0x6d   : > { %v1315_v14 = vadd.f32 %v1044_v2, %v1043_v1  ;;  %v786_v16 = vsub.f32 %v274_v55, %v530_v63  ;;  %v550_v19 = vld [vmem:[%s3548_s26 + $0x298] sm:$0xff]  ;;  %1298 = vadd.xlane.f32.xlu0 %v1297_v6  ;;  %v1039_v21 = vmul.f32 %v783_v3, %v783_v3  ;;  %v1040_v22 = vmul.f32 %v784_v9, %v784_v9  ;;  %v288_v25 = vld [vmem:[%s3541_s14 + $0x268] sm:$0xff]  ;;  %v289_v26 = vld [vmem:[%s3541_s14 + $0x270] sm:$0xff] }
  0x6e   : > { %v1322_v20 = vadd.f32 %v1321_v7, %v1050_v58  ;;  %v803_v23 = vsub.f32 %v291_v4, %v547_v11  ;;  %v1041_v28 = vmul.f32 %v785_v15, %v785_v15  ;;  %v804_v30 = vsub.f32 %v292_v5, %v548_v12  ;;  %v543_v31 = vld [vmem:[%s3548_s26 + $0x260] sm:$0xff]  ;;  %v544_v32 = vld [vmem:[%s3548_s26 + $0x268] sm:$0xff]  ;;  %v545_v33 = vld [vmem:[%s3548_s26 + $0x270] sm:$0xff] }
  0x6f   : > { %v1316_v27 = vadd.f32 %v1315_v14, %v1045_v8  ;;  %v1042_v29 = vmul.f32 %v786_v16, %v786_v16  ;;  %v1310_v34 = vadd.f32 %v1040_v22, %v1039_v21  ;;  %v805_v35 = vsub.f32 %v293_v10, %v549_v18  ;;  %v290_v38 = vld [vmem:[%s3541_s14 + $0x278] sm:$0xff]  ;;  %v283_v40 = vld [vmem:[%s3541_s14 + $0x240] sm:$0xff]  ;;  %v284_v45 = vld [vmem:[%s3541_s14 + $0x248] sm:$0xff] }
  0x70   : > { %1323 = vadd.xlane.f32.xlu2 %v1322_v20  ;;  %v806_v36 = vsub.f32 %v294_v17, %v550_v19  ;;  %v1059_v37 = vmul.f32 %v803_v23, %v803_v23  ;;  %v546_v39 = vld [vmem:[%s3548_s26 + $0x278] sm:$0xff]  ;;  %v1060_v42 = vmul.f32 %v804_v30, %v804_v30  ;;  %v799_v43 = vsub.f32 %v287_v24, %v543_v31  ;;  %v285_v46 = vld [vmem:[%s3541_s14 + $0x250] sm:$0xff]  ;;  %v539_v47 = vld [vmem:[%s3548_s26 + $0x240] sm:$0xff] }
  0x71   : > { %v1317_v41 = vadd.f32 %v1316_v27, %v1046_v13  ;;  %v800_v44 = vsub.f32 %v288_v25, %v544_v32  ;;  %v1311_v48 = vadd.f32 %v1310_v34, %v1041_v28  ;;  %v1061_v49 = vmul.f32 %v805_v35, %v805_v35  ;;  %v286_v52 = vld [vmem:[%s3541_s14 + $0x258] sm:$0xff]  ;;  %v540_v53 = vld [vmem:[%s3548_s26 + $0x248] sm:$0xff]  ;;  %v541_v54 = vld [vmem:[%s3548_s26 + $0x250] sm:$0xff] }
  0x72   : > { %v1062_v50 = vmul.f32 %v806_v36, %v806_v36  ;;  %v801_v51 = vsub.f32 %v289_v26, %v545_v33  ;;  %v1335_v55 = vadd.f32 %v1060_v42, %v1059_v37  ;;  %v802_v56 = vsub.f32 %v290_v38, %v546_v39  ;;  %v542_v59 = vld [vmem:[%s3548_s26 + $0x258] sm:$0xff]  ;;  %v303_v60 = vld [vmem:[%s3541_s14 + $0x2e0] sm:$0xff]  ;;  %v304_v61 = vld [vmem:[%s3541_s14 + $0x2e8] sm:$0xff] }
  0x73   : > { %1318 = vadd.xlane.f32.xlu1 %v1317_v41  ;;  %v1055_v57 = vmul.f32 %v799_v43, %v799_v43  ;;  %v1056_v58 = vmul.f32 %v800_v44, %v800_v44  ;;  %v1312_v62 = vadd.f32 %v1311_v48, %v1042_v29  ;;  %v795_v0 = vsub.f32 %v283_v40, %v539_v47  ;;  %v305_v2 = vld [vmem:[%s3541_s14 + $0x2f0] sm:$0xff]  ;;  %v559_v3 = vld [vmem:[%s3548_s26 + $0x2e0] sm:$0xff]  ;;  %v560_v4 = vld [vmem:[%s3548_s26 + $0x2e8] sm:$0xff] }
  0x74   : > { %v1057_v63 = vmul.f32 %v801_v51, %v801_v51  ;;  %v796_v1 = vsub.f32 %v284_v45, %v540_v53  ;;  %v1336_v5 = vadd.f32 %v1335_v55, %v1061_v49  ;;  %v1058_v6 = vmul.f32 %v802_v56, %v802_v56  ;;  %v306_v9 = vld [vmem:[%s3541_s14 + $0x2f8] sm:$0xff]  ;;  %v561_v10 = vld [vmem:[%s3548_s26 + $0x2f0] sm:$0xff]  ;;  %v299_v16 = vld [vmem:[%s3541_s14 + $0x2c0] sm:$0xff] }
  0x75   : > { %v1330_v7 = vadd.f32 %v1056_v58, %v1055_v57  ;;  %v797_v8 = vsub.f32 %v285_v46, %v541_v54  ;;  %v562_v11 = vld [vmem:[%s3548_s26 + $0x2f8] sm:$0xff]  ;;  %1313 = vadd.xlane.f32.xlu0 %v1312_v62  ;;  %v798_v12 = vsub.f32 %v286_v52, %v542_v59  ;;  %v1051_v13 = vmul.f32 %v795_v0, %v795_v0  ;;  %v300_v17 = vld [vmem:[%s3541_s14 + $0x2c8] sm:$0xff]  ;;  %v301_v22 = vld [vmem:[%s3541_s14 + $0x2d0] sm:$0xff] }
  0x76   : > { %v1052_v14 = vmul.f32 %v796_v1, %v796_v1  ;;  %v815_v15 = vsub.f32 %v303_v60, %v559_v3  ;;  %v1337_v18 = vadd.f32 %v1336_v5, %v1062_v50  ;;  %v816_v21 = vsub.f32 %v304_v61, %v560_v4  ;;  %v555_v23 = vld [vmem:[%s3548_s26 + $0x2c0] sm:$0xff]  ;;  %v556_v24 = vld [vmem:[%s3548_s26 + $0x2c8] sm:$0xff]  ;;  %v302_v29 = vld [vmem:[%s3541_s14 + $0x2d8] sm:$0xff] }
  0x77   : > { %v1331_v19 = vadd.f32 %v1330_v7, %v1057_v63  ;;  %v1053_v20 = vmul.f32 %v797_v8, %v797_v8  ;;  %v1054_v25 = vmul.f32 %v798_v12, %v798_v12  ;;  %v817_v27 = vsub.f32 %v305_v2, %v561_v10  ;;  %v557_v30 = vld [vmem:[%s3548_s26 + $0x2d0] sm:$0xff]  ;;  %v558_v31 = vld [vmem:[%s3548_s26 + $0x2d8] sm:$0xff]  ;;  %v295_v36 = vld [vmem:[%s3541_s14 + $0x2a0] sm:$0xff] }
  0x78   : > { %v1325_v26 = vadd.f32 %v1052_v14, %v1051_v13  ;;  %v818_v28 = vsub.f32 %v306_v9, %v562_v11  ;;  %1338 = vadd.xlane.f32.xlu2 %v1337_v18  ;;  %v1071_v33 = vmul.f32 %v815_v15, %v815_v15  ;;  %v1072_v34 = vmul.f32 %v816_v21, %v816_v21  ;;  %v296_v37 = vld [vmem:[%s3541_s14 + $0x2a8] sm:$0xff]  ;;  %v551_v38 = vld [vmem:[%s3548_s26 + $0x2a0] sm:$0xff]  ;;  %v297_v43 = vld [vmem:[%s3541_s14 + $0x2b0] sm:$0xff] }
  0x79   : > { %v1332_v32 = vadd.f32 %v1331_v19, %v1058_v6  ;;  %v811_v35 = vsub.f32 %v299_v16, %v555_v23  ;;  %v1073_v40 = vmul.f32 %v817_v27, %v817_v27  ;;  %v812_v42 = vsub.f32 %v300_v17, %v556_v24  ;;  %v552_v44 = vld [vmem:[%s3548_s26 + $0x2a8] sm:$0xff]  ;;  %v553_v45 = vld [vmem:[%s3548_s26 + $0x2b0] sm:$0xff]  ;;  %v298_v50 = vld [vmem:[%s3541_s14 + $0x2b8] sm:$0xff] }
  0x7a   : > { %v1326_v39 = vadd.f32 %v1325_v26, %v1053_v20  ;;  %v1074_v41 = vmul.f32 %v818_v28, %v818_v28  ;;  %v1350_v46 = vadd.f32 %v1072_v34, %v1071_v33  ;;  %v813_v47 = vsub.f32 %v301_v22, %v557_v30  ;;  %v554_v51 = vld [vmem:[%s3548_s26 + $0x2b8] sm:$0xff]  ;;  %v315_v52 = vld [vmem:[%s3541_s14 + $0x340] sm:$0xff]  ;;  %v316_v57 = vld [vmem:[%s3541_s14 + $0x348] sm:$0xff] }
  0x7b   : > { %1333 = vadd.xlane.f32.xlu1 %v1332_v32  ;;  %v814_v48 = vsub.f32 %v302_v29, %v558_v31  ;;  %v1067_v49 = vmul.f32 %v811_v35, %v811_v35  ;;  %v1068_v54 = vmul.f32 %v812_v42, %v812_v42  ;;  %v807_v55 = vsub.f32 %v295_v36, %v551_v38  ;;  %v571_v58 = vld [vmem:[%s3548_s26 + $0x340] sm:$0xff]  ;;  %v572_v59 = vld [vmem:[%s3548_s26 + $0x348] sm:$0xff]  ;;  %v317_v0 = vld [vmem:[%s3541_s14 + $0x350] sm:$0xff] }
  0x7c   : > { %v1327_v53 = vadd.f32 %v1326_v39, %v1054_v25  ;;  %v808_v56 = vsub.f32 %v296_v37, %v552_v44  ;;  %v1351_v60 = vadd.f32 %v1350_v46, %v1073_v40  ;;  %v1069_v61 = vmul.f32 %v813_v47, %v813_v47  ;;  %v318_v1 = vld [vmem:[%s3541_s14 + $0x358] sm:$0xff]  ;;  %v573_v2 = vld [vmem:[%s3548_s26 + $0x350] sm:$0xff]  ;;  %v311_v8 = vld [vmem:[%s3541_s14 + $0x320] sm:$0xff] }
  0x7d   : > { %v1070_v62 = vmul.f32 %v814_v48, %v814_v48  ;;  %v809_v63 = vsub.f32 %v297_v43, %v553_v45  ;;  %v1345_v3 = vadd.f32 %v1068_v54, %v1067_v49  ;;  %v810_v4 = vsub.f32 %v298_v50, %v554_v51  ;;  %v574_v7 = vld [vmem:[%s3548_s26 + $0x358] sm:$0xff]  ;;  %v312_v9 = vld [vmem:[%s3541_s14 + $0x328] sm:$0xff]  ;;  %v313_v14 = vld [vmem:[%s3541_s14 + $0x330] sm:$0xff] }
  0x7e   : > { %1328 = vadd.xlane.f32.xlu0 %v1327_v53  ;;  %v1063_v5 = vmul.f32 %v807_v55, %v807_v55  ;;  %v1064_v6 = vmul.f32 %v808_v56, %v808_v56  ;;  %v1352_v10 = vadd.f32 %v1351_v60, %v1074_v41  ;;  %v827_v12 = vsub.f32 %v315_v52, %v571_v58  ;;  %v567_v15 = vld [vmem:[%s3548_s26 + $0x320] sm:$0xff]  ;;  %v568_v16 = vld [vmem:[%s3548_s26 + $0x328] sm:$0xff]  ;;  %v314_v21 = vld [vmem:[%s3541_s14 + $0x338] sm:$0xff] }
  0x7f   : > { %v1065_v11 = vmul.f32 %v809_v63, %v809_v63  ;;  %v828_v13 = vsub.f32 %v316_v57, %v572_v59  ;;  %v1346_v17 = vadd.f32 %v1345_v3, %v1069_v61  ;;  %v1066_v18 = vmul.f32 %v810_v4, %v810_v4  ;;  %v569_v22 = vld [vmem:[%s3548_s26 + $0x330] sm:$0xff]  ;;  %v570_v23 = vld [vmem:[%s3548_s26 + $0x338] sm:$0xff]  ;;  %v307_v28 = vld [vmem:[%s3541_s14 + $0x300] sm:$0xff] }
  0x80   : > { %v1340_v19 = vadd.f32 %v1064_v6, %v1063_v5  ;;  %v829_v20 = vsub.f32 %v317_v0, %v573_v2  ;;  %1353 = vadd.xlane.f32.xlu2 %v1352_v10  ;;  %v830_v24 = vsub.f32 %v318_v1, %v574_v7  ;;  %v1083_v25 = vmul.f32 %v827_v12, %v827_v12  ;;  %v308_v29 = vld [vmem:[%s3541_s14 + $0x308] sm:$0xff]  ;;  %v563_v30 = vld [vmem:[%s3548_s26 + $0x300] sm:$0xff]  ;;  %v309_v35 = vld [vmem:[%s3541_s14 + $0x310] sm:$0xff] }
  0x81   : > { %v1084_v26 = vmul.f32 %v828_v13, %v828_v13  ;;  %v823_v27 = vsub.f32 %v311_v8, %v567_v15  ;;  %v1347_v31 = vadd.f32 %v1346_v17, %v1070_v62  ;;  %v824_v34 = vsub.f32 %v312_v9, %v568_v16  ;;  %v310_v36 = vld [vmem:[%s3541_s14 + $0x318] sm:$0xff]  ;;  %v564_v37 = vld [vmem:[%s3548_s26 + $0x308] sm:$0xff]  ;;  %v565_v42 = vld [vmem:[%s3548_s26 + $0x310] sm:$0xff] }
  0x82   : > { %v1341_v32 = vadd.f32 %v1340_v19, %v1065_v11  ;;  %v1085_v33 = vmul.f32 %v829_v20, %v829_v20  ;;  %v1086_v38 = vmul.f32 %v830_v24, %v830_v24  ;;  %v825_v40 = vsub.f32 %v313_v14, %v569_v22  ;;  %v566_v43 = vld [vmem:[%s3548_s26 + $0x318] sm:$0xff]  ;;  %v327_v44 = vld [vmem:[%s3541_s14 + $0x3a0] sm:$0xff]  ;;  %v328_v49 = vld [vmem:[%s3541_s14 + $0x3a8] sm:$0xff] }
  0x83   : > { %v1365_v39 = vadd.f32 %v1084_v26, %v1083_v25  ;;  %v826_v41 = vsub.f32 %v314_v21, %v570_v23  ;;  %1348 = vadd.xlane.f32.xlu1 %v1347_v31  ;;  %v1079_v46 = vmul.f32 %v823_v27, %v823_v27  ;;  %v1080_v47 = vmul.f32 %v824_v34, %v824_v34  ;;  %v583_v50 = vld [vmem:[%s3548_s26 + $0x3a0] sm:$0xff]  ;;  %v584_v51 = vld [vmem:[%s3548_s26 + $0x3a8] sm:$0xff]  ;;  %v329_v56 = vld [vmem:[%s3541_s14 + $0x3b0] sm:$0xff] }
  0x84   : > { %v1342_v45 = vadd.f32 %v1341_v32, %v1066_v18  ;;  %v819_v48 = vsub.f32 %v307_v28, %v563_v30  ;;  %v1081_v53 = vmul.f32 %v825_v40, %v825_v40  ;;  %v820_v55 = vsub.f32 %v308_v29, %v564_v37  ;;  %v585_v57 = vld [vmem:[%s3548_s26 + $0x3b0] sm:$0xff]  ;;  %v330_v62 = vld [vmem:[%s3541_s14 + $0x3b8] sm:$0xff]  ;;  %v323_v0 = vld [vmem:[%s3541_s14 + $0x380] sm:$0xff] }
  0x85   : > { %v1366_v52 = vadd.f32 %v1365_v39, %v1085_v33  ;;  %v1082_v54 = vmul.f32 %v826_v41, %v826_v41  ;;  %v1360_v58 = vadd.f32 %v1080_v47, %v1079_v46  ;;  %v821_v59 = vsub.f32 %v309_v35, %v565_v42  ;;  %v586_v63 = vld [vmem:[%s3548_s26 + $0x3b8] sm:$0xff]  ;;  %v324_v5 = vld [vmem:[%s3541_s14 + $0x388] sm:$0xff]  ;;  %v579_v6 = vld [vmem:[%s3548_s26 + $0x380] sm:$0xff] }
  0x86   : > { %1343 = vadd.xlane.f32.xlu0 %v1342_v45  ;;  %v822_v60 = vsub.f32 %v310_v36, %v566_v43  ;;  %v1075_v61 = vmul.f32 %v819_v48, %v819_v48  ;;  %v1076_v2 = vmul.f32 %v820_v55, %v820_v55  ;;  %v839_v3 = vsub.f32 %v327_v44, %v583_v50  ;;  %v580_v7 = vld [vmem:[%s3548_s26 + $0x388] sm:$0xff]  ;;  %v325_v12 = vld [vmem:[%s3541_s14 + $0x390] sm:$0xff]  ;;  %v326_v13 = vld [vmem:[%s3541_s14 + $0x398] sm:$0xff] }
  0x87   : > { %v1367_v1 = vadd.f32 %v1366_v52, %v1086_v38  ;;  %v840_v4 = vsub.f32 %v328_v49, %v584_v51  ;;  %v1361_v8 = vadd.f32 %v1360_v58, %v1081_v53  ;;  %v1077_v9 = vmul.f32 %v821_v59, %v821_v59  ;;  %v581_v14 = vld [vmem:[%s3548_s26 + $0x390] sm:$0xff]  ;;  %v582_v19 = vld [vmem:[%s3548_s26 + $0x398] sm:$0xff]  ;;  %v319_v20 = vld [vmem:[%s3541_s14 + $0x360] sm:$0xff] }
  0x88   : > { %v1078_v10 = vmul.f32 %v822_v60, %v822_v60  ;;  %v841_v11 = vsub.f32 %v329_v56, %v585_v57  ;;  %v1355_v15 = vadd.f32 %v1076_v2, %v1075_v61  ;;  %v842_v16 = vsub.f32 %v330_v62, %v586_v63  ;;  %v575_v21 = vld [vmem:[%s3548_s26 + $0x360] sm:$0xff]  ;;  %v320_v26 = vld [vmem:[%s3541_s14 + $0x368] sm:$0xff]  ;;  %v321_v27 = vld [vmem:[%s3541_s14 + $0x370] sm:$0xff] }
  0x89   : > { %1368 = vadd.xlane.f32.xlu2 %v1367_v1  ;;  %v1095_v17 = vmul.f32 %v839_v3, %v839_v3  ;;  %v1096_v18 = vmul.f32 %v840_v4, %v840_v4  ;;  %v1362_v22 = vadd.f32 %v1361_v8, %v1082_v54  ;;  %v835_v24 = vsub.f32 %v323_v0, %v579_v6  ;;  %v576_v28 = vld [vmem:[%s3548_s26 + $0x368] sm:$0xff]  ;;  %v322_v33 = vld [vmem:[%s3541_s14 + $0x378] sm:$0xff]  ;;  %v577_v34 = vld [vmem:[%s3548_s26 + $0x370] sm:$0xff] }
  0x8a   : > { %v1097_v23 = vmul.f32 %v841_v11, %v841_v11  ;;  %v836_v25 = vsub.f32 %v324_v5, %v580_v7  ;;  %v1356_v29 = vadd.f32 %v1355_v15, %v1077_v9  ;;  %v1098_v30 = vmul.f32 %v842_v16, %v842_v16  ;;  %v578_v35 = vld [vmem:[%s3548_s26 + $0x378] sm:$0xff]  ;;  %v339_v40 = vld [vmem:[%s3541_s14 + $0x400] sm:$0xff]  ;;  %v340_v41 = vld [vmem:[%s3541_s14 + $0x408] sm:$0xff] }
  0x8b   : > { %v1380_v31 = vadd.f32 %v1096_v18, %v1095_v17  ;;  %v837_v32 = vsub.f32 %v325_v12, %v581_v14  ;;  %1363 = vadd.xlane.f32.xlu1 %v1362_v22  ;;  %v838_v36 = vsub.f32 %v326_v13, %v582_v19  ;;  %v1091_v37 = vmul.f32 %v835_v24, %v835_v24  ;;  %v595_v42 = vld [vmem:[%s3548_s26 + $0x400] sm:$0xff]  ;;  %v341_v47 = vld [vmem:[%s3541_s14 + $0x410] sm:$0xff]  ;;  %v342_v48 = vld [vmem:[%s3541_s14 + $0x418] sm:$0xff] }
  0x8c   : > { %v1092_v38 = vmul.f32 %v836_v25, %v836_v25  ;;  %v831_v39 = vsub.f32 %v319_v20, %v575_v21  ;;  %v1357_v43 = vadd.f32 %v1356_v29, %v1078_v10  ;;  %v832_v46 = vsub.f32 %v320_v26, %v576_v28  ;;  %v596_v49 = vld [vmem:[%s3548_s26 + $0x408] sm:$0xff]  ;;  %v597_v54 = vld [vmem:[%s3548_s26 + $0x410] sm:$0xff]  ;;  %v598_v55 = vld [vmem:[%s3548_s26 + $0x418] sm:$0xff] }
  0x8d   : > { %v1381_v44 = vadd.f32 %v1380_v31, %v1097_v23  ;;  %v1093_v45 = vmul.f32 %v837_v32, %v837_v32  ;;  %v1094_v50 = vmul.f32 %v838_v36, %v838_v36  ;;  %v833_v52 = vsub.f32 %v321_v27, %v577_v34  ;;  %v335_v56 = vld [vmem:[%s3541_s14 + $0x3e0] sm:$0xff]  ;;  %v336_v61 = vld [vmem:[%s3541_s14 + $0x3e8] sm:$0xff]  ;;  %v337_v4 = vld [vmem:[%s3541_s14 + $0x3f0] sm:$0xff] }
  0x8e   : > { %v1375_v51 = vadd.f32 %v1092_v38, %v1091_v37  ;;  %v834_v53 = vsub.f32 %v322_v33, %v578_v35  ;;  %1358 = vadd.xlane.f32.xlu0 %v1357_v43  ;;  %v1087_v58 = vmul.f32 %v831_v39, %v831_v39  ;;  %v1088_v59 = vmul.f32 %v832_v46, %v832_v46  ;;  %v591_v62 = vld [vmem:[%s3548_s26 + $0x3e0] sm:$0xff]  ;;  %v592_v63 = vld [vmem:[%s3548_s26 + $0x3e8] sm:$0xff]  ;;  %v593_v5 = vld [vmem:[%s3548_s26 + $0x3f0] sm:$0xff] }
  0x8f   : > { %v1382_v57 = vadd.f32 %v1381_v44, %v1098_v30  ;;  %v851_v60 = vsub.f32 %v339_v40, %v595_v42  ;;  %v1089_v1 = vmul.f32 %v833_v52, %v833_v52  ;;  %v852_v3 = vsub.f32 %v340_v41, %v596_v49  ;;  %v338_v10 = vld [vmem:[%s3541_s14 + $0x3f8] sm:$0xff]  ;;  %v331_v12 = vld [vmem:[%s3541_s14 + $0x3c0] sm:$0xff]  ;;  %v332_v17 = vld [vmem:[%s3541_s14 + $0x3c8] sm:$0xff] }
  0x90   : > { %v1376_v0 = vadd.f32 %v1375_v51, %v1093_v45  ;;  %v1090_v2 = vmul.f32 %v834_v53, %v834_v53  ;;  %v1370_v6 = vadd.f32 %v1088_v59, %v1087_v58  ;;  %v853_v7 = vsub.f32 %v341_v47, %v597_v54  ;;  %v594_v11 = vld [vmem:[%s3548_s26 + $0x3f8] sm:$0xff]  ;;  %v587_v18 = vld [vmem:[%s3548_s26 + $0x3c0] sm:$0xff]  ;;  %v588_v19 = vld [vmem:[%s3548_s26 + $0x3c8] sm:$0xff] }
  0x91   : > { %1383 = vadd.xlane.f32.xlu2 %v1382_v57  ;;  %v854_v8 = vsub.f32 %v342_v48, %v598_v55  ;;  %v1107_v9 = vmul.f32 %v851_v60, %v851_v60  ;;  %v1108_v14 = vmul.f32 %v852_v3, %v852_v3  ;;  %v847_v15 = vsub.f32 %v335_v56, %v591_v62  ;;  %v333_v24 = vld [vmem:[%s3541_s14 + $0x3d0] sm:$0xff]  ;;  %v334_v25 = vld [vmem:[%s3541_s14 + $0x3d8] sm:$0xff]  ;;  %v351_v32 = vld [vmem:[%s3541_s14 + $0x460] sm:$0xff] }
  0x92   : > { %v1377_v13 = vadd.f32 %v1376_v0, %v1094_v50  ;;  %v848_v16 = vsub.f32 %v336_v61, %v592_v63  ;;  %v1371_v20 = vadd.f32 %v1370_v6, %v1089_v1  ;;  %v1109_v21 = vmul.f32 %v853_v7, %v853_v7  ;;  %v589_v26 = vld [vmem:[%s3548_s26 + $0x3d0] sm:$0xff]  ;;  %v590_v31 = vld [vmem:[%s3548_s26 + $0x3d8] sm:$0xff]  ;;  %v607_v33 = vld [vmem:[%s3548_s26 + $0x460] sm:$0xff] }
  0x93   : > { %v1110_v22 = vmul.f32 %v854_v8, %v854_v8  ;;  %v849_v23 = vsub.f32 %v337_v4, %v593_v5  ;;  %v1395_v27 = vadd.f32 %v1108_v14, %v1107_v9  ;;  %v850_v28 = vsub.f32 %v338_v10, %v594_v11  ;;  %v352_v38 = vld [vmem:[%s3541_s14 + $0x468] sm:$0xff]  ;;  %v353_v39 = vld [vmem:[%s3541_s14 + $0x470] sm:$0xff]  ;;  %v354_v45 = vld [vmem:[%s3541_s14 + $0x478] sm:$0xff] }
  0x94   : > { %1378 = vadd.xlane.f32.xlu1 %v1377_v13  ;;  %v1103_v29 = vmul.f32 %v847_v15, %v847_v15  ;;  %v1104_v30 = vmul.f32 %v848_v16, %v848_v16  ;;  %v1372_v34 = vadd.f32 %v1371_v20, %v1090_v2  ;;  %v843_v36 = vsub.f32 %v331_v12, %v587_v18  ;;  %v608_v40 = vld [vmem:[%s3548_s26 + $0x468] sm:$0xff]  ;;  %v609_v46 = vld [vmem:[%s3548_s26 + $0x470] sm:$0xff]  ;;  %v610_v47 = vld [vmem:[%s3548_s26 + $0x478] sm:$0xff] }
  0x95   : > { %v1105_v35 = vmul.f32 %v849_v23, %v849_v23  ;;  %v844_v37 = vsub.f32 %v332_v17, %v588_v19  ;;  %v1396_v41 = vadd.f32 %v1395_v27, %v1109_v21  ;;  %v1106_v42 = vmul.f32 %v850_v28, %v850_v28  ;;  %v347_v52 = vld [vmem:[%s3541_s14 + $0x440] sm:$0xff]  ;;  %v348_v53 = vld [vmem:[%s3541_s14 + $0x448] sm:$0xff]  ;;  %v349_v59 = vld [vmem:[%s3541_s14 + $0x450] sm:$0xff] }
  0x96   : > { %v1390_v43 = vadd.f32 %v1104_v30, %v1103_v29  ;;  %v845_v44 = vsub.f32 %v333_v24, %v589_v26  ;;  %1373 = vadd.xlane.f32.xlu0 %v1372_v34  ;;  %v846_v48 = vsub.f32 %v334_v25, %v590_v31  ;;  %v1099_v49 = vmul.f32 %v843_v36, %v843_v36  ;;  %v603_v54 = vld [vmem:[%s3548_s26 + $0x440] sm:$0xff]  ;;  %v350_v60 = vld [vmem:[%s3541_s14 + $0x458] sm:$0xff]  ;;  %v604_v61 = vld [vmem:[%s3548_s26 + $0x448] sm:$0xff] }
  0x97   : > { %v1100_v50 = vmul.f32 %v844_v37, %v844_v37  ;;  %v863_v51 = vsub.f32 %v351_v32, %v607_v33  ;;  %v1397_v55 = vadd.f32 %v1396_v41, %v1110_v22  ;;  %v864_v58 = vsub.f32 %v352_v38, %v608_v40  ;;  %v605_v2 = vld [vmem:[%s3548_s26 + $0x450] sm:$0xff]  ;;  %v606_v3 = vld [vmem:[%s3548_s26 + $0x458] sm:$0xff]  ;;  %v343_v4 = vld [vmem:[%s3541_s14 + $0x420] sm:$0xff] }
  0x98   : > { %v1391_v56 = vadd.f32 %v1390_v43, %v1105_v35  ;;  %v1101_v57 = vmul.f32 %v845_v44, %v845_v44  ;;  %v1102_v62 = vmul.f32 %v846_v48, %v846_v48  ;;  %v865_v0 = vsub.f32 %v353_v39, %v609_v46  ;;  %v344_v9 = vld [vmem:[%s3541_s14 + $0x428] sm:$0xff]  ;;  %v599_v10 = vld [vmem:[%s3548_s26 + $0x420] sm:$0xff]  ;;  %v345_v16 = vld [vmem:[%s3541_s14 + $0x430] sm:$0xff] }
  0x99   : > { %v1385_v63 = vadd.f32 %v1100_v50, %v1099_v49  ;;  %v866_v1 = vsub.f32 %v354_v45, %v610_v47  ;;  %1398 = vadd.xlane.f32.xlu2 %v1397_v55  ;;  %v1119_v6 = vmul.f32 %v863_v51, %v863_v51  ;;  %v1120_v7 = vmul.f32 %v864_v58, %v864_v58  ;;  %v600_v11 = vld [vmem:[%s3548_s26 + $0x428] sm:$0xff]  ;;  %v601_v17 = vld [vmem:[%s3548_s26 + $0x430] sm:$0xff]  ;;  %v346_v22 = vld [vmem:[%s3541_s14 + $0x438] sm:$0xff] }
  0x9a   : > { %v1392_v5 = vadd.f32 %v1391_v56, %v1106_v42  ;;  %v859_v8 = vsub.f32 %v347_v52, %v603_v54  ;;  %v1121_v13 = vmul.f32 %v865_v0, %v865_v0  ;;  %v860_v15 = vsub.f32 %v348_v53, %v604_v61  ;;  %v602_v23 = vld [vmem:[%s3548_s26 + $0x438] sm:$0xff]  ;;  %v363_v24 = vld [vmem:[%s3541_s14 + $0x4c0] sm:$0xff]  ;;  %v364_v29 = vld [vmem:[%s3541_s14 + $0x4c8] sm:$0xff] }
  0x9b   : > { %v1386_v12 = vadd.f32 %v1385_v63, %v1101_v57  ;;  %v1122_v14 = vmul.f32 %v866_v1, %v866_v1  ;;  %v1410_v18 = vadd.f32 %v1120_v7, %v1119_v6  ;;  %v861_v19 = vsub.f32 %v349_v59, %v605_v2  ;;  %v619_v30 = vld [vmem:[%s3548_s26 + $0x4c0] sm:$0xff]  ;;  %v620_v31 = vld [vmem:[%s3548_s26 + $0x4c8] sm:$0xff]  ;;  %v365_v36 = vld [vmem:[%s3541_s14 + $0x4d0] sm:$0xff] }
  0x9c   : > { %1393 = vadd.xlane.f32.xlu1 %v1392_v5  ;;  %v862_v20 = vsub.f32 %v350_v60, %v606_v3  ;;  %v1115_v21 = vmul.f32 %v859_v8, %v859_v8  ;;  %v1116_v26 = vmul.f32 %v860_v15, %v860_v15  ;;  %v855_v27 = vsub.f32 %v343_v4, %v599_v10  ;;  %v366_v37 = vld [vmem:[%s3541_s14 + $0x4d8] sm:$0xff]  ;;  %v621_v38 = vld [vmem:[%s3548_s26 + $0x4d0] sm:$0xff]  ;;  %v359_v44 = vld [vmem:[%s3541_s14 + $0x4a0] sm:$0xff] }
  0x9d   : > { %v1387_v25 = vadd.f32 %v1386_v12, %v1102_v62  ;;  %v856_v28 = vsub.f32 %v344_v9, %v600_v11  ;;  %v1411_v32 = vadd.f32 %v1410_v18, %v1121_v13  ;;  %v1117_v33 = vmul.f32 %v861_v19, %v861_v19  ;;  %v622_v43 = vld [vmem:[%s3548_s26 + $0x4d8] sm:$0xff]  ;;  %v615_v45 = vld [vmem:[%s3548_s26 + $0x4a0] sm:$0xff]  ;;  %v360_v50 = vld [vmem:[%s3541_s14 + $0x4a8] sm:$0xff] }
  0x9e   : > { %v1118_v34 = vmul.f32 %v862_v20, %v862_v20  ;;  %v857_v35 = vsub.f32 %v345_v16, %v601_v17  ;;  %v1405_v39 = vadd.f32 %v1116_v26, %v1115_v21  ;;  %v858_v40 = vsub.f32 %v346_v22, %v602_v23  ;;  %v361_v51 = vld [vmem:[%s3541_s14 + $0x4b0] sm:$0xff]  ;;  %v616_v52 = vld [vmem:[%s3548_s26 + $0x4a8] sm:$0xff]  ;;  %v362_v57 = vld [vmem:[%s3541_s14 + $0x4b8] sm:$0xff] }
  0x9f   : > { %1388 = vadd.xlane.f32.xlu0 %v1387_v25  ;;  %v1111_v41 = vmul.f32 %v855_v27, %v855_v27  ;;  %v1112_v42 = vmul.f32 %v856_v28, %v856_v28  ;;  %v1412_v46 = vadd.f32 %v1411_v32, %v1122_v14  ;;  %v875_v48 = vsub.f32 %v363_v24, %v619_v30  ;;  %v617_v58 = vld [vmem:[%s3548_s26 + $0x4b0] sm:$0xff]  ;;  %v618_v59 = vld [vmem:[%s3548_s26 + $0x4b8] sm:$0xff]  ;;  %v355_v0 = vld [vmem:[%s3541_s14 + $0x480] sm:$0xff] }
  0xa0   : > { %v1113_v47 = vmul.f32 %v857_v35, %v857_v35  ;;  %v876_v49 = vsub.f32 %v364_v29, %v620_v31  ;;  %v1406_v53 = vadd.f32 %v1405_v39, %v1117_v33  ;;  %v1114_v54 = vmul.f32 %v858_v40, %v858_v40  ;;  %v356_v1 = vld [vmem:[%s3541_s14 + $0x488] sm:$0xff]  ;;  %v611_v2 = vld [vmem:[%s3548_s26 + $0x480] sm:$0xff]  ;;  %v357_v7 = vld [vmem:[%s3541_s14 + $0x490] sm:$0xff] }
  0xa1   : > { %v1400_v55 = vadd.f32 %v1112_v42, %v1111_v41  ;;  %v877_v56 = vsub.f32 %v365_v36, %v621_v38  ;;  %1413 = vadd.xlane.f32.xlu2 %v1412_v46  ;;  %v878_v60 = vsub.f32 %v366_v37, %v622_v43  ;;  %v1131_v61 = vmul.f32 %v875_v48, %v875_v48  ;;  %v358_v8 = vld [vmem:[%s3541_s14 + $0x498] sm:$0xff]  ;;  %v612_v9 = vld [vmem:[%s3548_s26 + $0x488] sm:$0xff]  ;;  %v613_v14 = vld [vmem:[%s3548_s26 + $0x490] sm:$0xff] }
  0xa2   : > { %v1132_v62 = vmul.f32 %v876_v49, %v876_v49  ;;  %v871_v63 = vsub.f32 %v359_v44, %v615_v45  ;;  %v1407_v3 = vadd.f32 %v1406_v53, %v1118_v34  ;;  %v872_v6 = vsub.f32 %v360_v50, %v616_v52  ;;  %v614_v15 = vld [vmem:[%s3548_s26 + $0x498] sm:$0xff]  ;;  %v375_v16 = vld [vmem:[%s3541_s14 + $0x520] sm:$0xff]  ;;  %v376_v21 = vld [vmem:[%s3541_s14 + $0x528] sm:$0xff] }
  0xa3   : > { %v1401_v4 = vadd.f32 %v1400_v55, %v1113_v47  ;;  %v1133_v5 = vmul.f32 %v877_v56, %v877_v56  ;;  %v1134_v10 = vmul.f32 %v878_v60, %v878_v60  ;;  %v873_v12 = vsub.f32 %v361_v51, %v617_v58  ;;  %v631_v22 = vld [vmem:[%s3548_s26 + $0x520] sm:$0xff]  ;;  %v632_v23 = vld [vmem:[%s3548_s26 + $0x528] sm:$0xff]  ;;  %v377_v28 = vld [vmem:[%s3541_s14 + $0x530] sm:$0xff] }
  0xa4   : > { %v1425_v11 = vadd.f32 %v1132_v62, %v1131_v61  ;;  %v874_v13 = vsub.f32 %v362_v57, %v618_v59  ;;  %1408 = vadd.xlane.f32.xlu1 %v1407_v3  ;;  %v1127_v18 = vmul.f32 %v871_v63, %v871_v63  ;;  %v1128_v19 = vmul.f32 %v872_v6, %v872_v6  ;;  %v633_v29 = vld [vmem:[%s3548_s26 + $0x530] sm:$0xff]  ;;  %v378_v34 = vld [vmem:[%s3541_s14 + $0x538] sm:$0xff]  ;;  %v371_v36 = vld [vmem:[%s3541_s14 + $0x500] sm:$0xff] }
  0xa5   : > { %v1402_v17 = vadd.f32 %v1401_v4, %v1114_v54  ;;  %v867_v20 = vsub.f32 %v355_v0, %v611_v2  ;;  %v1129_v25 = vmul.f32 %v873_v12, %v873_v12  ;;  %v868_v27 = vsub.f32 %v356_v1, %v612_v9  ;;  %v634_v35 = vld [vmem:[%s3548_s26 + $0x538] sm:$0xff]  ;;  %v372_v41 = vld [vmem:[%s3541_s14 + $0x508] sm:$0xff]  ;;  %v627_v42 = vld [vmem:[%s3548_s26 + $0x500] sm:$0xff] }
  0xa6   : > { %v1426_v24 = vadd.f32 %v1425_v11, %v1133_v5  ;;  %v1130_v26 = vmul.f32 %v874_v13, %v874_v13  ;;  %v1420_v30 = vadd.f32 %v1128_v19, %v1127_v18  ;;  %v869_v31 = vsub.f32 %v357_v7, %v613_v14  ;;  %v628_v43 = vld [vmem:[%s3548_s26 + $0x508] sm:$0xff]  ;;  %v373_v48 = vld [vmem:[%s3541_s14 + $0x510] sm:$0xff]  ;;  %v374_v49 = vld [vmem:[%s3541_s14 + $0x518] sm:$0xff] }
  0xa7   : > { %1403 = vadd.xlane.f32.xlu0 %v1402_v17  ;;  %v870_v32 = vsub.f32 %v358_v8, %v614_v15  ;;  %v1123_v33 = vmul.f32 %v867_v20, %v867_v20  ;;  %v1124_v38 = vmul.f32 %v868_v27, %v868_v27  ;;  %v887_v39 = vsub.f32 %v375_v16, %v631_v22  ;;  %v629_v50 = vld [vmem:[%s3548_s26 + $0x510] sm:$0xff]  ;;  %v630_v55 = vld [vmem:[%s3548_s26 + $0x518] sm:$0xff]  ;;  %v367_v56 = vld [vmem:[%s3541_s14 + $0x4e0] sm:$0xff] }
  0xa8   : > { %v1427_v37 = vadd.f32 %v1426_v24, %v1134_v10  ;;  %v888_v40 = vsub.f32 %v376_v21, %v632_v23  ;;  %v1421_v44 = vadd.f32 %v1420_v30, %v1129_v25  ;;  %v1125_v45 = vmul.f32 %v869_v31, %v869_v31  ;;  %v623_v57 = vld [vmem:[%s3548_s26 + $0x4e0] sm:$0xff]  ;;  %v368_v62 = vld [vmem:[%s3541_s14 + $0x4e8] sm:$0xff]  ;;  %v369_v63 = vld [vmem:[%s3541_s14 + $0x4f0] sm:$0xff] }
  0xa9   : > { %v1126_v46 = vmul.f32 %v870_v32, %v870_v32  ;;  %v889_v47 = vsub.f32 %v377_v28, %v633_v29  ;;  %v1415_v51 = vadd.f32 %v1124_v38, %v1123_v33  ;;  %v890_v52 = vsub.f32 %v378_v34, %v634_v35  ;;  %v624_v0 = vld [vmem:[%s3548_s26 + $0x4e8] sm:$0xff]  ;;  %v370_v5 = vld [vmem:[%s3541_s14 + $0x4f8] sm:$0xff]  ;;  %v625_v6 = vld [vmem:[%s3548_s26 + $0x4f0] sm:$0xff] }
  0xaa   : > { %1428 = vadd.xlane.f32.xlu2 %v1427_v37  ;;  %v1143_v53 = vmul.f32 %v887_v39, %v887_v39  ;;  %v1144_v54 = vmul.f32 %v888_v40, %v888_v40  ;;  %v1422_v58 = vadd.f32 %v1421_v44, %v1130_v26  ;;  %v883_v60 = vsub.f32 %v371_v36, %v627_v42  ;;  %v626_v7 = vld [vmem:[%s3548_s26 + $0x4f8] sm:$0xff]  ;;  %v387_v12 = vld [vmem:[%s3541_s14 + $0x580] sm:$0xff]  ;;  %v388_v13 = vld [vmem:[%s3541_s14 + $0x588] sm:$0xff] }
  0xab   : > { %v1145_v59 = vmul.f32 %v889_v47, %v889_v47  ;;  %v884_v61 = vsub.f32 %v372_v41, %v628_v43  ;;  %v1416_v1 = vadd.f32 %v1415_v51, %v1125_v45  ;;  %v1146_v2 = vmul.f32 %v890_v52, %v890_v52  ;;  %v643_v14 = vld [vmem:[%s3548_s26 + $0x580] sm:$0xff]  ;;  %v389_v19 = vld [vmem:[%s3541_s14 + $0x590] sm:$0xff]  ;;  %v390_v20 = vld [vmem:[%s3541_s14 + $0x598] sm:$0xff] }
  0xac   : > { %v1440_v3 = vadd.f32 %v1144_v54, %v1143_v53  ;;  %v885_v4 = vsub.f32 %v373_v48, %v629_v50  ;;  %1423 = vadd.xlane.f32.xlu1 %v1422_v58  ;;  %v886_v8 = vsub.f32 %v374_v49, %v630_v55  ;;  %v1139_v9 = vmul.f32 %v883_v60, %v883_v60  ;;  %v644_v21 = vld [vmem:[%s3548_s26 + $0x588] sm:$0xff]  ;;  %v645_v26 = vld [vmem:[%s3548_s26 + $0x590] sm:$0xff]  ;;  %v646_v27 = vld [vmem:[%s3548_s26 + $0x598] sm:$0xff] }
  0xad   : > { %v1140_v10 = vmul.f32 %v884_v61, %v884_v61  ;;  %v879_v11 = vsub.f32 %v367_v56, %v623_v57  ;;  %v1417_v15 = vadd.f32 %v1416_v1, %v1126_v46  ;;  %v880_v18 = vsub.f32 %v368_v62, %v624_v0  ;;  %v383_v28 = vld [vmem:[%s3541_s14 + $0x560] sm:$0xff]  ;;  %v384_v33 = vld [vmem:[%s3541_s14 + $0x568] sm:$0xff]  ;;  %v385_v40 = vld [vmem:[%s3541_s14 + $0x570] sm:$0xff] }
  0xae   : > { %v1441_v16 = vadd.f32 %v1440_v3, %v1145_v59  ;;  %v1141_v17 = vmul.f32 %v885_v4, %v885_v4  ;;  %v1142_v22 = vmul.f32 %v886_v8, %v886_v8  ;;  %v881_v24 = vsub.f32 %v369_v63, %v625_v6  ;;  %v639_v34 = vld [vmem:[%s3548_s26 + $0x560] sm:$0xff]  ;;  %v640_v35 = vld [vmem:[%s3548_s26 + $0x568] sm:$0xff]  ;;  %v641_v41 = vld [vmem:[%s3548_s26 + $0x570] sm:$0xff] }
  0xaf   : > { %v1435_v23 = vadd.f32 %v1140_v10, %v1139_v9  ;;  %v882_v25 = vsub.f32 %v370_v5, %v626_v7  ;;  %1418 = vadd.xlane.f32.xlu0 %v1417_v15  ;;  %v1135_v30 = vmul.f32 %v879_v11, %v879_v11  ;;  %v1136_v31 = vmul.f32 %v880_v18, %v880_v18  ;;  %v386_v46 = vld [vmem:[%s3541_s14 + $0x578] sm:$0xff]  ;;  %v379_v48 = vld [vmem:[%s3541_s14 + $0x540] sm:$0xff]  ;;  %v380_v53 = vld [vmem:[%s3541_s14 + $0x548] sm:$0xff] }
  0xb0   : > { %v1442_v29 = vadd.f32 %v1441_v16, %v1146_v2  ;;  %v899_v32 = vsub.f32 %v387_v12, %v643_v14  ;;  %v1137_v37 = vmul.f32 %v881_v24, %v881_v24  ;;  %v900_v39 = vsub.f32 %v388_v13, %v644_v21  ;;  %v642_v47 = vld [vmem:[%s3548_s26 + $0x578] sm:$0xff]  ;;  %v635_v54 = vld [vmem:[%s3548_s26 + $0x540] sm:$0xff]  ;;  %v636_v55 = vld [vmem:[%s3548_s26 + $0x548] sm:$0xff] }
  0xb1   : > { %v1436_v36 = vadd.f32 %v1435_v23, %v1141_v17  ;;  %v1138_v38 = vmul.f32 %v882_v25, %v882_v25  ;;  %v1430_v42 = vadd.f32 %v1136_v31, %v1135_v30  ;;  %v901_v43 = vsub.f32 %v389_v19, %v645_v26  ;;  %v381_v60 = vld [vmem:[%s3541_s14 + $0x550] sm:$0xff]  ;;  %v382_v61 = vld [vmem:[%s3541_s14 + $0x558] sm:$0xff]  ;;  %v399_v4 = vld [vmem:[%s3541_s14 + $0x5e0] sm:$0xff] }
  0xb2   : > { %1443 = vadd.xlane.f32.xlu2 %v1442_v29  ;;  %v902_v44 = vsub.f32 %v390_v20, %v646_v27  ;;  %v1155_v45 = vmul.f32 %v899_v32, %v899_v32  ;;  %v1156_v50 = vmul.f32 %v900_v39, %v900_v39  ;;  %v895_v51 = vsub.f32 %v383_v28, %v639_v34  ;;  %v637_v62 = vld [vmem:[%s3548_s26 + $0x550] sm:$0xff]  ;;  %v638_v3 = vld [vmem:[%s3548_s26 + $0x558] sm:$0xff]  ;;  %v655_v5 = vld [vmem:[%s3548_s26 + $0x5e0] sm:$0xff] }
  0xb3   : > { %v1437_v49 = vadd.f32 %v1436_v36, %v1142_v22  ;;  %v896_v52 = vsub.f32 %v384_v33, %v640_v35  ;;  %v1431_v56 = vadd.f32 %v1430_v42, %v1137_v37  ;;  %v1157_v57 = vmul.f32 %v901_v43, %v901_v43  ;;  %v400_v10 = vld [vmem:[%s3541_s14 + $0x5e8] sm:$0xff]  ;;  %v401_v16 = vld [vmem:[%s3541_s14 + $0x5f0] sm:$0xff]  ;;  %v402_v21 = vld [vmem:[%s3541_s14 + $0x5f8] sm:$0xff] }
  0xb4   : > { %v1158_v58 = vmul.f32 %v902_v44, %v902_v44  ;;  %v897_v59 = vsub.f32 %v385_v40, %v641_v41  ;;  %v1455_v63 = vadd.f32 %v1156_v50, %v1155_v45  ;;  %v898_v0 = vsub.f32 %v386_v46, %v642_v47  ;;  %v656_v11 = vld [vmem:[%s3548_s26 + $0x5e8] sm:$0xff]  ;;  %v657_v17 = vld [vmem:[%s3548_s26 + $0x5f0] sm:$0xff]  ;;  %v658_v22 = vld [vmem:[%s3548_s26 + $0x5f8] sm:$0xff] }
  0xb5   : > { %1438 = vadd.xlane.f32.xlu1 %v1437_v49  ;;  %v1151_v1 = vmul.f32 %v895_v51, %v895_v51  ;;  %v1152_v2 = vmul.f32 %v896_v52, %v896_v52  ;;  %v1432_v6 = vadd.f32 %v1431_v56, %v1138_v38  ;;  %v891_v8 = vsub.f32 %v379_v48, %v635_v54  ;;  %v395_v28 = vld [vmem:[%s3541_s14 + $0x5c0] sm:$0xff]  ;;  %v396_v32 = vld [vmem:[%s3541_s14 + $0x5c8] sm:$0xff]  ;;  %v397_v33 = vld [vmem:[%s3541_s14 + $0x5d0] sm:$0xff] }
  0xb6   : > { %v1153_v7 = vmul.f32 %v897_v59, %v897_v59  ;;  %v892_v9 = vsub.f32 %v380_v53, %v636_v55  ;;  %v1456_v12 = vadd.f32 %v1455_v63, %v1157_v57  ;;  %v1154_v13 = vmul.f32 %v898_v0, %v898_v0  ;;  %v651_v34 = vld [vmem:[%s3548_s26 + $0x5c0] sm:$0xff]  ;;  %v398_v37 = vld [vmem:[%s3541_s14 + $0x5d8] sm:$0xff]  ;;  %v652_v38 = vld [vmem:[%s3548_s26 + $0x5c8] sm:$0xff] }
  0xb7   : > { %v1450_v14 = vadd.f32 %v1152_v2, %v1151_v1  ;;  %v893_v15 = vsub.f32 %v381_v60, %v637_v62  ;;  %1433 = vadd.xlane.f32.xlu0 %v1432_v6  ;;  %v894_v18 = vsub.f32 %v382_v61, %v638_v3  ;;  %v1147_v19 = vmul.f32 %v891_v8, %v891_v8  ;;  %v653_v39 = vld [vmem:[%s3548_s26 + $0x5d0] sm:$0xff]  ;;  %v654_v40 = vld [vmem:[%s3548_s26 + $0x5d8] sm:$0xff]  ;;  %v391_v42 = vld [vmem:[%s3541_s14 + $0x5a0] sm:$0xff] }
  0xb8   : > { %v1148_v20 = vmul.f32 %v892_v9, %v892_v9  ;;  %v911_v23 = vsub.f32 %v399_v4, %v655_v5  ;;  %v1457_v24 = vadd.f32 %v1456_v12, %v1158_v58  ;;  %v912_v27 = vsub.f32 %v400_v10, %v656_v11  ;;  %v392_v43 = vld [vmem:[%s3541_s14 + $0x5a8] sm:$0xff]  ;;  %v393_v44 = vld [vmem:[%s3541_s14 + $0x5b0] sm:$0xff]  ;;  %v647_v47 = vld [vmem:[%s3548_s26 + $0x5a0] sm:$0xff] }
  0xb9   : > { %v1451_v25 = vadd.f32 %v1450_v14, %v1153_v7  ;;  %v1149_v26 = vmul.f32 %v893_v15, %v893_v15  ;;  %v1150_v29 = vmul.f32 %v894_v18, %v894_v18  ;;  %v913_v31 = vsub.f32 %v401_v16, %v657_v17  ;;  %v648_v48 = vld [vmem:[%s3548_s26 + $0x5a8] sm:$0xff]  ;;  %v649_v49 = vld [vmem:[%s3548_s26 + $0x5b0] sm:$0xff]  ;;  %v394_v2 = vld [vmem:[%s3541_s14 + $0x5b8] sm:$0xff] }
  0xba   : > { %v1445_v30 = vadd.f32 %v1148_v20, %v1147_v19  ;;  %1458 = vadd.xlane.f32.xlu2 %v1457_v24  ;;  %v914_v36 = vsub.f32 %v402_v21, %v658_v22  ;;  %v1167_v45 = vmul.f32 %v911_v23, %v911_v23  ;;  %v1168_v46 = vmul.f32 %v912_v27, %v912_v27  ;;  %v650_v3 = vld [vmem:[%s3548_s26 + $0x5b8] sm:$0xff]  ;;  %v411_v14 = vld [vmem:[%s3541_s14 + $0x640] sm:$0xff]  ;;  %v412_v19 = vld [vmem:[%s3541_s14 + $0x648] sm:$0xff] }
  0xbb   : > { %v1452_v35 = vadd.f32 %v1451_v25, %v1154_v13  ;;  %v1169_v51 = vmul.f32 %v913_v31, %v913_v31  ;;  %v907_v52 = vsub.f32 %v395_v28, %v651_v34  ;;  %v908_v55 = vsub.f32 %v396_v32, %v652_v38  ;;  %v667_v20 = vld [vmem:[%s3548_s26 + $0x640] sm:$0xff]  ;;  %v668_v21 = vld [vmem:[%s3548_s26 + $0x648] sm:$0xff]  ;;  %v414_v27 = vld [vmem:[%s3541_s14 + $0x658] sm:$0xff] }
  0xbc   : > { %v1446_v41 = vadd.f32 %v1445_v30, %v1149_v26  ;;  %v1170_v53 = vmul.f32 %v914_v36, %v914_v36  ;;  %v1470_v54 = vadd.f32 %v1168_v46, %v1167_v45  ;;  %v909_v56 = vsub.f32 %v397_v33, %v653_v39  ;;  %v413_v26 = vld [vmem:[%s3541_s14 + $0x650] sm:$0xff]  ;;  %v670_v31 = vld [vmem:[%s3548_s26 + $0x658] sm:$0xff]  ;;  %v407_v34 = vld [vmem:[%s3541_s14 + $0x620] sm:$0xff] }
  0xbd   : > { %1453 = vadd.xlane.f32.xlu1 %v1452_v35  ;;  %v910_v58 = vsub.f32 %v398_v37, %v654_v40  ;;  %v903_v59 = vsub.f32 %v391_v42, %v647_v47  ;;  %v904_v60 = vsub.f32 %v392_v43, %v648_v48  ;;  %v905_v61 = vsub.f32 %v393_v44, %v649_v49  ;;  %v669_v28 = vld [vmem:[%s3548_s26 + $0x650] sm:$0xff]  ;;  %v408_v35 = vld [vmem:[%s3541_s14 + $0x628] sm:$0xff]  ;;  %v663_v38 = vld [vmem:[%s3548_s26 + $0x620] sm:$0xff] }
  0xbe   : > { %v1447_v50 = vadd.f32 %v1446_v41, %v1150_v29  ;;  %v1163_v1 = vmul.f32 %v907_v52, %v907_v52  ;;  %v1471_v7 = vadd.f32 %v1470_v54, %v1169_v51  ;;  %v1164_v8 = vmul.f32 %v908_v55, %v908_v55  ;;  %v409_v37 = vld [vmem:[%s3541_s14 + $0x630] sm:$0xff]  ;;  %v664_v39 = vld [vmem:[%s3548_s26 + $0x628] sm:$0xff]  ;;  %v410_v42 = vld [vmem:[%s3541_s14 + $0x638] sm:$0xff] }
  0xbf   : > { %v1239_v57 = vpop.xlane.xlu0 %1238  ;;  %v1165_v9 = vmul.f32 %v909_v56, %v909_v56  ;;  %v906_v10 = vsub.f32 %v394_v2, %v650_v3  ;;  %v1159_v11 = vmul.f32 %v903_v59, %v903_v59  ;;  %v1160_v12 = vmul.f32 %v904_v60, %v904_v60  ;;  %v665_v43 = vld [vmem:[%s3548_s26 + $0x630] sm:$0xff]  ;;  %v666_v44 = vld [vmem:[%s3548_s26 + $0x638] sm:$0xff]  ;;  %v403_v49 = vld [vmem:[%s3541_s14 + $0x600] sm:$0xff] }
  0xc0   : > { %1448 = vadd.xlane.f32.xlu0 %v1447_v50  ;;  %v1619_v62 = vperm.slane %v1239_v57, 0  ;;  %v1620_v63 = vperm.slane %v1239_v57, 1  ;;  %v1621_v0 = vperm.slane %v1239_v57, 2  ;;  %v1622_v4 = vperm.slane %v1239_v57, 3  ;;  %v404_v50 = vld [vmem:[%s3541_s14 + $0x608] sm:$0xff]  ;;  %v659_v51 = vld [vmem:[%s3548_s26 + $0x600] sm:$0xff] }
  0xc1   : > { %v1623_v5 = vperm.slane %v1239_v57, 4  ;;  %v1624_v6 = vperm.slane %v1239_v57, 5  ;;  %v1161_v13 = vmul.f32 %v905_v61, %v905_v61  ;;  %v1625_v15 = vperm.slane %v1239_v57, 6  ;;  %v405_v56 = vld [vmem:[%s3541_s14 + $0x610] sm:$0xff] }
  0xc2   : > { %2131 = vst [vmem:[#allocation1] ss:$9 sm:$0xff] %v1619_v62  ;;  %v1472_v16 = vadd.f32 %v1471_v7, %v1170_v53  ;;  %v1166_v17 = vmul.f32 %v910_v58, %v910_v58  ;;  %v1465_v18 = vadd.f32 %v1164_v8, %v1163_v1  ;;  %v1626_v22 = vperm.slane %v1239_v57, 7  ;;  %v660_v57 = vld [vmem:[%s3548_s26 + $0x608] sm:$0xff]  ;;  %v661_v58 = vld [vmem:[%s3548_s26 + $0x610] sm:$0xff] }
  0xc3   : > { %2133 = vst [vmem:[#allocation1 + $0x1] ss:$9 sm:$0xff] %v1620_v63  ;;  %v1162_v23 = vmul.f32 %v906_v10, %v906_v10  ;;  %v1460_v24 = vadd.f32 %v1160_v12, %v1159_v11  ;;  %v923_v32 = vsub.f32 %v411_v14, %v667_v20  ;;  %v924_v33 = vsub.f32 %v412_v19, %v668_v21  ;;  %v406_v63 = vld [vmem:[%s3541_s14 + $0x618] sm:$0xff]  ;;  %v423_v20 = vld [vmem:[%s3541_s14 + $0x6a0] sm:$0xff]  ;;  %v424_v21 = vld [vmem:[%s3541_s14 + $0x6a8] sm:$0xff] }
  0xc4   : > { %2135 = vst [vmem:[#allocation1 + $0x2] ss:$9 sm:$0xff] %v1621_v0  ;;  %1473 = vadd.xlane.f32.xlu2 %v1472_v16  ;;  %v1466_v25 = vadd.f32 %v1465_v18, %v1165_v9  ;;  %v925_v47 = vsub.f32 %v413_v26, %v669_v28  ;;  %v926_v48 = vsub.f32 %v414_v27, %v670_v31  ;;  %v662_v0 = vld [vmem:[%s3548_s26 + $0x618] sm:$0xff]  ;;  %v680_v28 = vld [vmem:[%s3548_s26 + $0x6a8] sm:$0xff] }
  0xc5   : > { %2137 = vst [vmem:[#allocation1 + $0x3] ss:$9 sm:$0xff] %v1622_v4  ;;  %v1461_v29 = vadd.f32 %v1460_v24, %v1161_v13  ;;  %v1179_v52 = vmul.f32 %v923_v32, %v923_v32  ;;  %v1180_v53 = vmul.f32 %v924_v33, %v924_v33  ;;  %v919_v54 = vsub.f32 %v407_v34, %v663_v38  ;;  %v426_v27 = vld [vmem:[%s3541_s14 + $0x6b8] sm:$0xff]  ;;  %v419_v34 = vld [vmem:[%s3541_s14 + $0x680] sm:$0xff] }
  0xc6   : > { %2139 = vst [vmem:[#allocation1 + $0x4] ss:$9 sm:$0xff] %v1623_v5  ;;  %v1467_v36 = vadd.f32 %v1466_v25, %v1166_v17  ;;  %v920_v55 = vsub.f32 %v408_v35, %v664_v39  ;;  %v1181_v59 = vmul.f32 %v925_v47, %v925_v47  ;;  %v1182_v60 = vmul.f32 %v926_v48, %v926_v48  ;;  %v682_v31 = vld [vmem:[%s3548_s26 + $0x6b8] sm:$0xff]  ;;  %v420_v35 = vld [vmem:[%s3541_s14 + $0x688] sm:$0xff]  ;;  %v675_v39 = vld [vmem:[%s3548_s26 + $0x680] sm:$0xff] }
  0xc7   : > { %2141 = vst [vmem:[#allocation1 + $0x5] ss:$9 sm:$0xff] %v1624_v6  ;;  %v3945_v30 = vpop.xlane.xlu0 %1243  ;;  %v1462_v40 = vadd.f32 %v1461_v29, %v1162_v23  ;;  %v921_v61 = vsub.f32 %v409_v37, %v665_v43  ;;  %v922_v62 = vsub.f32 %v410_v42, %v666_v44  ;;  %v1485_v1 = vadd.f32 %v1180_v53, %v1179_v52  ;;  %v679_v23 = vld [vmem:[%s3548_s26 + $0x6a0] sm:$0xff]  ;;  %v681_v29 = vld [vmem:[%s3548_s26 + $0x6b0] sm:$0xff]  ;;  %v422_v42 = vld [vmem:[%s3541_s14 + $0x698] sm:$0xff] }
  0xc8   : > { %2143 = vst [vmem:[#allocation1 + $0x6] ss:$9 sm:$0xff] %v1625_v15  ;;  %v1627_v41 = vperm.slane %v3945_v30, 0  ;;  %1468 = vadd.xlane.f32.xlu1 %v1467_v36  ;;  %v1628_v45 = vperm.slane %v3945_v30, 1  ;;  %v1629_v46 = vperm.slane %v3945_v30, 2  ;;  %v1175_v2 = vmul.f32 %v919_v54, %v919_v54  ;;  %v421_v36 = vld [vmem:[%s3541_s14 + $0x690] sm:$0xff] }
  0xc9   : > { %2145 = vst [vmem:[#allocation1 + $0x7] ss:$9 sm:$0xff] %v1626_v22  ;;  %1463 = vadd.xlane.f32.xlu0 %v1462_v40  ;;  %v1176_v3 = vmul.f32 %v920_v55, %v920_v55  ;;  %v915_v4 = vsub.f32 %v403_v49, %v659_v51  ;;  %v1177_v5 = vmul.f32 %v921_v61, %v921_v61  ;;  %v1630_v14 = vperm.slane %v3945_v30, 3  ;;  %v425_v22 = vld [vmem:[%s3541_s14 + $0x6b0] sm:$0xff]  ;;  %v676_v40 = vld [vmem:[%s3548_s26 + $0x688] sm:$0xff]  ;;  %v678_v47 = vld [vmem:[%s3548_s26 + $0x698] sm:$0xff] }
  0xca   : > { %v1178_v6 = vmul.f32 %v922_v62, %v922_v62  ;;  %v916_v7 = vsub.f32 %v404_v50, %v660_v57  ;;  %v917_v8 = vsub.f32 %v405_v56, %v661_v58  ;;  %v1486_v9 = vadd.f32 %v1485_v1, %v1181_v59  ;;  %v416_v48 = vld [vmem:[%s3541_s14 + $0x668] sm:$0xff]  ;;  %v417_v53 = vld [vmem:[%s3541_s14 + $0x670] sm:$0xff]  ;;  %v671_v54 = vld [vmem:[%s3548_s26 + $0x660] sm:$0xff]  ;;  %v3998_v62 = vpop.xlane.xlu1 %1248 }
  0xcb   : > { %v1480_v10 = vadd.f32 %v1176_v3, %v1175_v2  ;;  %v918_v11 = vsub.f32 %v406_v63, %v662_v0  ;;  %v1171_v12 = vmul.f32 %v915_v4, %v915_v4  ;;  %v1631_v17 = vperm.slane %v3945_v30, 4  ;;  %v672_v55 = vld [vmem:[%s3548_s26 + $0x668] sm:$0xff]  ;;  %v418_v59 = vld [vmem:[%s3541_s14 + $0x678] sm:$0xff] }
  0xcc   : > { %v1172_v15 = vmul.f32 %v916_v7, %v916_v7  ;;  %v1173_v16 = vmul.f32 %v917_v8, %v917_v8  ;;  %v1487_v18 = vadd.f32 %v1486_v9, %v1182_v60  ;;  %v1632_v24 = vperm.slane %v3945_v30, 5  ;;  %v673_v60 = vld [vmem:[%s3548_s26 + $0x670] sm:$0xff]  ;;  %v674_v61 = vld [vmem:[%s3548_s26 + $0x678] sm:$0xff] }
  0xcd   : > { %v1481_v19 = vadd.f32 %v1480_v10, %v1177_v5  ;;  %v1174_v25 = vmul.f32 %v918_v11, %v918_v11  ;;  %v1633_v32 = vperm.slane %v3945_v30, 6  ;;  %v1634_v37 = vperm.slane %v3945_v30, 7  ;;  %v415_v30 = vld [vmem:[%s3541_s14 + $0x660] sm:$0xff] }
  0xce   : > { %v1475_v26 = vadd.f32 %v1172_v15, %v1171_v12  ;;  %1488 = vadd.xlane.f32.xlu2 %v1487_v18  ;;  %v935_v44 = vsub.f32 %v423_v20, %v679_v23  ;;  %v938_v49 = vsub.f32 %v426_v27, %v682_v31  ;;  %v931_v50 = vsub.f32 %v419_v34, %v675_v39  ;;  %v691_v34 = vld [vmem:[%s3548_s26 + $0x700] sm:$0xff]  ;;  %v432_v39 = vld [vmem:[%s3541_s14 + $0x6e8] sm:$0xff] }
  0xcf   : > { %v1482_v33 = vadd.f32 %v1481_v19, %v1178_v6  ;;  %v932_v51 = vsub.f32 %v420_v35, %v676_v40  ;;  %v934_v0 = vsub.f32 %v422_v42, %v678_v47  ;;  %v927_v5 = vsub.f32 %v415_v30, %v671_v54  ;;  %v437_v40 = vld [vmem:[%s3541_s14 + $0x710] sm:$0xff]  ;;  %v688_v47 = vld [vmem:[%s3548_s26 + $0x6e8] sm:$0xff] }
  0xd0   : > { %v3967_v13 = vld [vmem:[#allocation1] sm:$0xff]  ;;  %v1476_v38 = vadd.f32 %v1475_v26, %v1173_v16  ;;  %v1191_v56 = vmul.f32 %v935_v44, %v935_v44  ;;  %v1194_v63 = vmul.f32 %v938_v49, %v938_v49  ;;  %v1187_v1 = vmul.f32 %v931_v50, %v931_v50  ;;  %v689_v30 = vld [vmem:[%s3548_s26 + $0x6f0] sm:$0xff] }
  0xd1   : > { %2147 = vst [vmem:[#allocation1] ss:$9 sm:$0xff] %v1627_v41  ;;  %v677_v41 = vld [vmem:[%s3548_s26 + $0x690] sm:$0xff]  ;;  %1483 = vadd.xlane.f32.xlu1 %v1482_v33  ;;  %v1188_v2 = vmul.f32 %v932_v51, %v932_v51  ;;  %v928_v6 = vsub.f32 %v416_v48, %v672_v55  ;;  %v1190_v7 = vmul.f32 %v934_v0, %v934_v0  ;;  %v1635_v11 = vperm.slane %v3998_v62, 0  ;;  %v436_v33 = vld [vmem:[%s3541_s14 + $0x708] sm:$0xff]  ;;  %v438_v48 = vld [vmem:[%s3541_s14 + $0x718] sm:$0xff] }
  0xd2   : > { %2148 = vst [vmem:[#allocation1 + $0x1] ss:$9 sm:$0xff] %v1628_v45  ;;  %v1477_v43 = vadd.f32 %v1476_v38, %v1174_v25  ;;  %v936_v45 = vsub.f32 %v424_v21, %v680_v28  ;;  %v933_v52 = vsub.f32 %v421_v36, %v677_v41  ;;  %v929_v9 = vsub.f32 %v417_v53, %v673_v60  ;;  %v692_v36 = vld [vmem:[%s3548_s26 + $0x708] sm:$0xff]  ;;  %v431_v38 = vld [vmem:[%s3541_s14 + $0x6e0] sm:$0xff]  ;;  %v693_v41 = vld [vmem:[%s3548_s26 + $0x710] sm:$0xff]  ;;  %v1254_v60 = vpop.xlane.xlu1 %1253 }
  0xd3   : > { %2149 = vst [vmem:[#allocation1 + $0x2] ss:$9 sm:$0xff] %v1629_v46  ;;  %v937_v46 = vsub.f32 %v425_v22, %v681_v29  ;;  %v1495_v8 = vadd.f32 %v1188_v2, %v1187_v1  ;;  %v930_v10 = vsub.f32 %v418_v59, %v674_v61  ;;  %v1184_v15 = vmul.f32 %v928_v6, %v928_v6  ;;  %v694_v49 = vld [vmem:[%s3548_s26 + $0x718] sm:$0xff]  ;;  %v428_v59 = vld [vmem:[%s3541_s14 + $0x6c8] sm:$0xff]  ;;  %v429_v1 = vld [vmem:[%s3541_s14 + $0x6d0] sm:$0xff] }
  0xd4   : > { %2150 = vst [vmem:[#allocation1 + $0x3] ss:$9 sm:$0xff] %v1630_v14  ;;  %1478 = vadd.xlane.f32.xlu0 %v1477_v43  ;;  %v1192_v57 = vmul.f32 %v936_v45, %v936_v45  ;;  %v1189_v4 = vmul.f32 %v933_v52, %v933_v52  ;;  %v1183_v14 = vmul.f32 %v927_v5, %v927_v5  ;;  %v1636_v16 = vperm.slane %v3998_v62, 1  ;;  %v433_v43 = vld [vmem:[%s3541_s14 + $0x6f0] sm:$0xff]  ;;  %v434_v51 = vld [vmem:[%s3541_s14 + $0x6f8] sm:$0xff]  ;;  %v684_v6 = vld [vmem:[%s3548_s26 + $0x6c8] sm:$0xff] }
  0xd5   : > { %2151 = vst [vmem:[#allocation1 + $0x4] ss:$9 sm:$0xff] %v1631_v17  ;;  %v1193_v58 = vmul.f32 %v937_v46, %v937_v46  ;;  %v1185_v18 = vmul.f32 %v929_v9, %v929_v9  ;;  %v1637_v19 = vperm.slane %v3998_v62, 2  ;;  %v1186_v21 = vmul.f32 %v930_v10, %v930_v10  ;;  %v687_v46 = vld [vmem:[%s3548_s26 + $0x6e0] sm:$0xff]  ;;  %v430_v2 = vld [vmem:[%s3541_s14 + $0x6d8] sm:$0xff] }
  0xd6   : > { %2152 = vst [vmem:[#allocation1 + $0x5] ss:$9 sm:$0xff] %v1632_v24  ;;  %v1500_v3 = vadd.f32 %v1192_v57, %v1191_v56  ;;  %v1496_v17 = vadd.f32 %v1495_v8, %v1189_v4  ;;  %v1490_v22 = vadd.f32 %v1184_v15, %v1183_v14  ;;  %v1638_v24 = vperm.slane %v3998_v62, 3  ;;  %v690_v57 = vld [vmem:[%s3548_s26 + $0x6f8] sm:$0xff] }
  0xd7   : > { %2153 = vst [vmem:[#allocation1 + $0x6] ss:$9 sm:$0xff] %v1633_v32  ;;  %v1639_v26 = vperm.slane %v3998_v62, 4  ;;  %v1640_v28 = vperm.slane %v3998_v62, 5  ;;  %v1641_v29 = vperm.slane %v3998_v62, 6  ;;  %v435_v32 = vld [vmem:[%s3541_s14 + $0x700] sm:$0xff]  ;;  %v948_v42 = vsub.f32 %v436_v33, %v692_v36 }
  0xd8   : > { %2154 = vst [vmem:[#allocation1 + $0x7] ss:$9 sm:$0xff] %v1634_v37  ;;  %v1501_v12 = vadd.f32 %v1500_v3, %v1193_v58  ;;  %v1497_v25 = vadd.f32 %v1496_v17, %v1190_v7  ;;  %v1491_v27 = vadd.f32 %v1490_v22, %v1185_v18  ;;  %v1642_v35 = vperm.slane %v3998_v62, 7  ;;  %v427_v58 = vld [vmem:[%s3541_s14 + $0x6c0] sm:$0xff]  ;;  %v685_v7 = vld [vmem:[%s3548_s26 + $0x6d0] sm:$0xff]  ;;  %v686_v8 = vld [vmem:[%s3548_s26 + $0x6d8] sm:$0xff] }
  0xd9   : > { %v947_v37 = vsub.f32 %v435_v32, %v691_v34  ;;  %v949_v44 = vsub.f32 %v437_v40, %v693_v41  ;;  %v1204_v50 = vmul.f32 %v948_v42, %v948_v42  ;;  %v943_v52 = vsub.f32 %v431_v38, %v687_v46  ;;  %v683_v3 = vld [vmem:[%s3548_s26 + $0x6c0] sm:$0xff]  ;;  %v1259_v38 = vpop.xlane.xlu2 %1258 }
  0xda   : > { %v1502_v20 = vadd.f32 %v1501_v12, %v1194_v63  ;;  %1498 = vadd.xlane.f32.xlu1 %v1497_v25  ;;  %v1492_v31 = vadd.f32 %v1491_v27, %v1186_v21  ;;  %v944_v53 = vsub.f32 %v432_v39, %v688_v47  ;;  %v945_v54 = vsub.f32 %v433_v43, %v689_v30  ;;  %v447_v46 = vld [vmem:[%s3541_s14 + $0x760] sm:$0xff]  ;;  %v448_v47 = vld [vmem:[%s3541_s14 + $0x768] sm:$0xff] }
  0xdb   : > { %v1203_v45 = vmul.f32 %v947_v37, %v947_v37  ;;  %v950_v55 = vsub.f32 %v438_v48, %v694_v49  ;;  %v1205_v56 = vmul.f32 %v949_v44, %v949_v44  ;;  %v946_v62 = vsub.f32 %v434_v51, %v690_v57  ;;  %v703_v30 = vld [vmem:[%s3548_s26 + $0x760] sm:$0xff]  ;;  %v704_v49 = vld [vmem:[%s3548_s26 + $0x768] sm:$0xff]  ;;  %v445_v57 = vld [vmem:[%s3541_s14 + $0x750] sm:$0xff] }
  0xdc   : > { %1503 = vadd.xlane.f32.xlu2 %v1502_v20  ;;  %1493 = vadd.xlane.f32.xlu0 %v1492_v31  ;;  %v1199_v63 = vmul.f32 %v943_v52, %v943_v52  ;;  %v1200_v0 = vmul.f32 %v944_v53, %v944_v53  ;;  %v1201_v5 = vmul.f32 %v945_v54, %v945_v54  ;;  %v1643_v15 = vperm.slane %v1254_v60, 0  ;;  %v443_v51 = vld [vmem:[%s3541_s14 + $0x740] sm:$0xff]  ;;  %v444_v52 = vld [vmem:[%s3541_s14 + $0x748] sm:$0xff]  ;;  %v449_v54 = vld [vmem:[%s3541_s14 + $0x770] sm:$0xff] }
  0xdd   : > { %v1515_v61 = vadd.f32 %v1204_v50, %v1203_v45  ;;  %v1206_v4 = vmul.f32 %v950_v55, %v950_v55  ;;  %v939_v9 = vsub.f32 %v427_v58, %v683_v3  ;;  %v940_v14 = vsub.f32 %v428_v59, %v684_v6  ;;  %v705_v55 = vld [vmem:[%s3548_s26 + $0x770] sm:$0xff]  ;;  %v702_v6 = vld [vmem:[%s3548_s26 + $0x758] sm:$0xff] }
  0xde   : > { %v1510_v12 = vadd.f32 %v1200_v0, %v1199_v63  ;;  %v942_v17 = vsub.f32 %v430_v2, %v686_v8  ;;  %v1646_v27 = vperm.slane %v1254_v60, 3  ;;  %v1647_v32 = vperm.slane %v1254_v60, 4  ;;  %v450_v63 = vld [vmem:[%s3541_s14 + $0x778] sm:$0xff]  ;;  %v439_v8 = vld [vmem:[%s3541_s14 + $0x720] sm:$0xff] }
  0xdf   : > { %v4003_v23 = vld [vmem:[#allocation1] sm:$0xff]  ;;  %v1516_v10 = vadd.f32 %v1515_v61, %v1205_v56  ;;  %v1195_v18 = vmul.f32 %v939_v9, %v939_v9  ;;  %v1196_v22 = vmul.f32 %v940_v14, %v940_v14  ;;  %v1648_v33 = vperm.slane %v1254_v60, 5  ;;  %v700_v61 = vld [vmem:[%s3548_s26 + $0x748] sm:$0xff] }
  0xe0   : > { %2156 = vst [vmem:[#allocation1] ss:$9 sm:$0xff] %v1635_v11  ;;  %v1202_v11 = vmul.f32 %v946_v62, %v946_v62  ;;  %v1511_v21 = vadd.f32 %v1510_v12, %v1201_v5  ;;  %v1650_v36 = vperm.slane %v1254_v60, 7  ;;  %v1651_v39 = vperm.slane %v1259_v38, 0  ;;  %v701_v62 = vld [vmem:[%s3548_s26 + $0x750] sm:$0xff]  ;;  %v706_v0 = vld [vmem:[%s3548_s26 + $0x778] sm:$0xff] }
  0xe1   : > { %2157 = vst [vmem:[#allocation1 + $0x1] ss:$9 sm:$0xff] %v1636_v16  ;;  %v941_v16 = vsub.f32 %v429_v1, %v685_v7  ;;  %v1517_v20 = vadd.f32 %v1516_v10, %v1206_v4  ;;  %v1505_v31 = vadd.f32 %v1196_v22, %v1195_v18  ;;  %v1652_v40 = vperm.slane %v1259_v38, 1  ;;  %v446_v5 = vld [vmem:[%s3541_s14 + $0x758] sm:$0xff]  ;;  %v440_v14 = vld [vmem:[%s3541_s14 + $0x728] sm:$0xff]  ;;  %v697_v18 = vld [vmem:[%s3548_s26 + $0x730] sm:$0xff] }
  0xe2   : > { %2158 = vst [vmem:[#allocation1 + $0x2] ss:$9 sm:$0xff] %v1637_v19  ;;  %v1644_v19 = vperm.slane %v1254_v60, 1  ;;  %v1653_v41 = vperm.slane %v1259_v38, 2  ;;  %v1654_v42 = vperm.slane %v1259_v38, 3  ;;  %v1655_v44 = vperm.slane %v1259_v38, 4 }
  0xe3   : > { %2159 = vst [vmem:[#allocation1 + $0x3] ss:$9 sm:$0xff] %v1638_v24  ;;  %v1645_v24 = vperm.slane %v1254_v60, 2  ;;  %v1197_v25 = vmul.f32 %v941_v16, %v941_v16  ;;  %v1656_v45 = vperm.slane %v1259_v38, 5  ;;  %v1657_v48 = vperm.slane %v1259_v38, 6  ;;  %v441_v16 = vld [vmem:[%s3541_s14 + $0x730] sm:$0xff] }
  0xe4   : > { %2160 = vst [vmem:[#allocation1 + $0x4] ss:$9 sm:$0xff] %v1639_v26  ;;  %1518 = vadd.xlane.f32.xlu2 %v1517_v20  ;;  %v959_v50 = vsub.f32 %v447_v46, %v703_v30  ;;  %v1658_v53 = vperm.slane %v1259_v38, 7  ;;  %v960_v56 = vsub.f32 %v448_v47, %v704_v49  ;;  %v961_v58 = vsub.f32 %v449_v54, %v705_v55  ;;  %v1269_v54 = vpop.xlane.xlu0 %1268 }
  0xe5   : > { %2161 = vst [vmem:[#allocation1 + $0x5] ss:$9 sm:$0xff] %v1640_v28  ;;  %v1512_v28 = vadd.f32 %v1511_v21, %v1202_v11  ;;  %v1506_v34 = vadd.f32 %v1505_v31, %v1197_v25  ;;  %v956_v3 = vsub.f32 %v444_v52, %v700_v61  ;;  %v962_v4 = vsub.f32 %v450_v63, %v706_v0  ;;  %v459_v61 = vld [vmem:[%s3541_s14 + $0x7c0] sm:$0xff] }
  0xe6   : > { %2162 = vst [vmem:[#allocation1 + $0x6] ss:$9 sm:$0xff] %v1641_v29  ;;  %v1198_v29 = vmul.f32 %v942_v17, %v942_v17  ;;  %v1215_v59 = vmul.f32 %v959_v50, %v959_v50  ;;  %v1216_v1 = vmul.f32 %v960_v56, %v960_v56  ;;  %v957_v7 = vsub.f32 %v445_v57, %v701_v62  ;;  %v696_v17 = vld [vmem:[%s3548_s26 + $0x728] sm:$0xff]  ;;  %v715_v63 = vld [vmem:[%s3548_s26 + $0x7c0] sm:$0xff] }
  0xe7   : > { %2163 = vst [vmem:[#allocation1 + $0x7] ss:$9 sm:$0xff] %v1642_v35  ;;  %1513 = vadd.xlane.f32.xlu1 %v1512_v28  ;;  %v1649_v35 = vperm.slane %v1254_v60, 6  ;;  %v699_v60 = vld [vmem:[%s3548_s26 + $0x740] sm:$0xff]  ;;  %v1217_v9 = vmul.f32 %v961_v58, %v961_v58  ;;  %v1212_v12 = vmul.f32 %v956_v3, %v956_v3  ;;  %v958_v20 = vsub.f32 %v446_v5, %v702_v6  ;;  %v698_v28 = vld [vmem:[%s3548_s26 + $0x738] sm:$0xff]  ;;  %v460_v62 = vld [vmem:[%s3541_s14 + $0x7c8] sm:$0xff] }
  0xe8   : > { %v1507_v37 = vadd.f32 %v1506_v34, %v1198_v29  ;;  %v955_v2 = vsub.f32 %v443_v51, %v699_v60  ;;  %v1530_v10 = vadd.f32 %v1216_v1, %v1215_v59  ;;  %v1213_v25 = vmul.f32 %v957_v7, %v957_v7  ;;  %v716_v1 = vld [vmem:[%s3548_s26 + $0x7c8] sm:$0xff]  ;;  %v455_v3 = vld [vmem:[%s3541_s14 + $0x7a0] sm:$0xff]  ;;  %v461_v6 = vld [vmem:[%s3541_s14 + $0x7d0] sm:$0xff] }
  0xe9   : > { %v1667_v55 = vperm.slane %v1269_v54, 0  ;;  %v1668_v56 = vperm.slane %v1269_v54, 1  ;;  %v1669_v57 = vperm.slane %v1269_v54, 2  ;;  %v1670_v59 = vperm.slane %v1269_v54, 3  ;;  %v717_v7 = vld [vmem:[%s3548_s26 + $0x7d0] sm:$0xff] }
  0xea   : > { %1508 = vadd.xlane.f32.xlu0 %v1507_v37  ;;  %v1211_v11 = vmul.f32 %v955_v2, %v955_v2  ;;  %v1531_v29 = vadd.f32 %v1530_v10, %v1217_v9  ;;  %v1671_v60 = vperm.slane %v1269_v54, 4  ;;  %v1672_v0 = vperm.slane %v1269_v54, 5  ;;  %v457_v9 = vld [vmem:[%s3541_s14 + $0x7b0] sm:$0xff] }
  0xeb   : > { %v971_v2 = vsub.f32 %v459_v61, %v715_v63  ;;  %v1673_v5 = vperm.slane %v1269_v54, 6  ;;  %v1674_v10 = vperm.slane %v1269_v54, 7 }
  0xec   : > { %v1525_v31 = vadd.f32 %v1212_v12, %v1211_v11  ;;  %v973_v11 = vsub.f32 %v461_v6, %v717_v7 }
  0xed   : > { %v1227_v12 = vmul.f32 %v971_v2, %v971_v2 }
  0xee   : > { %v4034_v26 = vld [vmem:[#allocation1] sm:$0xff] }
  0xef   : > { %2165 = vst [vmem:[#allocation1] ss:$9 sm:$0xff] %v1643_v15  ;;  %v695_v15 = vld [vmem:[%s3548_s26 + $0x720] sm:$0xff] }
  0xf0   : > { %2166 = vst [vmem:[#allocation1 + $0x1] ss:$9 sm:$0xff] %v1644_v19  ;;  %v1264_v19 = vpop.xlane.xlu2 %1263  ;;  %v951_v21 = vsub.f32 %v439_v8, %v695_v15  ;;  %v972_v8 = vsub.f32 %v460_v62, %v716_v1  ;;  %v712_v15 = vld [vmem:[%s3548_s26 + $0x7a8] sm:$0xff] }
  0xf1   : > { %2167 = vst [vmem:[#allocation1 + $0x2] ss:$9 sm:$0xff] %v1645_v24  ;;  %v1659_v22 = vperm.slane %v1264_v19, 0  ;;  %v1218_v24 = vmul.f32 %v962_v4, %v962_v4  ;;  %v1660_v34 = vperm.slane %v1264_v19, 1  ;;  %v1664_v47 = vperm.slane %v1264_v19, 5  ;;  %v456_v4 = vld [vmem:[%s3541_s14 + $0x7a8] sm:$0xff] }
  0xf2   : > { %2168 = vst [vmem:[#allocation1 + $0x3] ss:$9 sm:$0xff] %v1646_v27  ;;  %v442_v27 = vld [vmem:[%s3541_s14 + $0x738] sm:$0xff]  ;;  %v1207_v38 = vmul.f32 %v951_v21, %v951_v21  ;;  %v1665_v30 = vperm.slane %v1264_v19, 6  ;;  %v1666_v51 = vperm.slane %v1264_v19, 7 }
  0xf3   : > { %2169 = vst [vmem:[#allocation1 + $0x4] ss:$9 sm:$0xff] %v1647_v32  ;;  %v952_v32 = vsub.f32 %v440_v14, %v696_v17  ;;  %v954_v37 = vsub.f32 %v442_v27, %v698_v28  ;;  %v711_v14 = vld [vmem:[%s3548_s26 + $0x7a0] sm:$0xff]  ;;  %v462_v17 = vld [vmem:[%s3541_s14 + $0x7d8] sm:$0xff]  ;;  %v1229_v27 = vmul.f32 %v973_v11, %v973_v11 }
  0xf4   : > { %2170 = vst [vmem:[#allocation1 + $0x5] ss:$9 sm:$0xff] %v1648_v33  ;;  %v953_v33 = vsub.f32 %v441_v16, %v697_v18  ;;  %v713_v16 = vld [vmem:[%s3548_s26 + $0x7b0] sm:$0xff]  ;;  %v718_v18 = vld [vmem:[%s3548_s26 + $0x7d8] sm:$0xff]  ;;  %v967_v21 = vsub.f32 %v455_v3, %v711_v14 }
  0xf5   : > { %2171 = vst [vmem:[#allocation1 + $0x6] ss:$9 sm:$0xff] %v1649_v35  ;;  %v1661_v35 = vperm.slane %v1264_v19, 2  ;;  %v1210_v49 = vmul.f32 %v954_v37, %v954_v37  ;;  %v714_v28 = vld [vmem:[%s3548_s26 + $0x7b8] sm:$0xff] }
  0xf6   : > { %2172 = vst [vmem:[#allocation1 + $0x7] ss:$9 sm:$0xff] %v1650_v36  ;;  %v1214_v36 = vmul.f32 %v958_v20, %v958_v20  ;;  %v1209_v46 = vmul.f32 %v953_v33, %v953_v33  ;;  %v458_v20 = vld [vmem:[%s3541_s14 + $0x7b8] sm:$0xff] }
  0xf7   : > { %v970_v33 = vsub.f32 %v458_v20, %v714_v28  ;;  %v454_v37 = vld [vmem:[%s3541_s14 + $0x798] sm:$0xff]  ;;  %v720_v20 = vld [vmem:[%s3548_s26 + $0x7e8] sm:$0xff] }
  0xfd   : > { %v4036_v43 = vld [vmem:[#allocation1] sm:$0xff] }
  0xfe   : > { %2174 = vst [vmem:[#allocation1] ss:$9 sm:$0xff] %v1651_v39  ;;  %v1662_v39 = vperm.slane %v1264_v19, 3 }
  0xff   : > { %2175 = vst [vmem:[#allocation1 + $0x1] ss:$9 sm:$0xff] %v1652_v40  ;;  %v1663_v40 = vperm.slane %v1264_v19, 4  ;;  %v1228_v19 = vmul.f32 %v972_v8, %v972_v8 }
 0x100   : > { %2176 = vst [vmem:[#allocation1 + $0x2] ss:$9 sm:$0xff] %v1653_v41 }
 0x101   : > { %2177 = vst [vmem:[#allocation1 + $0x3] ss:$9 sm:$0xff] %v1654_v42  ;;  %v1532_v42 = vadd.f32 %v1531_v29, %v1218_v24  ;;  %v969_v24 = vsub.f32 %v457_v9, %v713_v16  ;;  %v451_v29 = vld [vmem:[%s3541_s14 + $0x780] sm:$0xff]  ;;  %v1279_v9 = vpop.xlane.xlu2 %1278 }
 0x102   : > { %2178 = vst [vmem:[#allocation1 + $0x4] ss:$9 sm:$0xff] %v1655_v44  ;;  %v1526_v44 = vadd.f32 %v1525_v31, %v1213_v25  ;;  %v974_v25 = vsub.f32 %v462_v17, %v718_v18  ;;  %v452_v31 = vld [vmem:[%s3541_s14 + $0x788] sm:$0xff]  ;;  %v1684_v11 = vperm.slane %v1279_v9, 1  ;;  %v1686_v14 = vperm.slane %v1279_v9, 3  ;;  %v463_v16 = vld [vmem:[%s3541_s14 + $0x7e0] sm:$0xff] }
 0x103   : > { %2179 = vst [vmem:[#allocation1 + $0x5] ss:$9 sm:$0xff] %v1656_v45  ;;  %v1208_v45 = vmul.f32 %v952_v32, %v952_v32  ;;  %1533 = vadd.xlane.f32.xlu2 %v1532_v42  ;;  %v1545_v32 = vadd.f32 %v1228_v19, %v1227_v12  ;;  %v708_v42 = vld [vmem:[%s3548_s26 + $0x788] sm:$0xff]  ;;  %v1685_v12 = vperm.slane %v1279_v9, 2  ;;  %v1687_v17 = vperm.slane %v1279_v9, 4  ;;  %v719_v19 = vld [vmem:[%s3548_s26 + $0x7e0] sm:$0xff] }
 0x104   : > { %2180 = vst [vmem:[#allocation1 + $0x6] ss:$9 sm:$0xff] %v1657_v48  ;;  %v1527_v48 = vadd.f32 %v1526_v44, %v1214_v36  ;;  %v453_v36 = vld [vmem:[%s3541_s14 + $0x790] sm:$0xff]  ;;  %v464_v18 = vld [vmem:[%s3541_s14 + $0x7e8] sm:$0xff]  ;;  %v1689_v28 = vperm.slane %v1279_v9, 6 }
 0x105   : > { %2181 = vst [vmem:[#allocation1 + $0x7] ss:$9 sm:$0xff] %v1658_v53  ;;  %v1520_v50 = vadd.f32 %v1208_v45, %v1207_v38  ;;  %v707_v38 = vld [vmem:[%s3548_s26 + $0x780] sm:$0xff]  ;;  %v709_v44 = vld [vmem:[%s3548_s26 + $0x790] sm:$0xff]  ;;  %v710_v45 = vld [vmem:[%s3548_s26 + $0x798] sm:$0xff] }
 0x106   : > { %1528 = vadd.xlane.f32.xlu1 %v1527_v48  ;;  %v964_v48 = vsub.f32 %v452_v31, %v708_v42  ;;  %v1690_v31 = vperm.slane %v1279_v9, 7 }
 0x107   : > { %v1521_v52 = vadd.f32 %v1520_v50, %v1209_v46  ;;  %v963_v46 = vsub.f32 %v451_v29, %v707_v38  ;;  %v965_v50 = vsub.f32 %v453_v36, %v709_v44  ;;  %v1284_v44 = vpop.xlane.xlu0 %1283 }
 0x109   : > { %v1522_v53 = vadd.f32 %v1521_v52, %v1210_v49  ;;  %v1226_v49 = vmul.f32 %v970_v33, %v970_v33  ;;  %v1219_v52 = vmul.f32 %v963_v46, %v963_v46  ;;  %v1221_v62 = vmul.f32 %v965_v50, %v965_v50  ;;  %v722_v33 = vld [vmem:[%s3548_s26 + $0x7f8] sm:$0xff] }
 0x10a   : > { %v1692_v46 = vperm.slane %v1284_v44, 1  ;;  %v1696_v50 = vperm.slane %v1284_v44, 5 }
 0x10b   : > { %1523 = vadd.xlane.f32.xlu0 %v1522_v53  ;;  %v1274_v53 = vpop.xlane.xlu1 %1273 }
 0x10c   : > { %v4062_v41 = vld [vmem:[#allocation1] sm:$0xff]  ;;  %v1678_v2 = vperm.slane %v1274_v53, 3  ;;  %v1679_v3 = vperm.slane %v1274_v53, 4  ;;  %v1681_v6 = vperm.slane %v1274_v53, 6  ;;  %v1682_v8 = vperm.slane %v1274_v53, 7 }
 0x10d   : > { %2183 = vst [vmem:[#allocation1] ss:$9 sm:$0xff] %v1659_v22  ;;  %v968_v22 = vsub.f32 %v456_v4, %v712_v15 }
 0x10e   : > { %2184 = vst [vmem:[#allocation1 + $0x1] ss:$9 sm:$0xff] %v1660_v34  ;;  %v1223_v34 = vmul.f32 %v967_v21, %v967_v21  ;;  %v1688_v21 = vperm.slane %v1279_v9, 5 }
 0x10f   : > { %2185 = vst [vmem:[#allocation1 + $0x2] ss:$9 sm:$0xff] %v1661_v35  ;;  %v1224_v35 = vmul.f32 %v968_v22, %v968_v22  ;;  %v465_v22 = vld [vmem:[%s3541_s14 + $0x7f0] sm:$0xff] }
 0x110   : > { %2186 = vst [vmem:[#allocation1 + $0x3] ss:$9 sm:$0xff] %v1662_v39  ;;  %v1230_v39 = vmul.f32 %v974_v25, %v974_v25  ;;  %v975_v25 = vsub.f32 %v463_v16, %v719_v19 }
 0x111   : > { %2187 = vst [vmem:[#allocation1 + $0x4] ss:$9 sm:$0xff] %v1663_v40  ;;  %v1225_v40 = vmul.f32 %v969_v24, %v969_v24  ;;  %v721_v24 = vld [vmem:[%s3548_s26 + $0x7f0] sm:$0xff] }
 0x112   : > { %2188 = vst [vmem:[#allocation1 + $0x5] ss:$9 sm:$0xff] %v1664_v47  ;;  %v1546_v47 = vadd.f32 %v1545_v32, %v1229_v27  ;;  %v976_v27 = vsub.f32 %v464_v18, %v720_v20  ;;  %v977_v29 = vsub.f32 %v465_v22, %v721_v24  ;;  %v466_v32 = vld [vmem:[%s3541_s14 + $0x7f8] sm:$0xff]  ;;  %v3400_v24 = vmov 0  }
 0x113   : > { %2189 = vst [vmem:[#allocation1 + $0x6] ss:$9 sm:$0xff] %v1665_v30  ;;  %v1540_v30 = vadd.f32 %v1224_v35, %v1223_v34  ;;  %v1231_v34 = vmul.f32 %v975_v25, %v975_v25  ;;  %v978_v36 = vsub.f32 %v466_v32, %v722_v33  ;;  %3264 = vset.pattern.permute.xlu2 %v3400_v24 }
 0x114   : > { %2190 = vst [vmem:[#allocation1 + $0x7] ss:$9 sm:$0xff] %v1666_v51  ;;  %v966_v51 = vsub.f32 %v454_v37, %v710_v45  ;;  %v1547_v54 = vadd.f32 %v1546_v47, %v1230_v39  ;;  %v1232_v35 = vmul.f32 %v976_v27, %v976_v27  ;;  %v1233_v37 = vmul.f32 %v977_v29, %v977_v29 }
 0x115   : > { %v1234_v39 = vmul.f32 %v978_v36, %v978_v36  ;;  %v1691_v45 = vperm.slane %v1284_v44, 0  ;;  %v1693_v47 = vperm.slane %v1284_v44, 2  ;;  %3263 = vset.pattern.permute.xlu1 %v3400_v24  ;;  %3265 = vset.pattern.permute.xlu0 %v3400_v24 }
 0x116   : > { %1548 = vadd.xlane.f32.xlu2 %v1547_v54  ;;  %v1222_v63 = vmul.f32 %v966_v51, %v966_v51  ;;  %v1550_v38 = vadd.f32 %v1232_v35, %v1231_v34  ;;  %v1697_v51 = vperm.slane %v1284_v44, 6 }
 0x11b   : > { %v4064_v58 = vld [vmem:[#allocation1] sm:$0xff] }
 0x11c   : > { %2192 = vst [vmem:[#allocation1] ss:$9 sm:$0xff] %v1667_v55  ;;  %v1541_v55 = vadd.f32 %v1540_v30, %v1225_v40  ;;  %v1551_v40 = vadd.f32 %v1550_v38, %v1233_v37 }
 0x11d   : > { %2193 = vst [vmem:[#allocation1 + $0x1] ss:$9 sm:$0xff] %v1668_v56  ;;  %v1220_v56 = vmul.f32 %v964_v48, %v964_v48  ;;  %v1694_v48 = vperm.slane %v1284_v44, 3 }
 0x11e   : > { %2194 = vst [vmem:[#allocation1 + $0x2] ss:$9 sm:$0xff] %v1669_v57  ;;  %v1675_v57 = vperm.slane %v1274_v53, 0  ;;  %v1542_v61 = vadd.f32 %v1541_v55, %v1226_v49  ;;  %v1552_v42 = vadd.f32 %v1551_v40, %v1234_v39  ;;  %v1695_v49 = vperm.slane %v1284_v44, 4 }
 0x11f   : > { %2195 = vst [vmem:[#allocation1 + $0x3] ss:$9 sm:$0xff] %v1670_v59  ;;  %v1676_v59 = vperm.slane %v1274_v53, 1 }
 0x120   : > { %2196 = vst [vmem:[#allocation1 + $0x4] ss:$9 sm:$0xff] %v1671_v60  ;;  %v1677_v60 = vperm.slane %v1274_v53, 2  ;;  %1543 = vadd.xlane.f32.xlu1 %v1542_v61 }
 0x121   : > { %2197 = vst [vmem:[#allocation1 + $0x5] ss:$9 sm:$0xff] %v1672_v0  ;;  %v1535_v0 = vadd.f32 %v1220_v56, %v1219_v52  ;;  %v1698_v52 = vperm.slane %v1284_v44, 7 }
 0x122   : > { %2198 = vst [vmem:[#allocation1 + $0x6] ss:$9 sm:$0xff] %v1673_v5  ;;  %v1680_v5 = vperm.slane %v1274_v53, 5  ;;  %v1289_v53 = vpop.xlane.xlu1 %1288 }
 0x123   : > { %2199 = vst [vmem:[#allocation1 + $0x7] ss:$9 sm:$0xff] %v1674_v10  ;;  %v1536_v4 = vadd.f32 %v1535_v0, %v1221_v62  ;;  %v1683_v10 = vperm.slane %v1279_v9, 0  ;;  %v1699_v54 = vperm.slane %v1289_v53, 0  ;;  %v1700_v55 = vperm.slane %v1289_v53, 1  ;;  %v1294_v0 = vpop.xlane.xlu2 %1293 }
 0x124   : > { %v1701_v56 = vperm.slane %v1289_v53, 2  ;;  %v1704_v61 = vperm.slane %v1289_v53, 5  ;;  %v1705_v62 = vperm.slane %v1289_v53, 6  ;;  %v1713_v9 = vperm.slane %v1294_v0, 6 }
 0x125   : > { %v1537_v7 = vadd.f32 %v1536_v4, %v1222_v63  ;;  %v1706_v63 = vperm.slane %v1289_v53, 7  ;;  %v1709_v4 = vperm.slane %v1294_v0, 2 }
 0x127   : > { %1538 = vadd.xlane.f32.xlu0 %v1537_v7  ;;  %v1711_v7 = vperm.slane %v1294_v0, 4 }
 0x12a   : > { %v4090_v1 = vld [vmem:[#allocation1] sm:$0xff]  ;;  %v1304_v25 = vpop.xlane.xlu1 %1303 }
 0x12b   : > { %2201 = vst [vmem:[#allocation1] ss:$9 sm:$0xff] %v1675_v57  ;;  %v1723_v27 = vperm.slane %v1304_v25, 0  ;;  %v1725_v29 = vperm.slane %v1304_v25, 2  ;;  %v1726_v32 = vperm.slane %v1304_v25, 3  ;;  %v1727_v33 = vperm.slane %v1304_v25, 4 }
 0x12c   : > { %2202 = vst [vmem:[#allocation1 + $0x1] ss:$9 sm:$0xff] %v1676_v59  ;;  %v1702_v59 = vperm.slane %v1289_v53, 3  ;;  %v1728_v34 = vperm.slane %v1304_v25, 5 }
 0x12d   : > { %2203 = vst [vmem:[#allocation1 + $0x2] ss:$9 sm:$0xff] %v1677_v60  ;;  %v1703_v60 = vperm.slane %v1289_v53, 4 }
 0x12e   : > { %2204 = vst [vmem:[#allocation1 + $0x3] ss:$9 sm:$0xff] %v1678_v2  ;;  %v1707_v2 = vperm.slane %v1294_v0, 0  ;;  %2718 = vperm.xlu2 %3264, %v4003_v23   ;;  %v1729_v23 = vperm.slane %v1304_v25, 6 }
 0x12f   : > { %2205 = vst [vmem:[#allocation1 + $0x4] ss:$9 sm:$0xff] %v1679_v3  ;;  %1553 = vadd.xlane.f32.xlu0 %v1552_v42  ;;  %v1708_v3 = vperm.slane %v1294_v0, 1 }
 0x130   : > { %2206 = vst [vmem:[#allocation1 + $0x5] ss:$9 sm:$0xff] %v1680_v5  ;;  %v1710_v5 = vperm.slane %v1294_v0, 3 }
 0x131   : > { %2207 = vst [vmem:[#allocation1 + $0x6] ss:$9 sm:$0xff] %v1681_v6 }
 0x132   : > { %2208 = vst [vmem:[#allocation1 + $0x7] ss:$9 sm:$0xff] %v1682_v8  ;;  %v1712_v8 = vperm.slane %v1294_v0, 5 }
 0x136   : > { %2724 = vperm.xlu2 %3264, %v4036_v43  }
 0x139   : > { %v4092_v15 = vld [vmem:[#allocation1] sm:$0xff]  ;;  %2715 = vperm.xlu1 %3263, %v3967_v13   ;;  %v1730_v13 = vperm.slane %v1304_v25, 7 }
 0x13a   : > { %2210 = vst [vmem:[#allocation1] ss:$9 sm:$0xff] %v1683_v10  ;;  %v1714_v10 = vperm.slane %v1294_v0, 7 }
 0x13b   : > { %2211 = vst [vmem:[#allocation1 + $0x1] ss:$9 sm:$0xff] %v1684_v11  ;;  %v1299_v11 = vpop.xlane.xlu0 %1298 }
 0x13c   : > { %2212 = vst [vmem:[#allocation1 + $0x2] ss:$9 sm:$0xff] %v1685_v12  ;;  %v1715_v12 = vperm.slane %v1299_v11, 0  ;;  %v1717_v16 = vperm.slane %v1299_v11, 2  ;;  %v1718_v18 = vperm.slane %v1299_v11, 3  ;;  %v1719_v19 = vperm.slane %v1299_v11, 4 }
 0x13d   : > { %2213 = vst [vmem:[#allocation1 + $0x3] ss:$9 sm:$0xff] %v1686_v14  ;;  %v1716_v14 = vperm.slane %v1299_v11, 1  ;;  %v1720_v20 = vperm.slane %v1299_v11, 5  ;;  %v1722_v22 = vperm.slane %v1299_v11, 7 }
 0x13e   : > { %2214 = vst [vmem:[#allocation1 + $0x4] ss:$9 sm:$0xff] %v1687_v17  ;;  %2730 = vperm.xlu2 %3264, %v4064_v58  }
 0x13f   : > { %2215 = vst [vmem:[#allocation1 + $0x5] ss:$9 sm:$0xff] %v1688_v21  ;;  %v1721_v21 = vperm.slane %v1299_v11, 6 }
 0x140   : > { %2216 = vst [vmem:[#allocation1 + $0x6] ss:$9 sm:$0xff] %v1689_v28  ;;  %v1724_v28 = vperm.slane %v1304_v25, 1 }
 0x141   : > { %2217 = vst [vmem:[#allocation1 + $0x7] ss:$9 sm:$0xff] %v1690_v31  ;;  %2727 = vperm.xlu1 %3263, %v4062_v41  }
 0x143   : > { %2721 = vperm.xlu0 %3265, %v4034_v26   ;;  %v1309_v26 = vpop.xlane.xlu2 %1308 }
 0x144   : > { %v1731_v35 = vperm.slane %v1309_v26, 0  ;;  %v1732_v43 = vperm.slane %v1309_v26, 1  ;;  %v1733_v36 = vperm.slane %v1309_v26, 2  ;;  %v1734_v41 = vperm.slane %v1309_v26, 3 }
 0x145   : > { %v1735_v38 = vperm.slane %v1309_v26, 4  ;;  %v1736_v39 = vperm.slane %v1309_v26, 5  ;;  %v1737_v40 = vperm.slane %v1309_v26, 6  ;;  %v1738_v58 = vperm.slane %v1309_v26, 7 }
 0x146   : > { %2736 = vperm.xlu2 %3264, %v4092_v15  }
 0x148   : > { %v4102_v30 = vld [vmem:[#allocation1] sm:$0xff] }
 0x149   : > { %2219 = vst [vmem:[#allocation1] ss:$9 sm:$0xff] %v1691_v45  ;;  %2733 = vperm.xlu1 %3263, %v4090_v1   ;;  %v1314_v1 = vpop.xlane.xlu0 %1313 }
 0x14a   : > { %2220 = vst [vmem:[#allocation1 + $0x1] ss:$9 sm:$0xff] %v1692_v46  ;;  %v1739_v42 = vperm.slane %v1314_v1, 0  ;;  %v1740_v44 = vperm.slane %v1314_v1, 1  ;;  %v1741_v45 = vperm.slane %v1314_v1, 2  ;;  %v1744_v15 = vperm.slane %v1314_v1, 5 }
 0x14b   : > { %2221 = vst [vmem:[#allocation1 + $0x2] ss:$9 sm:$0xff] %v1693_v47  ;;  %v1742_v47 = vperm.slane %v1314_v1, 3 }
 0x14c   : > { %2222 = vst [vmem:[#allocation1 + $0x3] ss:$9 sm:$0xff] %v1694_v48  ;;  %v1743_v48 = vperm.slane %v1314_v1, 4 }
 0x14d   : > { %2223 = vst [vmem:[#allocation1 + $0x4] ss:$9 sm:$0xff] %v1695_v49  ;;  %v1746_v49 = vperm.slane %v1314_v1, 7 }
 0x14e   : > { %2224 = vst [vmem:[#allocation1 + $0x5] ss:$9 sm:$0xff] %v1696_v50  ;;  %v1319_v50 = vpop.xlane.xlu1 %1318 }
 0x14f   : > { %2225 = vst [vmem:[#allocation1 + $0x6] ss:$9 sm:$0xff] %v1697_v51  ;;  %v1747_v51 = vperm.slane %v1319_v50, 0  ;;  %v1749_v53 = vperm.slane %v1319_v50, 2 }
 0x150   : > { %2226 = vst [vmem:[#allocation1 + $0x7] ss:$9 sm:$0xff] %v1698_v52  ;;  %v1748_v52 = vperm.slane %v1319_v50, 1 }
 0x151   : > { %2739 = vperm.xlu1 %3263, %v4102_v30   ;;  %v1745_v30 = vperm.slane %v1314_v1, 6 }
 0x157   : > { %v4104_v57 = vld [vmem:[#allocation1] sm:$0xff] }
 0x158   : > { %2228 = vst [vmem:[#allocation1] ss:$9 sm:$0xff] %v1699_v54  ;;  %2742 = vperm.xlu0 %3265, %v4104_v57   ;;  %v1752_v57 = vperm.slane %v1319_v50, 5 }
 0x159   : > { %2229 = vst [vmem:[#allocation1 + $0x1] ss:$9 sm:$0xff] %v1700_v55  ;;  %v1750_v55 = vperm.slane %v1319_v50, 3 }
 0x15a   : > { %2230 = vst [vmem:[#allocation1 + $0x2] ss:$9 sm:$0xff] %v1701_v56  ;;  %v1751_v56 = vperm.slane %v1319_v50, 4 }
 0x15b   : > { %2231 = vst [vmem:[#allocation1 + $0x3] ss:$9 sm:$0xff] %v1702_v59  ;;  %v1753_v59 = vperm.slane %v1319_v50, 6 }
 0x15c   : > { %2232 = vst [vmem:[#allocation1 + $0x4] ss:$9 sm:$0xff] %v1703_v60  ;;  %v1754_v60 = vperm.slane %v1319_v50, 7 }
 0x15d   : > { %2233 = vst [vmem:[#allocation1 + $0x5] ss:$9 sm:$0xff] %v1704_v61  ;;  %v1324_v61 = vpop.xlane.xlu2 %1323 }
 0x15e   : > { %2234 = vst [vmem:[#allocation1 + $0x6] ss:$9 sm:$0xff] %v1705_v62  ;;  %v1755_v62 = vperm.slane %v1324_v61, 0  ;;  %v1757_v0 = vperm.slane %v1324_v61, 2 }
 0x15f   : > { %2235 = vst [vmem:[#allocation1 + $0x7] ss:$9 sm:$0xff] %v1706_v63  ;;  %v1756_v63 = vperm.slane %v1324_v61, 1 }
 0x166   : > { %v4106_v6 = vld [vmem:[#allocation1] sm:$0xff] }
 0x167   : > { %2237 = vst [vmem:[#allocation1] ss:$9 sm:$0xff] %v1707_v2  ;;  %2745 = vperm.xlu2 %3264, %v4106_v6   ;;  %v1758_v2 = vperm.slane %v1324_v61, 3  ;;  %v1761_v6 = vperm.slane %v1324_v61, 6 }
 0x168   : > { %2238 = vst [vmem:[#allocation1 + $0x1] ss:$9 sm:$0xff] %v1708_v3 }
 0x169   : > { %2239 = vst [vmem:[#allocation1 + $0x2] ss:$9 sm:$0xff] %v1709_v4  ;;  %v1759_v4 = vperm.slane %v1324_v61, 4 }
 0x16a   : > { %2240 = vst [vmem:[#allocation1 + $0x3] ss:$9 sm:$0xff] %v1710_v5  ;;  %v1760_v5 = vperm.slane %v1324_v61, 5 }
 0x16b   : > { %2241 = vst [vmem:[#allocation1 + $0x4] ss:$9 sm:$0xff] %v1711_v7  ;;  %v1762_v7 = vperm.slane %v1324_v61, 7 }
 0x16c   : > { %2242 = vst [vmem:[#allocation1 + $0x5] ss:$9 sm:$0xff] %v1712_v8  ;;  %v1329_v8 = vpop.xlane.xlu0 %1328 }
 0x16d   : > { %2243 = vst [vmem:[#allocation1 + $0x6] ss:$9 sm:$0xff] %v1713_v9  ;;  %v1763_v9 = vperm.slane %v1329_v8, 0  ;;  %v1765_v11 = vperm.slane %v1329_v8, 2 }
 0x16e   : > { %2244 = vst [vmem:[#allocation1 + $0x7] ss:$9 sm:$0xff] %v1714_v10  ;;  %v1764_v10 = vperm.slane %v1329_v8, 1 }
 0x175   : > { %v4108_v17 = vld [vmem:[#allocation1] sm:$0xff] }
 0x176   : > { %2246 = vst [vmem:[#allocation1] ss:$9 sm:$0xff] %v1715_v12  ;;  %2748 = vperm.xlu1 %3263, %v4108_v17   ;;  %v1768_v17 = vperm.slane %v1329_v8, 5 }
 0x177   : > { %2247 = vst [vmem:[#allocation1 + $0x1] ss:$9 sm:$0xff] %v1716_v14  ;;  %v1766_v14 = vperm.slane %v1329_v8, 3 }
 0x178   : > { %2248 = vst [vmem:[#allocation1 + $0x2] ss:$9 sm:$0xff] %v1717_v16  ;;  %v1767_v16 = vperm.slane %v1329_v8, 4 }
 0x179   : > { %2249 = vst [vmem:[#allocation1 + $0x3] ss:$9 sm:$0xff] %v1718_v18  ;;  %v1769_v18 = vperm.slane %v1329_v8, 6 }
 0x17a   : > { %2250 = vst [vmem:[#allocation1 + $0x4] ss:$9 sm:$0xff] %v1719_v19  ;;  %v1770_v19 = vperm.slane %v1329_v8, 7 }
 0x17b   : > { %2251 = vst [vmem:[#allocation1 + $0x5] ss:$9 sm:$0xff] %v1720_v20  ;;  %v1334_v20 = vpop.xlane.xlu1 %1333 }
 0x17c   : > { %2252 = vst [vmem:[#allocation1 + $0x6] ss:$9 sm:$0xff] %v1721_v21  ;;  %v1771_v21 = vperm.slane %v1334_v20, 0  ;;  %v1773_v24 = vperm.slane %v1334_v20, 2 }
 0x17d   : > { %2253 = vst [vmem:[#allocation1 + $0x7] ss:$9 sm:$0xff] %v1722_v22  ;;  %v1772_v22 = vperm.slane %v1334_v20, 1 }
 0x184   : > { %v2254_v31 = vld [vmem:[#allocation1] sm:$0xff] }
 0x185   : > { %2255 = vst [vmem:[#allocation1] ss:$9 sm:$0xff] %v1723_v27  ;;  %2751 = vperm.xlu0 %3265, %v2254_v31   ;;  %v1774_v27 = vperm.slane %v1334_v20, 3  ;;  %v1777_v31 = vperm.slane %v1334_v20, 6 }
 0x186   : > { %2256 = vst [vmem:[#allocation1 + $0x1] ss:$9 sm:$0xff] %v1724_v28  ;;  %v1775_v28 = vperm.slane %v1334_v20, 4 }
 0x187   : > { %2257 = vst [vmem:[#allocation1 + $0x2] ss:$9 sm:$0xff] %v1725_v29  ;;  %v1776_v29 = vperm.slane %v1334_v20, 5 }
 0x188   : > { %2258 = vst [vmem:[#allocation1 + $0x3] ss:$9 sm:$0xff] %v1726_v32  ;;  %v1778_v32 = vperm.slane %v1334_v20, 7 }
 0x189   : > { %2259 = vst [vmem:[#allocation1 + $0x4] ss:$9 sm:$0xff] %v1727_v33  ;;  %v1339_v33 = vpop.xlane.xlu2 %1338 }
 0x18a   : > { %2260 = vst [vmem:[#allocation1 + $0x5] ss:$9 sm:$0xff] %v1728_v34  ;;  %v1779_v34 = vperm.slane %v1339_v33, 0  ;;  %v1782_v26 = vperm.slane %v1339_v33, 3 }
 0x18b   : > { %2261 = vst [vmem:[#allocation1 + $0x6] ss:$9 sm:$0xff] %v1729_v23  ;;  %v1780_v23 = vperm.slane %v1339_v33, 1 }
 0x18c   : > { %2262 = vst [vmem:[#allocation1 + $0x7] ss:$9 sm:$0xff] %v1730_v13  ;;  %v1781_v13 = vperm.slane %v1339_v33, 2 }
 0x193   : > { %v2263_v37 = vld [vmem:[#allocation1] sm:$0xff] }
 0x194   : > { %2264 = vst [vmem:[#allocation1] ss:$9 sm:$0xff] %v1731_v35  ;;  %2754 = vperm.xlu2 %3264, %v2263_v37   ;;  %v1786_v37 = vperm.slane %v1339_v33, 7 }
 0x195   : > { %2265 = vst [vmem:[#allocation1 + $0x1] ss:$9 sm:$0xff] %v1732_v43  ;;  %v1783_v43 = vperm.slane %v1339_v33, 4 }
 0x196   : > { %2266 = vst [vmem:[#allocation1 + $0x2] ss:$9 sm:$0xff] %v1733_v36  ;;  %v1784_v36 = vperm.slane %v1339_v33, 5 }
 0x197   : > { %2267 = vst [vmem:[#allocation1 + $0x3] ss:$9 sm:$0xff] %v1734_v41  ;;  %v1785_v41 = vperm.slane %v1339_v33, 6 }
 0x198   : > { %2268 = vst [vmem:[#allocation1 + $0x4] ss:$9 sm:$0xff] %v1735_v38  ;;  %v1344_v38 = vpop.xlane.xlu0 %1343 }
 0x199   : > { %2269 = vst [vmem:[#allocation1 + $0x5] ss:$9 sm:$0xff] %v1736_v39  ;;  %v1787_v39 = vperm.slane %v1344_v38, 0 }
 0x19a   : > { %2270 = vst [vmem:[#allocation1 + $0x6] ss:$9 sm:$0xff] %v1737_v40  ;;  %v1788_v40 = vperm.slane %v1344_v38, 1 }
 0x19b   : > { %2271 = vst [vmem:[#allocation1 + $0x7] ss:$9 sm:$0xff] %v1738_v58  ;;  %v1789_v58 = vperm.slane %v1344_v38, 2 }
 0x1a2   : > { %v2272_v46 = vld [vmem:[#allocation1] sm:$0xff] }
 0x1a3   : > { %2273 = vst [vmem:[#allocation1] ss:$9 sm:$0xff] %v1739_v42  ;;  %2757 = vperm.xlu1 %3263, %v2272_v46   ;;  %v1790_v42 = vperm.slane %v1344_v38, 3  ;;  %v1793_v46 = vperm.slane %v1344_v38, 6 }
 0x1a4   : > { %2274 = vst [vmem:[#allocation1 + $0x1] ss:$9 sm:$0xff] %v1740_v44  ;;  %v1791_v44 = vperm.slane %v1344_v38, 4 }
 0x1a5   : > { %2275 = vst [vmem:[#allocation1 + $0x2] ss:$9 sm:$0xff] %v1741_v45  ;;  %v1792_v45 = vperm.slane %v1344_v38, 5 }
 0x1a6   : > { %2276 = vst [vmem:[#allocation1 + $0x3] ss:$9 sm:$0xff] %v1742_v47  ;;  %v1794_v47 = vperm.slane %v1344_v38, 7 }
 0x1a7   : > { %2277 = vst [vmem:[#allocation1 + $0x4] ss:$9 sm:$0xff] %v1743_v48  ;;  %v1349_v48 = vpop.xlane.xlu1 %1348 }
 0x1a8   : > { %2278 = vst [vmem:[#allocation1 + $0x5] ss:$9 sm:$0xff] %v1744_v15  ;;  %v1795_v15 = vperm.slane %v1349_v48, 0 }
 0x1a9   : > { %2279 = vst [vmem:[#allocation1 + $0x6] ss:$9 sm:$0xff] %v1745_v30  ;;  %v1796_v30 = vperm.slane %v1349_v48, 1 }
 0x1aa   : > { %2280 = vst [vmem:[#allocation1 + $0x7] ss:$9 sm:$0xff] %v1746_v49  ;;  %v1797_v49 = vperm.slane %v1349_v48, 2 }
 0x1b1   : > { %v2281_v54 = vld [vmem:[#allocation1] sm:$0xff] }
 0x1b2   : > { %2282 = vst [vmem:[#allocation1] ss:$9 sm:$0xff] %v1747_v51  ;;  %2760 = vperm.xlu0 %3265, %v2281_v54   ;;  %v1798_v51 = vperm.slane %v1349_v48, 3  ;;  %v1801_v54 = vperm.slane %v1349_v48, 6 }
 0x1b3   : > { %2283 = vst [vmem:[#allocation1 + $0x1] ss:$9 sm:$0xff] %v1748_v52  ;;  %v1799_v52 = vperm.slane %v1349_v48, 4 }
 0x1b4   : > { %2284 = vst [vmem:[#allocation1 + $0x2] ss:$9 sm:$0xff] %v1749_v53  ;;  %v1800_v53 = vperm.slane %v1349_v48, 5 }
 0x1b5   : > { %2285 = vst [vmem:[#allocation1 + $0x3] ss:$9 sm:$0xff] %v1750_v55  ;;  %v1802_v55 = vperm.slane %v1349_v48, 7 }
 0x1b6   : > { %2286 = vst [vmem:[#allocation1 + $0x4] ss:$9 sm:$0xff] %v1751_v56  ;;  %v1354_v56 = vpop.xlane.xlu2 %1353 }
 0x1b7   : > { %2287 = vst [vmem:[#allocation1 + $0x5] ss:$9 sm:$0xff] %v1752_v57  ;;  %v1803_v57 = vperm.slane %v1354_v56, 0  ;;  %v1806_v61 = vperm.slane %v1354_v56, 3 }
 0x1b8   : > { %2288 = vst [vmem:[#allocation1 + $0x6] ss:$9 sm:$0xff] %v1753_v59  ;;  %v1804_v59 = vperm.slane %v1354_v56, 1 }
 0x1b9   : > { %2289 = vst [vmem:[#allocation1 + $0x7] ss:$9 sm:$0xff] %v1754_v60  ;;  %v1805_v60 = vperm.slane %v1354_v56, 2 }
 0x1c0   : > { %v2290_v3 = vld [vmem:[#allocation1] sm:$0xff] }
 0x1c1   : > { %2291 = vst [vmem:[#allocation1] ss:$9 sm:$0xff] %v1755_v62  ;;  %2763 = vperm.xlu2 %3264, %v2290_v3   ;;  %v1810_v3 = vperm.slane %v1354_v56, 7 }
 0x1c2   : > { %2292 = vst [vmem:[#allocation1 + $0x1] ss:$9 sm:$0xff] %v1756_v63  ;;  %v1807_v63 = vperm.slane %v1354_v56, 4 }
 0x1c3   : > { %2293 = vst [vmem:[#allocation1 + $0x2] ss:$9 sm:$0xff] %v1757_v0  ;;  %v1808_v0 = vperm.slane %v1354_v56, 5 }
 0x1c4   : > { %2294 = vst [vmem:[#allocation1 + $0x3] ss:$9 sm:$0xff] %v1758_v2  ;;  %v1809_v2 = vperm.slane %v1354_v56, 6 }
 0x1c5   : > { %2295 = vst [vmem:[#allocation1 + $0x4] ss:$9 sm:$0xff] %v1759_v4  ;;  %v1359_v4 = vpop.xlane.xlu0 %1358 }
 0x1c6   : > { %2296 = vst [vmem:[#allocation1 + $0x5] ss:$9 sm:$0xff] %v1760_v5  ;;  %v1811_v5 = vperm.slane %v1359_v4, 0 }
 0x1c7   : > { %2297 = vst [vmem:[#allocation1 + $0x6] ss:$9 sm:$0xff] %v1761_v6  ;;  %v1812_v6 = vperm.slane %v1359_v4, 1 }
 0x1c8   : > { %2298 = vst [vmem:[#allocation1 + $0x7] ss:$9 sm:$0xff] %v1762_v7  ;;  %v1813_v7 = vperm.slane %v1359_v4, 2 }
 0x1cf   : > { %v2299_v12 = vld [vmem:[#allocation1] sm:$0xff] }
 0x1d0   : > { %2300 = vst [vmem:[#allocation1] ss:$9 sm:$0xff] %v1763_v9  ;;  %2766 = vperm.xlu1 %3263, %v2299_v12   ;;  %v1814_v9 = vperm.slane %v1359_v4, 3  ;;  %v1817_v12 = vperm.slane %v1359_v4, 6 }
 0x1d1   : > { %2301 = vst [vmem:[#allocation1 + $0x1] ss:$9 sm:$0xff] %v1764_v10  ;;  %v1815_v10 = vperm.slane %v1359_v4, 4 }
 0x1d2   : > { %2302 = vst [vmem:[#allocation1 + $0x2] ss:$9 sm:$0xff] %v1765_v11  ;;  %v1816_v11 = vperm.slane %v1359_v4, 5 }
 0x1d3   : > { %2303 = vst [vmem:[#allocation1 + $0x3] ss:$9 sm:$0xff] %v1766_v14  ;;  %v1818_v14 = vperm.slane %v1359_v4, 7 }
 0x1d4   : > { %2304 = vst [vmem:[#allocation1 + $0x4] ss:$9 sm:$0xff] %v1767_v16  ;;  %v1364_v16 = vpop.xlane.xlu1 %1363 }
 0x1d5   : > { %2305 = vst [vmem:[#allocation1 + $0x5] ss:$9 sm:$0xff] %v1768_v17  ;;  %v1819_v17 = vperm.slane %v1364_v16, 0 }
 0x1d6   : > { %2306 = vst [vmem:[#allocation1 + $0x6] ss:$9 sm:$0xff] %v1769_v18  ;;  %v1820_v18 = vperm.slane %v1364_v16, 1 }
 0x1d7   : > { %2307 = vst [vmem:[#allocation1 + $0x7] ss:$9 sm:$0xff] %v1770_v19  ;;  %v1821_v19 = vperm.slane %v1364_v16, 2 }
 0x1de   : > { %v2308_v25 = vld [vmem:[#allocation1] sm:$0xff] }
 0x1df   : > { %2309 = vst [vmem:[#allocation1] ss:$9 sm:$0xff] %v1771_v21  ;;  %2769 = vperm.xlu0 %3265, %v2308_v25   ;;  %v1822_v21 = vperm.slane %v1364_v16, 3  ;;  %v1825_v25 = vperm.slane %v1364_v16, 6 }
 0x1e0   : > { %2310 = vst [vmem:[#allocation1 + $0x1] ss:$9 sm:$0xff] %v1772_v22  ;;  %v1823_v22 = vperm.slane %v1364_v16, 4 }
 0x1e1   : > { %2311 = vst [vmem:[#allocation1 + $0x2] ss:$9 sm:$0xff] %v1773_v24  ;;  %v1824_v24 = vperm.slane %v1364_v16, 5 }
 0x1e2   : > { %2312 = vst [vmem:[#allocation1 + $0x3] ss:$9 sm:$0xff] %v1774_v27  ;;  %v1826_v27 = vperm.slane %v1364_v16, 7 }
 0x1e3   : > { %2313 = vst [vmem:[#allocation1 + $0x4] ss:$9 sm:$0xff] %v1775_v28  ;;  %v1369_v28 = vpop.xlane.xlu2 %1368 }
 0x1e4   : > { %2314 = vst [vmem:[#allocation1 + $0x5] ss:$9 sm:$0xff] %v1776_v29  ;;  %v1827_v29 = vperm.slane %v1369_v28, 0  ;;  %v1830_v33 = vperm.slane %v1369_v28, 3 }
 0x1e5   : > { %2315 = vst [vmem:[#allocation1 + $0x6] ss:$9 sm:$0xff] %v1777_v31  ;;  %v1828_v31 = vperm.slane %v1369_v28, 1 }
 0x1e6   : > { %2316 = vst [vmem:[#allocation1 + $0x7] ss:$9 sm:$0xff] %v1778_v32  ;;  %v1829_v32 = vperm.slane %v1369_v28, 2 }
 0x1ed   : > { %v2317_v35 = vld [vmem:[#allocation1] sm:$0xff] }
 0x1ee   : > { %2318 = vst [vmem:[#allocation1] ss:$9 sm:$0xff] %v1779_v34  ;;  %2772 = vperm.xlu2 %3264, %v2317_v35   ;;  %v1834_v35 = vperm.slane %v1369_v28, 7 }
 0x1ef   : > { %2319 = vst [vmem:[#allocation1 + $0x1] ss:$9 sm:$0xff] %v1780_v23  ;;  %v1831_v23 = vperm.slane %v1369_v28, 4 }
 0x1f0   : > { %2320 = vst [vmem:[#allocation1 + $0x2] ss:$9 sm:$0xff] %v1781_v13  ;;  %v1832_v13 = vperm.slane %v1369_v28, 5 }
 0x1f1   : > { %2321 = vst [vmem:[#allocation1 + $0x3] ss:$9 sm:$0xff] %v1782_v26  ;;  %v1833_v26 = vperm.slane %v1369_v28, 6 }
 0x1f2   : > { %2322 = vst [vmem:[#allocation1 + $0x4] ss:$9 sm:$0xff] %v1783_v43  ;;  %v4122_v43 = vpop.xlane.xlu2 %1383 }
 0x1f3   : > { %2323 = vst [vmem:[#allocation1 + $0x5] ss:$9 sm:$0xff] %v1784_v36  ;;  %v1374_v36 = vpop.xlane.xlu0 %1373  ;;  %v1855_v4 = vperm.slane %v4122_v43, 4 }
 0x1f4   : > { %2324 = vst [vmem:[#allocation1 + $0x6] ss:$9 sm:$0xff] %v1785_v41  ;;  %v1835_v41 = vperm.slane %v1374_v36, 0 }
 0x1f5   : > { %2325 = vst [vmem:[#allocation1 + $0x7] ss:$9 sm:$0xff] %v1786_v37  ;;  %v1836_v37 = vperm.slane %v1374_v36, 1 }
 0x1fa   : > { %v4124_v38 = vpop.xlane.xlu2 %1398 }
 0x1fc   : > { %v2326_v1 = vld [vmem:[#allocation1] sm:$0xff] }
 0x1fd   : > { %2327 = vst [vmem:[#allocation1] ss:$9 sm:$0xff] %v1787_v39  ;;  %2775 = vperm.xlu1 %3263, %v2326_v1   ;;  %v1837_v39 = vperm.slane %v1374_v36, 2  ;;  %v1839_v1 = vperm.slane %v1374_v36, 4 }
 0x1fe   : > { %2328 = vst [vmem:[#allocation1 + $0x1] ss:$9 sm:$0xff] %v1788_v40 }
 0x1ff   : > { %2329 = vst [vmem:[#allocation1 + $0x2] ss:$9 sm:$0xff] %v1789_v58  ;;  %v1838_v58 = vperm.slane %v1374_v36, 3 }
 0x200   : > { %2330 = vst [vmem:[#allocation1 + $0x3] ss:$9 sm:$0xff] %v1790_v42  ;;  %v1840_v42 = vperm.slane %v1374_v36, 5 }
 0x201   : > { %2331 = vst [vmem:[#allocation1 + $0x4] ss:$9 sm:$0xff] %v1791_v44  ;;  %v1841_v44 = vperm.slane %v1374_v36, 6 }
 0x202   : > { %2332 = vst [vmem:[#allocation1 + $0x5] ss:$9 sm:$0xff] %v1792_v45  ;;  %v1842_v45 = vperm.slane %v1374_v36, 7 }
 0x203   : > { %2333 = vst [vmem:[#allocation1 + $0x6] ss:$9 sm:$0xff] %v1793_v46  ;;  %v4126_v46 = vpop.xlane.xlu2 %1413 }
 0x204   : > { %2334 = vst [vmem:[#allocation1 + $0x7] ss:$9 sm:$0xff] %v1794_v47  ;;  %v1379_v47 = vpop.xlane.xlu1 %1378 }
 0x205   : > { %v1843_v48 = vperm.slane %v1379_v47, 0 }
 0x20b   : > { %v2335_v50 = vld [vmem:[#allocation1] sm:$0xff]  ;;  %v4128_v56 = vpop.xlane.xlu2 %1428 }
 0x20c   : > { %2336 = vst [vmem:[#allocation1] ss:$9 sm:$0xff] %v1795_v15  ;;  %2778 = vperm.xlu0 %3265, %v2335_v50   ;;  %v1844_v15 = vperm.slane %v1379_v47, 1 }
 0x20d   : > { %2337 = vst [vmem:[#allocation1 + $0x1] ss:$9 sm:$0xff] %v1796_v30  ;;  %v1845_v30 = vperm.slane %v1379_v47, 2 }
 0x20e   : > { %2338 = vst [vmem:[#allocation1 + $0x2] ss:$9 sm:$0xff] %v1797_v49  ;;  %v1389_v49 = vpop.xlane.xlu0 %1388 }
 0x20f   : > { %2339 = vst [vmem:[#allocation1 + $0x3] ss:$9 sm:$0xff] %v1798_v51  ;;  %v1846_v51 = vperm.slane %v1379_v47, 3 }
 0x210   : > { %2340 = vst [vmem:[#allocation1 + $0x4] ss:$9 sm:$0xff] %v1799_v52  ;;  %v1847_v52 = vperm.slane %v1379_v47, 4 }
 0x211   : > { %2341 = vst [vmem:[#allocation1 + $0x5] ss:$9 sm:$0xff] %v1800_v53  ;;  %v1848_v53 = vperm.slane %v1379_v47, 5 }
 0x212   : > { %2342 = vst [vmem:[#allocation1 + $0x6] ss:$9 sm:$0xff] %v1801_v54  ;;  %v1849_v54 = vperm.slane %v1379_v47, 6 }
 0x213   : > { %2343 = vst [vmem:[#allocation1 + $0x7] ss:$9 sm:$0xff] %v1802_v55  ;;  %v1850_v55 = vperm.slane %v1379_v47, 7  ;;  %v1880_v47 = vperm.slane %v4124_v38, 5 }
 0x21a   : > { %v2344_v62 = vld [vmem:[#allocation1] sm:$0xff] }
 0x21b   : > { %2345 = vst [vmem:[#allocation1] ss:$9 sm:$0xff] %v1803_v57  ;;  %2781 = vperm.xlu2 %3264, %v2344_v62   ;;  %v4130_v57 = vpop.xlane.xlu1 %1393  ;;  %v1853_v62 = vperm.slane %v4122_v43, 2 }
 0x21c   : > { %2346 = vst [vmem:[#allocation1 + $0x1] ss:$9 sm:$0xff] %v1804_v59  ;;  %v4132_v59 = vpop.xlane.xlu0 %1403  ;;  %v1867_v28 = vperm.slane %v4130_v57, 0 }
 0x21d   : > { %2347 = vst [vmem:[#allocation1 + $0x2] ss:$9 sm:$0xff] %v1805_v60  ;;  %v1851_v60 = vperm.slane %v4122_v43, 0 }
 0x21e   : > { %2348 = vst [vmem:[#allocation1 + $0x3] ss:$9 sm:$0xff] %v1806_v61  ;;  %v1852_v61 = vperm.slane %v4122_v43, 1 }
 0x21f   : > { %2349 = vst [vmem:[#allocation1 + $0x4] ss:$9 sm:$0xff] %v1807_v63  ;;  %v4137_v63 = vpop.xlane.xlu2 %1443 }
 0x220   : > { %2350 = vst [vmem:[#allocation1 + $0x5] ss:$9 sm:$0xff] %v1808_v0 }
 0x221   : > { %2351 = vst [vmem:[#allocation1 + $0x6] ss:$9 sm:$0xff] %v1809_v2  ;;  %v1854_v2 = vperm.slane %v4122_v43, 3 }
 0x222   : > { %2352 = vst [vmem:[#allocation1 + $0x7] ss:$9 sm:$0xff] %v1810_v3 }
 0x223   : > { %v4139_v0 = vpop.xlane.xlu1 %1408 }
 0x229   : > { %v2353_v8 = vld [vmem:[#allocation1] sm:$0xff] }
 0x22a   : > { %2354 = vst [vmem:[#allocation1] ss:$9 sm:$0xff] %v1811_v5  ;;  %2784 = vperm.xlu1 %3263, %v2353_v8   ;;  %v1856_v5 = vperm.slane %v4122_v43, 5  ;;  %v4146_v8 = vpop.xlane.xlu0 %1418 }
 0x22b   : > { %2355 = vst [vmem:[#allocation1 + $0x1] ss:$9 sm:$0xff] %v1812_v6  ;;  %v1857_v6 = vperm.slane %v4122_v43, 6 }
 0x22c   : > { %2356 = vst [vmem:[#allocation1 + $0x2] ss:$9 sm:$0xff] %v1813_v7  ;;  %v1858_v7 = vperm.slane %v4122_v43, 7  ;;  %v1874_v43 = vperm.slane %v4130_v57, 7 }
 0x22d   : > { %2357 = vst [vmem:[#allocation1 + $0x3] ss:$9 sm:$0xff] %v1814_v9  ;;  %v4148_v9 = vpop.xlane.xlu2 %1458 }
 0x22e   : > { %2358 = vst [vmem:[#allocation1 + $0x4] ss:$9 sm:$0xff] %v1815_v10  ;;  %v4150_v10 = vpop.xlane.xlu1 %1423 }
 0x22f   : > { %2359 = vst [vmem:[#allocation1 + $0x5] ss:$9 sm:$0xff] %v1816_v11  ;;  %v1859_v11 = vperm.slane %v1389_v49, 0 }
 0x230   : > { %2360 = vst [vmem:[#allocation1 + $0x6] ss:$9 sm:$0xff] %v1817_v12  ;;  %v1860_v12 = vperm.slane %v1389_v49, 1 }
 0x231   : > { %2361 = vst [vmem:[#allocation1 + $0x7] ss:$9 sm:$0xff] %v1818_v14  ;;  %v1861_v14 = vperm.slane %v1389_v49, 2 }
 0x232   : > { %v4152_v16 = vpop.xlane.xlu0 %1433 }
 0x238   : > { %v2362_v20 = vld [vmem:[#allocation1] sm:$0xff] }
 0x239   : > { %2363 = vst [vmem:[#allocation1] ss:$9 sm:$0xff] %v1819_v17  ;;  %2787 = vperm.xlu0 %3265, %v2362_v20   ;;  %v1864_v20 = vperm.slane %v1389_v49, 5 }
 0x23a   : > { %2364 = vst [vmem:[#allocation1 + $0x1] ss:$9 sm:$0xff] %v1820_v18  ;;  %v1862_v18 = vperm.slane %v1389_v49, 3 }
 0x23b   : > { %2365 = vst [vmem:[#allocation1 + $0x2] ss:$9 sm:$0xff] %v1821_v19  ;;  %v1863_v19 = vperm.slane %v1389_v49, 4 }
 0x23c   : > { %2366 = vst [vmem:[#allocation1 + $0x3] ss:$9 sm:$0xff] %v1822_v21  ;;  %v1865_v21 = vperm.slane %v1389_v49, 6 }
 0x23d   : > { %2367 = vst [vmem:[#allocation1 + $0x4] ss:$9 sm:$0xff] %v1823_v22  ;;  %v1866_v22 = vperm.slane %v1389_v49, 7 }
 0x23e   : > { %2368 = vst [vmem:[#allocation1 + $0x5] ss:$9 sm:$0xff] %v1824_v24  ;;  %v4154_v24 = vpop.xlane.xlu2 %1473 }
 0x23f   : > { %2369 = vst [vmem:[#allocation1 + $0x6] ss:$9 sm:$0xff] %v1825_v25  ;;  %v4156_v25 = vpop.xlane.xlu1 %1438 }
 0x240   : > { %2370 = vst [vmem:[#allocation1 + $0x7] ss:$9 sm:$0xff] %v1826_v27  ;;  %v4158_v27 = vpop.xlane.xlu0 %1448 }
 0x247   : > { %v2371_v34 = vld [vmem:[#allocation1] sm:$0xff] }
 0x248   : > { %2372 = vst [vmem:[#allocation1] ss:$9 sm:$0xff] %v1827_v29  ;;  %2790 = vperm.xlu2 %3264, %v2371_v34   ;;  %v1868_v29 = vperm.slane %v4130_v57, 1  ;;  %v4172_v36 = vpop.xlane.xlu0 %1463 }
 0x249   : > { %2373 = vst [vmem:[#allocation1 + $0x1] ss:$9 sm:$0xff] %v1828_v31  ;;  %v1869_v31 = vperm.slane %v4130_v57, 2 }
 0x24a   : > { %2374 = vst [vmem:[#allocation1 + $0x2] ss:$9 sm:$0xff] %v1829_v32  ;;  %v4163_v32 = vpop.xlane.xlu2 %1488 }
 0x24b   : > { %2375 = vst [vmem:[#allocation1 + $0x3] ss:$9 sm:$0xff] %v1830_v33  ;;  %v4165_v33 = vpop.xlane.xlu1 %1453 }
 0x24c   : > { %2376 = vst [vmem:[#allocation1 + $0x4] ss:$9 sm:$0xff] %v1831_v23  ;;  %v1870_v23 = vperm.slane %v4130_v57, 3 }
 0x24d   : > { %2377 = vst [vmem:[#allocation1 + $0x5] ss:$9 sm:$0xff] %v1832_v13  ;;  %v1871_v13 = vperm.slane %v4130_v57, 4 }
 0x24e   : > { %2378 = vst [vmem:[#allocation1 + $0x6] ss:$9 sm:$0xff] %v1833_v26  ;;  %v1872_v26 = vperm.slane %v4130_v57, 5 }
 0x24f   : > { %2379 = vst [vmem:[#allocation1 + $0x7] ss:$9 sm:$0xff] %v1834_v35  ;;  %v1873_v35 = vperm.slane %v4130_v57, 6  ;;  %v1886_v57 = vperm.slane %v4132_v59, 3 }
 0x256   : > { %v2380_v40 = vld [vmem:[#allocation1] sm:$0xff] }
 0x257   : > { %2381 = vst [vmem:[#allocation1] ss:$9 sm:$0xff] %v1835_v41  ;;  %2793 = vperm.xlu1 %3263, %v2380_v40   ;;  %v4174_v41 = vpop.xlane.xlu2 %1503  ;;  %v1876_v40 = vperm.slane %v4124_v38, 1 }
 0x258   : > { %2382 = vst [vmem:[#allocation1 + $0x1] ss:$9 sm:$0xff] %v1836_v37  ;;  %v4176_v37 = vpop.xlane.xlu1 %1468 }
 0x259   : > { %2383 = vst [vmem:[#allocation1 + $0x2] ss:$9 sm:$0xff] %v1837_v39  ;;  %v1875_v39 = vperm.slane %v4124_v38, 0 }
 0x25a   : > { %2384 = vst [vmem:[#allocation1 + $0x3] ss:$9 sm:$0xff] %v1838_v58  ;;  %v1877_v58 = vperm.slane %v4124_v38, 2 }
 0x25b   : > { %2385 = vst [vmem:[#allocation1 + $0x4] ss:$9 sm:$0xff] %v1839_v1  ;;  %v4181_v1 = vpop.xlane.xlu0 %1478 }
 0x25c   : > { %2386 = vst [vmem:[#allocation1 + $0x5] ss:$9 sm:$0xff] %v1840_v42  ;;  %v1878_v42 = vperm.slane %v4124_v38, 3 }
 0x25d   : > { %2387 = vst [vmem:[#allocation1 + $0x6] ss:$9 sm:$0xff] %v1841_v44 }
 0x25e   : > { %2388 = vst [vmem:[#allocation1 + $0x7] ss:$9 sm:$0xff] %v1842_v45  ;;  %v1879_v45 = vperm.slane %v4124_v38, 4 }
 0x260   : > { %v4190_v49 = vpop.xlane.xlu1 %1483 }
 0x265   : > { %v2389_v50 = vld [vmem:[#allocation1] sm:$0xff] }
 0x266   : > { %2390 = vst [vmem:[#allocation1] ss:$9 sm:$0xff] %v1843_v48  ;;  %2796 = vperm.xlu0 %3265, %v2389_v50   ;;  %v1881_v48 = vperm.slane %v4124_v38, 6  ;;  %v4192_v50 = vpop.xlane.xlu0 %1493 }
 0x267   : > { %2391 = vst [vmem:[#allocation1 + $0x1] ss:$9 sm:$0xff] %v1844_v15  ;;  %v1882_v15 = vperm.slane %v4124_v38, 7 }
 0x268   : > { %2392 = vst [vmem:[#allocation1 + $0x2] ss:$9 sm:$0xff] %v1845_v30  ;;  %v4188_v30 = vpop.xlane.xlu2 %1518  ;;  %v4199_v38 = vpop.xlane.xlu1 %1498 }
 0x269   : > { %2393 = vst [vmem:[#allocation1 + $0x3] ss:$9 sm:$0xff] %v1846_v51  ;;  %v1883_v51 = vperm.slane %v4132_v59, 0 }
 0x26a   : > { %2394 = vst [vmem:[#allocation1 + $0x4] ss:$9 sm:$0xff] %v1847_v52  ;;  %v1884_v52 = vperm.slane %v4132_v59, 1 }
 0x26b   : > { %2395 = vst [vmem:[#allocation1 + $0x5] ss:$9 sm:$0xff] %v1848_v53  ;;  %v1885_v53 = vperm.slane %v4132_v59, 2 }
 0x26c   : > { %2396 = vst [vmem:[#allocation1 + $0x6] ss:$9 sm:$0xff] %v1849_v54 }
 0x26d   : > { %2397 = vst [vmem:[#allocation1 + $0x7] ss:$9 sm:$0xff] %v1850_v55 }
 0x270   : > { %v4197_v54 = vpop.xlane.xlu2 %1533 }
 0x274   : > { %v2398_v3 = vld [vmem:[#allocation1] sm:$0xff] }
 0x275   : > { %2399 = vst [vmem:[#allocation1] ss:$9 sm:$0xff] %v1851_v60  ;;  %2799 = vperm.xlu2 %3264, %v2398_v3   ;;  %v1887_v60 = vperm.slane %v4132_v59, 4  ;;  %v4206_v3 = vpop.xlane.xlu0 %1508 }
 0x276   : > { %2400 = vst [vmem:[#allocation1 + $0x1] ss:$9 sm:$0xff] %v1852_v61  ;;  %v1888_v61 = vperm.slane %v4132_v59, 5 }
 0x277   : > { %2401 = vst [vmem:[#allocation1 + $0x2] ss:$9 sm:$0xff] %v1853_v62  ;;  %v1889_v62 = vperm.slane %v4132_v59, 6 }
 0x278   : > { %2402 = vst [vmem:[#allocation1 + $0x3] ss:$9 sm:$0xff] %v1854_v2  ;;  %v1890_v2 = vperm.slane %v4132_v59, 7 }
 0x279   : > { %2403 = vst [vmem:[#allocation1 + $0x4] ss:$9 sm:$0xff] %v1855_v4  ;;  %v4208_v4 = vpop.xlane.xlu2 %1548 }
 0x27a   : > { %2404 = vst [vmem:[#allocation1 + $0x5] ss:$9 sm:$0xff] %v1856_v5  ;;  %v4210_v5 = vpop.xlane.xlu1 %1513 }
 0x27b   : > { %2405 = vst [vmem:[#allocation1 + $0x6] ss:$9 sm:$0xff] %v1857_v6  ;;  %v1891_v6 = vperm.slane %v4139_v0, 0 }
 0x27c   : > { %2406 = vst [vmem:[#allocation1 + $0x7] ss:$9 sm:$0xff] %v1858_v7 }
 0x27d   : > { %v4213_v7 = vpop.xlane.xlu0 %1523 }
 0x283   : > { %v2407_v17 = vld [vmem:[#allocation1] sm:$0xff] }
 0x284   : > { %2408 = vst [vmem:[#allocation1] ss:$9 sm:$0xff] %v1859_v11  ;;  %2802 = vperm.xlu1 %3263, %v2407_v17   ;;  %v1892_v11 = vperm.slane %v4139_v0, 1  ;;  %v1895_v17 = vperm.slane %v4139_v0, 4 }
 0x285   : > { %2409 = vst [vmem:[#allocation1 + $0x1] ss:$9 sm:$0xff] %v1860_v12  ;;  %v1893_v12 = vperm.slane %v4139_v0, 2 }
 0x286   : > { %2410 = vst [vmem:[#allocation1 + $0x2] ss:$9 sm:$0xff] %v1861_v14  ;;  %v1894_v14 = vperm.slane %v4139_v0, 3 }
 0x287   : > { %2411 = vst [vmem:[#allocation1 + $0x3] ss:$9 sm:$0xff] %v1862_v18  ;;  %v1896_v18 = vperm.slane %v4139_v0, 5 }
 0x288   : > { %2412 = vst [vmem:[#allocation1 + $0x4] ss:$9 sm:$0xff] %v1863_v19  ;;  %v4220_v19 = vpop.xlane.xlu1 %1528 }
 0x289   : > { %2413 = vst [vmem:[#allocation1 + $0x5] ss:$9 sm:$0xff] %v1864_v20  ;;  %v1897_v20 = vperm.slane %v4139_v0, 6 }
 0x28a   : > { %2414 = vst [vmem:[#allocation1 + $0x6] ss:$9 sm:$0xff] %v1865_v21  ;;  %v2719_v21 = vpop.permute.xlu2 %2718 }
 0x28b   : > { %2415 = vst [vmem:[#allocation1 + $0x7] ss:$9 sm:$0xff] %v1866_v22  ;;  %v1898_v22 = vperm.slane %v4139_v0, 7  ;;  %v1901_v0 = vperm.slane %v4126_v46, 2 }
 0x292   : > { %v2416_v34 = vld [vmem:[#allocation1] sm:$0xff] }
 0x293   : > { %2417 = vst [vmem:[#allocation1] ss:$9 sm:$0xff] %v1867_v28  ;;  %2805 = vperm.xlu0 %3265, %v2416_v34   ;;  %v4224_v28 = vpop.xlane.xlu0 %1538 }
 0x294   : > { %2418 = vst [vmem:[#allocation1 + $0x1] ss:$9 sm:$0xff] %v1868_v29  ;;  %v2906_v29 = vlaneseq }
 0x295   : > { %2419 = vst [vmem:[#allocation1 + $0x2] ss:$9 sm:$0xff] %v1869_v31  ;;  %v4226_v31 = vpop.xlane.xlu1 %1543 }
 0x296   : > { %2420 = vst [vmem:[#allocation1 + $0x3] ss:$9 sm:$0xff] %v1870_v23  ;;  %v4229_v34 = vand.u32 127, %v2906_v29  ;;  %v1899_v23 = vperm.slane %v4126_v46, 0 }
 0x297   : > { %2421 = vst [vmem:[#allocation1 + $0x4] ss:$9 sm:$0xff] %v1871_v13  ;;  %v1900_v13 = vperm.slane %v4126_v46, 1 }
 0x298   : > { %2422 = vst [vmem:[#allocation1 + $0x5] ss:$9 sm:$0xff] %v1872_v26  ;;  %v2725_v26 = vpop.permute.xlu2 %2724 }
 0x299   : > { %2423 = vst [vmem:[#allocation1 + $0x6] ss:$9 sm:$0xff] %v1873_v35 }
 0x29a   : > { %2424 = vst [vmem:[#allocation1 + $0x7] ss:$9 sm:$0xff] %v1874_v43  ;;  %v1902_v43 = vperm.slane %v4126_v46, 3 }
 0x29b   : > { %v4233_v35 = vpop.xlane.xlu0 %1553 }
 0x2a1   : > { %v2425_v44 = vld [vmem:[#allocation1] sm:$0xff] }
 0x2a2   : > { %2426 = vst [vmem:[#allocation1] ss:$9 sm:$0xff] %v1875_v39  ;;  %2808 = vperm.xlu2 %3264, %v2425_v44   ;;  %v1905_v44 = vperm.slane %v4126_v46, 6 }
 0x2a3   : > { %2427 = vst [vmem:[#allocation1 + $0x1] ss:$9 sm:$0xff] %v1876_v40  ;;  %v4238_v40 = vadd.s32 4294967288, %v4229_v34 }
 0x2a4   : > { %2428 = vst [vmem:[#allocation1 + $0x2] ss:$9 sm:$0xff] %v1877_v58  ;;  %v1903_v58 = vperm.slane %v4126_v46, 4 }
 0x2a5   : > { %2429 = vst [vmem:[#allocation1 + $0x3] ss:$9 sm:$0xff] %v1878_v42  ;;  %v1904_v42 = vperm.slane %v4126_v46, 5 }
 0x2a6   : > { %2430 = vst [vmem:[#allocation1 + $0x4] ss:$9 sm:$0xff] %v1879_v45  ;;  %v2716_v45 = vpop.permute.xlu1 %2715 }
 0x2a7   : > { %2431 = vst [vmem:[#allocation1 + $0x5] ss:$9 sm:$0xff] %v1880_v47  ;;  %v1906_v47 = vperm.slane %v4126_v46, 7 }
 0x2a8   : > { %2432 = vst [vmem:[#allocation1 + $0x6] ss:$9 sm:$0xff] %v1881_v48  ;;  %v2910_v48 = vperm.slane %v2719_v21, %v4238_v40 }
 0x2a9   : > { %2433 = vst [vmem:[#allocation1 + $0x7] ss:$9 sm:$0xff] %v1882_v15  ;;  %v4246_v15 = vadd.s32 4294967272, %v4229_v34 }
 0x2b0   : > { %v2434_v55 = vld [vmem:[#allocation1] sm:$0xff] }
 0x2b1   : > { %2435 = vst [vmem:[#allocation1] ss:$9 sm:$0xff] %v1883_v51  ;;  %2811 = vperm.xlu1 %3263, %v2434_v55   ;;  %v2908_v51 = vperm.slane %v2716_v45, %v4229_v34  ;;  %v2722_v55 = vpop.permute.xlu0 %2721 }
 0x2b2   : > { %2436 = vst [vmem:[#allocation1 + $0x1] ss:$9 sm:$0xff] %v1884_v52  ;;  %v4250_v52 = vadd.s32 4294967280, %v4229_v34 }
 0x2b3   : > { %2437 = vst [vmem:[#allocation1 + $0x2] ss:$9 sm:$0xff] %v1885_v53  ;;  %v2912_v53 = vsel %vm2911_vm0, %v2910_v48, %v2908_v51 }
 0x2b4   : > { %2438 = vst [vmem:[#allocation1 + $0x3] ss:$9 sm:$0xff] %v1886_v57  ;;  %v2914_v46 = vperm.slane %v2722_v55, %v4250_v52  ;;  %v2918_v57 = vperm.slane %v2725_v26, %v4246_v15  ;;  %v1912_v26 = vperm.slane %v4146_v8, 5  ;;  %v1915_v55 = vperm.slane %v4150_v10, 0 }
 0x2b5   : > { %2439 = vst [vmem:[#allocation1 + $0x4] ss:$9 sm:$0xff] %v1887_v60  ;;  %v2731_v60 = vpop.permute.xlu2 %2730 }
 0x2b6   : > { %2440 = vst [vmem:[#allocation1 + $0x5] ss:$9 sm:$0xff] %v1888_v61  ;;  %v4256_v61 = vadd.s32 4294967256, %v4229_v34 }
 0x2b7   : > { %2441 = vst [vmem:[#allocation1 + $0x6] ss:$9 sm:$0xff] %v1889_v62  ;;  %v2916_v62 = vsel %vm2915_vm1, %v2914_v46, %v2912_v53  ;;  %v4286_v53 = vadd.s32 4294967224, %v4229_v34 }
 0x2b8   : > { %2442 = vst [vmem:[#allocation1 + $0x7] ss:$9 sm:$0xff] %v1890_v2  ;;  %v4260_v2 = vadd.s32 4294967264, %v4229_v34 }
 0x2b9   : > { %v2743_v46 = vpop.permute.xlu0 %2742 }
 0x2bf   : > { %v2443_v59 = vld [vmem:[#allocation1] sm:$0xff] }
 0x2c0   : > { %2444 = vst [vmem:[#allocation1] ss:$9 sm:$0xff] %v1891_v6  ;;  %2814 = vperm.xlu0 %3265, %v2443_v59   ;;  %v2920_v6 = vsel %vm2919_vm2, %v2918_v57, %v2916_v62  ;;  %v4293_v57 = vadd.s32 4294967216, %v4229_v34  ;;  %v1916_v62 = vperm.slane %v4150_v10, 1 }
 0x2c1   : > { %2445 = vst [vmem:[#allocation1 + $0x1] ss:$9 sm:$0xff] %v1892_v11  ;;  %v2728_v11 = vpop.permute.xlu1 %2727 }
 0x2c2   : > { %2446 = vst [vmem:[#allocation1 + $0x2] ss:$9 sm:$0xff] %v1893_v12  ;;  %v1907_v12 = vperm.slane %v4146_v8, 0  ;;  %v2922_v59 = vperm.slane %v2728_v11, %v4260_v2  ;;  %v1917_v11 = vperm.slane %v4150_v10, 2 }
 0x2c3   : > { %2447 = vst [vmem:[#allocation1 + $0x3] ss:$9 sm:$0xff] %v1894_v14  ;;  %v1908_v14 = vperm.slane %v4146_v8, 1 }
 0x2c4   : > { %2448 = vst [vmem:[#allocation1 + $0x4] ss:$9 sm:$0xff] %v1895_v17  ;;  %v2926_v17 = vperm.slane %v2731_v60, %v4256_v61 }
 0x2c5   : > { %2449 = vst [vmem:[#allocation1 + $0x5] ss:$9 sm:$0xff] %v1896_v18  ;;  %v1909_v18 = vperm.slane %v4146_v8, 2 }
 0x2c6   : > { %2450 = vst [vmem:[#allocation1 + $0x6] ss:$9 sm:$0xff] %v1897_v20  ;;  %v2924_v20 = vsel %vm2923_vm3, %v2922_v59, %v2920_v6 }
 0x2c7   : > { %2451 = vst [vmem:[#allocation1 + $0x7] ss:$9 sm:$0xff] %v1898_v22  ;;  %v1910_v22 = vperm.slane %v4146_v8, 3 }
 0x2ce   : > { %v2452_v39 = vld [vmem:[#allocation1] sm:$0xff] }
 0x2cf   : > { %2453 = vst [vmem:[#allocation1] ss:$9 sm:$0xff] %v1899_v23  ;;  %2817 = vperm.xlu2 %3264, %v2452_v39   ;;  %v2928_v23 = vsel %vm2927_vm4, %v2926_v17, %v2924_v20  ;;  %v2737_v39 = vpop.permute.xlu2 %2736  ;;  %v2942_v17 = vperm.slane %v2743_v46, %v4286_v53 }
 0x2d0   : > { %2454 = vst [vmem:[#allocation1 + $0x1] ss:$9 sm:$0xff] %v1900_v13  ;;  %v1911_v13 = vperm.slane %v4146_v8, 4 }
 0x2d1   : > { %2455 = vst [vmem:[#allocation1 + $0x2] ss:$9 sm:$0xff] %v1901_v0  ;;  %v4274_v0 = vadd.s32 4294967240, %v4229_v34 }
 0x2d2   : > { %2456 = vst [vmem:[#allocation1 + $0x3] ss:$9 sm:$0xff] %v1902_v43  ;;  %v1913_v43 = vperm.slane %v4146_v8, 6 }
 0x2d3   : > { %2457 = vst [vmem:[#allocation1 + $0x4] ss:$9 sm:$0xff] %v1903_v58  ;;  %v4278_v58 = vadd.s32 4294967248, %v4229_v34 }
 0x2d4   : > { %2458 = vst [vmem:[#allocation1 + $0x5] ss:$9 sm:$0xff] %v1904_v42  ;;  %v1914_v42 = vperm.slane %v4146_v8, 7  ;;  %v4289_v8 = vadd.s32 4294967232, %v4229_v34 }
 0x2d5   : > { %2459 = vst [vmem:[#allocation1 + $0x6] ss:$9 sm:$0xff] %v1905_v44  ;;  %v2734_v44 = vpop.permute.xlu1 %2733 }
 0x2d6   : > { %2460 = vst [vmem:[#allocation1 + $0x7] ss:$9 sm:$0xff] %v1906_v47  ;;  %v2930_v45 = vperm.slane %v2734_v44, %v4278_v58  ;;  %v2934_v47 = vperm.slane %v2737_v39, %v4274_v0  ;;  %v4309_v39 = vadd.s32 4294967208, %v4229_v34 }
 0x2d7   : > { %v2746_v6 = vpop.permute.xlu2 %2745 }
 0x2d8   : > { %v2932_v48 = vsel %vm2931_vm5, %v2930_v45, %v2928_v23  ;;  %v2946_v20 = vperm.slane %v2746_v6, %v4293_v57  ;;  %v1926_v6 = vperm.slane %v4128_v56, 3 }
 0x2d9   : > { %v2936_v51 = vsel %vm2935_vm6, %v2934_v47, %v2932_v48  ;;  %v4314_v47 = vadd.s32 4294967200, %v4229_v34  ;;  %v2752_v48 = vpop.permute.xlu0 %2751 }
 0x2dd   : > { %v2461_v21 = vld [vmem:[#allocation1] sm:$0xff]  ;;  %v2740_v60 = vpop.permute.xlu1 %2739 }
 0x2de   : > { %2462 = vst [vmem:[#allocation1] ss:$9 sm:$0xff] %v1907_v12  ;;  %2820 = vperm.xlu1 %3263, %v2461_v21   ;;  %v2938_v12 = vperm.slane %v2740_v60, %v4289_v8  ;;  %v2954_v60 = vperm.slane %v2752_v48, %v4314_v47  ;;  %v1935_v48 = vperm.slane %v4152_v16, 4 }
 0x2df   : > { %2463 = vst [vmem:[#allocation1 + $0x1] ss:$9 sm:$0xff] %v1908_v14  ;;  %v1918_v14 = vperm.slane %v4150_v10, 3  ;;  %v2755_v46 = vpop.permute.xlu2 %2754 }
 0x2e0   : > { %2464 = vst [vmem:[#allocation1 + $0x2] ss:$9 sm:$0xff] %v1909_v18  ;;  %v1919_v18 = vperm.slane %v4150_v10, 4  ;;  %v2940_v21 = vsel %vm2939_vm7, %v2938_v12, %v2936_v51  ;;  %v4318_v51 = vadd.s32 4294967192, %v4229_v34  ;;  %v1927_v12 = vperm.slane %v4128_v56, 4 }
 0x2e1   : > { %2465 = vst [vmem:[#allocation1 + $0x3] ss:$9 sm:$0xff] %v1910_v22  ;;  %v1920_v22 = vperm.slane %v4150_v10, 5  ;;  %v2944_v23 = vsel %vm2943_vm8, %v2942_v17, %v2940_v21  ;;  %v1930_v21 = vperm.slane %v4128_v56, 7 }
 0x2e2   : > { %2466 = vst [vmem:[#allocation1 + $0x4] ss:$9 sm:$0xff] %v1911_v13  ;;  %v1921_v13 = vperm.slane %v4150_v10, 6 }
 0x2e3   : > { %2467 = vst [vmem:[#allocation1 + $0x5] ss:$9 sm:$0xff] %v1912_v26  ;;  %v2948_v26 = vsel %vm2947_vm9, %v2946_v20, %v2944_v23 }
 0x2e4   : > { %2468 = vst [vmem:[#allocation1 + $0x6] ss:$9 sm:$0xff] %v1913_v43  ;;  %v1922_v43 = vperm.slane %v4150_v10, 7  ;;  %v1923_v10 = vperm.slane %v4128_v56, 0 }
 0x2e5   : > { %2469 = vst [vmem:[#allocation1 + $0x7] ss:$9 sm:$0xff] %v1914_v42  ;;  %v2749_v42 = vpop.permute.xlu1 %2748 }
 0x2e6   : > { %v2950_v44 = vperm.slane %v2749_v42, %v4309_v39  ;;  %v1933_v42 = vperm.slane %v4152_v16, 2 }
 0x2e8   : > { %v2952_v45 = vsel %vm2951_vm10, %v2950_v44, %v2948_v26 }
 0x2e9   : > { %v2956_v17 = vsel %vm2955_vm11, %v2954_v60, %v2952_v45  ;;  %v1934_v45 = vperm.slane %v4152_v16, 3  ;;  %v1938_v60 = vperm.slane %v4152_v16, 7 }
 0x2ec   : > { %v2470_v59 = vld [vmem:[#allocation1] sm:$0xff] }
 0x2ed   : > { %2471 = vst [vmem:[#allocation1] ss:$9 sm:$0xff] %v1915_v55  ;;  %2823 = vperm.xlu0 %3265, %v2470_v59   ;;  %v1924_v55 = vperm.slane %v4128_v56, 1  ;;  %v2958_v59 = vperm.slane %v2755_v46, %v4318_v51  ;;  %v2758_v23 = vpop.permute.xlu1 %2757  ;;  %v4344_v46 = vadd.s32 4294967176, %v4229_v34 }
 0x2ee   : > { %2472 = vst [vmem:[#allocation1 + $0x1] ss:$9 sm:$0xff] %v1916_v62  ;;  %v1925_v62 = vperm.slane %v4128_v56, 2 }
 0x2ef   : > { %2473 = vst [vmem:[#allocation1 + $0x2] ss:$9 sm:$0xff] %v1917_v11  ;;  %v2960_v20 = vsel %vm2959_vm12, %v2958_v59, %v2956_v17  ;;  %v1940_v59 = vperm.slane %v4156_v25, 1 }
 0x2f0   : > { %2474 = vst [vmem:[#allocation1 + $0x3] ss:$9 sm:$0xff] %v1918_v14  ;;  %v1928_v14 = vperm.slane %v4128_v56, 5 }
 0x2f1   : > { %2475 = vst [vmem:[#allocation1 + $0x4] ss:$9 sm:$0xff] %v1919_v18  ;;  %v1929_v18 = vperm.slane %v4128_v56, 6 }
 0x2f2   : > { %2476 = vst [vmem:[#allocation1 + $0x5] ss:$9 sm:$0xff] %v1920_v22  ;;  %v4332_v22 = vadd.s32 4294967184, %v4229_v34 }
 0x2f3   : > { %2477 = vst [vmem:[#allocation1 + $0x6] ss:$9 sm:$0xff] %v1921_v13  ;;  %v1931_v13 = vperm.slane %v4152_v16, 0 }
 0x2f4   : > { %2478 = vst [vmem:[#allocation1 + $0x7] ss:$9 sm:$0xff] %v1922_v43  ;;  %v2962_v26 = vperm.slane %v2758_v23, %v4332_v22  ;;  %v1932_v43 = vperm.slane %v4152_v16, 1  ;;  %v2764_v23 = vpop.permute.xlu2 %2763 }
 0x2f6   : > { %v2964_v56 = vsel %vm2963_vm13, %v2962_v26, %v2960_v20  ;;  %v1944_v20 = vperm.slane %v4156_v25, 5  ;;  %v2767_v26 = vpop.permute.xlu1 %2766 }
 0x2fb   : > { %v2479_v11 = vld [vmem:[#allocation1] sm:$0xff] }
 0x2fc   : > { %2480 = vst [vmem:[#allocation1] ss:$9 sm:$0xff] %v1923_v10  ;;  %2826 = vperm.xlu2 %3264, %v2479_v11   ;;  %v1936_v10 = vperm.slane %v4152_v16, 5 }
 0x2fd   : > { %2481 = vst [vmem:[#allocation1 + $0x1] ss:$9 sm:$0xff] %v1924_v55  ;;  %v1937_v55 = vperm.slane %v4152_v16, 6  ;;  %v1942_v16 = vperm.slane %v4156_v25, 3 }
 0x2fe   : > { %2482 = vst [vmem:[#allocation1 + $0x2] ss:$9 sm:$0xff] %v1925_v62  ;;  %v2761_v62 = vpop.permute.xlu0 %2760 }
 0x2ff   : > { %2483 = vst [vmem:[#allocation1 + $0x3] ss:$9 sm:$0xff] %v1926_v6  ;;  %v2966_v6 = vperm.slane %v2761_v62, %v4344_v46  ;;  %v1951_v62 = vperm.slane %v4137_v63, 4 }
 0x300   : > { %2484 = vst [vmem:[#allocation1 + $0x4] ss:$9 sm:$0xff] %v1927_v12  ;;  %v1939_v12 = vperm.slane %v4156_v25, 0 }
 0x301   : > { %2485 = vst [vmem:[#allocation1 + $0x5] ss:$9 sm:$0xff] %v1928_v14  ;;  %v4349_v11 = vsel %vm2967_vm14, %v2966_v6, %v2964_v56  ;;  %v1941_v14 = vperm.slane %v4156_v25, 2 }
 0x302   : > { %2486 = vst [vmem:[#allocation1 + $0x6] ss:$9 sm:$0xff] %v1929_v18  ;;  %v1943_v18 = vperm.slane %v4156_v25, 4 }
 0x303   : > { %2487 = vst [vmem:[#allocation1 + $0x7] ss:$9 sm:$0xff] %v1930_v21  ;;  %v1945_v21 = vperm.slane %v4156_v25, 6 }
 0x30a   : > { %v2488_v44 = vld [vmem:[#allocation1] sm:$0xff] }
 0x30b   : > { %2489 = vst [vmem:[#allocation1] ss:$9 sm:$0xff] %v1931_v13  ;;  %2829 = vperm.xlu1 %3263, %v2488_v44   ;;  %v1946_v13 = vperm.slane %v4156_v25, 7  ;;  %v1947_v44 = vperm.slane %v4137_v63, 0  ;;  %v2773_v25 = vpop.permute.xlu2 %2772 }
 0x30c   : > { %2490 = vst [vmem:[#allocation1 + $0x1] ss:$9 sm:$0xff] %v1932_v43  ;;  %v2969_v43 = vperm.slane %v2764_v23, %v4229_v34  ;;  %v1957_v23 = vperm.slane %v4158_v27, 2 }
 0x30d   : > { %2491 = vst [vmem:[#allocation1 + $0x2] ss:$9 sm:$0xff] %v1933_v42  ;;  %v2970_v42 = vperm.slane %v2767_v26, %v4238_v40 }
 0x30e   : > { %2492 = vst [vmem:[#allocation1 + $0x3] ss:$9 sm:$0xff] %v1934_v45  ;;  %v1948_v45 = vperm.slane %v4137_v63, 1 }
 0x30f   : > { %2493 = vst [vmem:[#allocation1 + $0x4] ss:$9 sm:$0xff] %v1935_v48  ;;  %v2971_v56 = vsel %vm2911_vm0, %v2970_v42, %v2969_v43  ;;  %v2770_v48 = vpop.permute.xlu0 %2769  ;;  %v1958_v43 = vperm.slane %v4158_v27, 3 }
 0x310   : > { %2494 = vst [vmem:[#allocation1 + $0x5] ss:$9 sm:$0xff] %v1936_v10  ;;  %v1949_v10 = vperm.slane %v4137_v63, 2  ;;  %v2972_v6 = vperm.slane %v2770_v48, %v4250_v52  ;;  %v1962_v48 = vperm.slane %v4158_v27, 7 }
 0x311   : > { %2495 = vst [vmem:[#allocation1 + $0x6] ss:$9 sm:$0xff] %v1937_v55  ;;  %v1950_v55 = vperm.slane %v4137_v63, 3 }
 0x312   : > { %2496 = vst [vmem:[#allocation1 + $0x7] ss:$9 sm:$0xff] %v1938_v60 }
 0x319   : > { %v2497_v17 = vld [vmem:[#allocation1] sm:$0xff] }
 0x31a   : > { %2498 = vst [vmem:[#allocation1] ss:$9 sm:$0xff] %v1939_v12  ;;  %2832 = vperm.xlu0 %3265, %v2497_v17   ;;  %v1952_v12 = vperm.slane %v4137_v63, 5  ;;  %v2973_v17 = vsel %vm2915_vm1, %v2972_v6, %v2971_v56  ;;  %v1960_v56 = vperm.slane %v4158_v27, 5 }
 0x31b   : > { %2499 = vst [vmem:[#allocation1 + $0x1] ss:$9 sm:$0xff] %v1940_v59  ;;  %v2974_v59 = vperm.slane %v2773_v25, %v4246_v15  ;;  %v2779_v25 = vpop.permute.xlu0 %2778 }
 0x31c   : > { %2500 = vst [vmem:[#allocation1 + $0x2] ss:$9 sm:$0xff] %v1941_v14  ;;  %v1953_v14 = vperm.slane %v4137_v63, 6 }
 0x31d   : > { %2501 = vst [vmem:[#allocation1 + $0x3] ss:$9 sm:$0xff] %v1942_v16  ;;  %v1954_v16 = vperm.slane %v4137_v63, 7  ;;  %v1959_v63 = vperm.slane %v4158_v27, 4 }
 0x31e   : > { %2502 = vst [vmem:[#allocation1 + $0x4] ss:$9 sm:$0xff] %v1943_v18  ;;  %v2975_v18 = vsel %vm2919_vm2, %v2974_v59, %v2973_v17  ;;  %v1964_v59 = vperm.slane %v4165_v33, 1  ;;  %v1966_v17 = vperm.slane %v4165_v33, 3 }
 0x31f   : > { %2503 = vst [vmem:[#allocation1 + $0x5] ss:$9 sm:$0xff] %v1944_v20  ;;  %v1955_v20 = vperm.slane %v4158_v27, 0 }
 0x320   : > { %2504 = vst [vmem:[#allocation1 + $0x6] ss:$9 sm:$0xff] %v1945_v21  ;;  %v1956_v21 = vperm.slane %v4158_v27, 1 }
 0x321   : > { %2505 = vst [vmem:[#allocation1 + $0x7] ss:$9 sm:$0xff] %v1946_v13  ;;  %v2776_v13 = vpop.permute.xlu1 %2775 }
 0x322   : > { %v2976_v42 = vperm.slane %v2776_v13, %v4260_v2 }
 0x328   : > { %v2506_v60 = vld [vmem:[#allocation1] sm:$0xff] }
 0x329   : > { %2507 = vst [vmem:[#allocation1] ss:$9 sm:$0xff] %v1947_v44  ;;  %2835 = vperm.xlu2 %3264, %v2506_v60   ;;  %v2977_v44 = vsel %vm2923_vm3, %v2976_v42, %v2975_v18  ;;  %v1968_v18 = vperm.slane %v4165_v33, 5  ;;  %v1972_v42 = vperm.slane %v4148_v9, 1 }
 0x32a   : > { %2508 = vst [vmem:[#allocation1 + $0x1] ss:$9 sm:$0xff] %v1948_v45  ;;  %v1961_v45 = vperm.slane %v4158_v27, 6  ;;  %v1965_v27 = vperm.slane %v4165_v33, 2 }
 0x32b   : > { %2509 = vst [vmem:[#allocation1 + $0x2] ss:$9 sm:$0xff] %v1949_v10  ;;  %v2782_v10 = vpop.permute.xlu2 %2781 }
 0x32c   : > { %2510 = vst [vmem:[#allocation1 + $0x3] ss:$9 sm:$0xff] %v1950_v55  ;;  %v2978_v55 = vperm.slane %v2779_v25, %v4256_v61  ;;  %v2980_v60 = vperm.slane %v2782_v10, %v4278_v58  ;;  %v1976_v10 = vperm.slane %v4148_v9, 5 }
 0x32d   : > { %2511 = vst [vmem:[#allocation1 + $0x4] ss:$9 sm:$0xff] %v1951_v62 }
 0x32e   : > { %2512 = vst [vmem:[#allocation1 + $0x5] ss:$9 sm:$0xff] %v1952_v12  ;;  %v2979_v62 = vsel %vm2927_vm4, %v2978_v55, %v2977_v44  ;;  %v1963_v12 = vperm.slane %v4165_v33, 0  ;;  %v1977_v55 = vperm.slane %v4148_v9, 6 }
 0x32f   : > { %2513 = vst [vmem:[#allocation1 + $0x6] ss:$9 sm:$0xff] %v1953_v14  ;;  %v2981_v6 = vsel %vm2931_vm5, %v2980_v60, %v2979_v62  ;;  %v1978_v62 = vperm.slane %v4148_v9, 7 }
 0x330   : > { %2514 = vst [vmem:[#allocation1 + $0x7] ss:$9 sm:$0xff] %v1954_v16  ;;  %v1967_v16 = vperm.slane %v4165_v33, 4 }
 0x337   : > { %v2515_v26 = vld [vmem:[#allocation1] sm:$0xff] }
 0x338   : > { %2516 = vst [vmem:[#allocation1] ss:$9 sm:$0xff] %v1955_v20  ;;  %2838 = vperm.xlu1 %3263, %v2515_v26   ;;  %v1969_v20 = vperm.slane %v4165_v33, 6 }
 0x339   : > { %2517 = vst [vmem:[#allocation1 + $0x1] ss:$9 sm:$0xff] %v1956_v21  ;;  %v1970_v21 = vperm.slane %v4165_v33, 7  ;;  %v2791_v33 = vpop.permute.xlu2 %2790 }
 0x33a   : > { %2518 = vst [vmem:[#allocation1 + $0x2] ss:$9 sm:$0xff] %v1957_v23  ;;  %v2785_v23 = vpop.permute.xlu1 %2784  ;;  %v2986_v60 = vperm.slane %v2791_v33, %v4286_v53 }
 0x33b   : > { %2519 = vst [vmem:[#allocation1 + $0x3] ss:$9 sm:$0xff] %v1958_v43  ;;  %v2982_v13 = vperm.slane %v2785_v23, %v4274_v0  ;;  %v1971_v43 = vperm.slane %v4148_v9, 0 }
 0x33c   : > { %2520 = vst [vmem:[#allocation1 + $0x4] ss:$9 sm:$0xff] %v1959_v63  ;;  %v1973_v63 = vperm.slane %v4148_v9, 2 }
 0x33d   : > { %2521 = vst [vmem:[#allocation1 + $0x5] ss:$9 sm:$0xff] %v1960_v56  ;;  %v2983_v26 = vsel %vm2935_vm6, %v2982_v13, %v2981_v6  ;;  %v1974_v56 = vperm.slane %v4148_v9, 3  ;;  %v1986_v13 = vperm.slane %v4172_v36, 7 }
 0x33e   : > { %2522 = vst [vmem:[#allocation1 + $0x6] ss:$9 sm:$0xff] %v1961_v45  ;;  %v1975_v45 = vperm.slane %v4148_v9, 4  ;;  %v1983_v9 = vperm.slane %v4172_v36, 4 }
 0x33f   : > { %2523 = vst [vmem:[#allocation1 + $0x7] ss:$9 sm:$0xff] %v1962_v48  ;;  %v2788_v48 = vpop.permute.xlu0 %2787 }
 0x340   : > { %v2984_v25 = vperm.slane %v2788_v48, %v4289_v8 }
 0x342   : > { %v2985_v6 = vsel %vm2939_vm7, %v2984_v25, %v2983_v26 }
 0x346   : > { %v2524_v14 = vld [vmem:[#allocation1] sm:$0xff] }
 0x347   : > { %2525 = vst [vmem:[#allocation1] ss:$9 sm:$0xff] %v1963_v12  ;;  %2841 = vperm.xlu0 %3265, %v2524_v14   ;;  %v2987_v12 = vsel %vm2943_vm8, %v2986_v60, %v2985_v6  ;;  %v1981_v14 = vperm.slane %v4172_v36, 2  ;;  %v1992_v60 = vperm.slane %v4176_v37, 5  ;;  %v1994_v6 = vperm.slane %v4176_v37, 7 }
 0x348   : > { %2526 = vst [vmem:[#allocation1 + $0x1] ss:$9 sm:$0xff] %v1964_v59  ;;  %v1979_v59 = vperm.slane %v4172_v36, 0 }
 0x349   : > { %2527 = vst [vmem:[#allocation1 + $0x2] ss:$9 sm:$0xff] %v1965_v27  ;;  %v1980_v27 = vperm.slane %v4172_v36, 1 }
 0x34a   : > { %2528 = vst [vmem:[#allocation1 + $0x3] ss:$9 sm:$0xff] %v1966_v17 }
 0x34b   : > { %2529 = vst [vmem:[#allocation1 + $0x4] ss:$9 sm:$0xff] %v1967_v16  ;;  %v1982_v16 = vperm.slane %v4172_v36, 3 }
 0x34c   : > { %2530 = vst [vmem:[#allocation1 + $0x5] ss:$9 sm:$0xff] %v1968_v18  ;;  %v1984_v18 = vperm.slane %v4172_v36, 5 }
 0x34d   : > { %2531 = vst [vmem:[#allocation1 + $0x6] ss:$9 sm:$0xff] %v1969_v20  ;;  %v2794_v20 = vpop.permute.xlu1 %2793 }
 0x34e   : > { %2532 = vst [vmem:[#allocation1 + $0x7] ss:$9 sm:$0xff] %v1970_v21  ;;  %v1985_v21 = vperm.slane %v4172_v36, 6  ;;  %v2988_v23 = vperm.slane %v2794_v20, %v4293_v57  ;;  %v2001_v20 = vperm.slane %v4154_v24, 6 }
 0x350   : > { %v2989_v26 = vsel %vm2947_vm9, %v2988_v23, %v2987_v12  ;;  %v1995_v12 = vperm.slane %v4154_v24, 0 }
 0x355   : > { %v2533_v44 = vld [vmem:[#allocation1] sm:$0xff] }
 0x356   : > { %2534 = vst [vmem:[#allocation1] ss:$9 sm:$0xff] %v1971_v43  ;;  %2844 = vperm.xlu2 %3264, %v2533_v44   ;;  %v2800_v43 = vpop.permute.xlu2 %2799  ;;  %v1988_v44 = vperm.slane %v4176_v37, 1 }
 0x357   : > { %2535 = vst [vmem:[#allocation1 + $0x1] ss:$9 sm:$0xff] %v1972_v42  ;;  %v2797_v42 = vpop.permute.xlu0 %2796  ;;  %v2992_v33 = vperm.slane %v2800_v43, %v4314_v47 }
 0x358   : > { %2536 = vst [vmem:[#allocation1 + $0x2] ss:$9 sm:$0xff] %v1973_v63  ;;  %v2990_v63 = vperm.slane %v2797_v42, %v4309_v39 }
 0x359   : > { %2537 = vst [vmem:[#allocation1 + $0x3] ss:$9 sm:$0xff] %v1974_v56  ;;  %v1987_v56 = vperm.slane %v4176_v37, 0 }
 0x35a   : > { %2538 = vst [vmem:[#allocation1 + $0x4] ss:$9 sm:$0xff] %v1975_v45  ;;  %v1989_v45 = vperm.slane %v4176_v37, 2  ;;  %v2991_v36 = vsel %vm2951_vm10, %v2990_v63, %v2989_v26 }
 0x35b   : > { %2539 = vst [vmem:[#allocation1 + $0x5] ss:$9 sm:$0xff] %v1976_v10  ;;  %v1990_v10 = vperm.slane %v4176_v37, 3  ;;  %v2993_v25 = vsel %vm2955_vm11, %v2992_v33, %v2991_v36  ;;  %v2004_v33 = vperm.slane %v4181_v1, 1  ;;  %v2006_v36 = vperm.slane %v4181_v1, 3 }
 0x35c   : > { %2540 = vst [vmem:[#allocation1 + $0x6] ss:$9 sm:$0xff] %v1977_v55  ;;  %v1991_v55 = vperm.slane %v4176_v37, 4 }
 0x35d   : > { %2541 = vst [vmem:[#allocation1 + $0x7] ss:$9 sm:$0xff] %v1978_v62  ;;  %v1993_v62 = vperm.slane %v4176_v37, 6 }
 0x35f   : > { %v2806_v26 = vpop.permute.xlu0 %2805 }
 0x360   : > { %v2996_v43 = vperm.slane %v2806_v26, %v4332_v22  ;;  %v2022_v26 = vperm.slane %v4163_v32, 3 }
 0x364   : > { %v2542_v17 = vld [vmem:[#allocation1] sm:$0xff] }
 0x365   : > { %2543 = vst [vmem:[#allocation1] ss:$9 sm:$0xff] %v1979_v59  ;;  %2847 = vperm.xlu1 %3263, %v2542_v17   ;;  %v1996_v59 = vperm.slane %v4154_v24, 1  ;;  %v1998_v17 = vperm.slane %v4154_v24, 3 }
 0x366   : > { %2544 = vst [vmem:[#allocation1 + $0x1] ss:$9 sm:$0xff] %v1980_v27  ;;  %v2803_v27 = vpop.permute.xlu1 %2802 }
 0x367   : > { %2545 = vst [vmem:[#allocation1 + $0x2] ss:$9 sm:$0xff] %v1981_v14  ;;  %v1997_v14 = vperm.slane %v4154_v24, 2  ;;  %v2994_v37 = vperm.slane %v2803_v27, %v4318_v51 }
 0x368   : > { %2546 = vst [vmem:[#allocation1 + $0x3] ss:$9 sm:$0xff] %v1982_v16 }
 0x369   : > { %2547 = vst [vmem:[#allocation1 + $0x4] ss:$9 sm:$0xff] %v1983_v9  ;;  %v1999_v9 = vperm.slane %v4154_v24, 4  ;;  %v2995_v23 = vsel %vm2959_vm12, %v2994_v37, %v2993_v25  ;;  %v2009_v25 = vperm.slane %v4181_v1, 6  ;;  %v2016_v37 = vperm.slane %v4190_v49, 5 }
 0x36a   : > { %2548 = vst [vmem:[#allocation1 + $0x5] ss:$9 sm:$0xff] %v1984_v18  ;;  %v2000_v18 = vperm.slane %v4154_v24, 5  ;;  %v2997_v63 = vsel %vm2963_vm13, %v2996_v43, %v2995_v23  ;;  %v2020_v23 = vperm.slane %v4163_v32, 1 }
 0x36b   : > { %2549 = vst [vmem:[#allocation1 + $0x6] ss:$9 sm:$0xff] %v1985_v21  ;;  %v2809_v21 = vpop.permute.xlu2 %2808 }
 0x36c   : > { %2550 = vst [vmem:[#allocation1 + $0x7] ss:$9 sm:$0xff] %v1986_v13  ;;  %v2002_v13 = vperm.slane %v4154_v24, 7  ;;  %v2998_v42 = vperm.slane %v2809_v21, %v4344_v46  ;;  %v2005_v24 = vperm.slane %v4181_v1, 2  ;;  %v2019_v21 = vperm.slane %v4163_v32, 0 }
 0x373   : > { %v2551_v48 = vld [vmem:[#allocation1] sm:$0xff] }
 0x374   : > { %2552 = vst [vmem:[#allocation1] ss:$9 sm:$0xff] %v1987_v56  ;;  %2850 = vperm.xlu0 %3265, %v2551_v48   ;;  %v4446_v56 = vsel %vm2967_vm14, %v2998_v42, %v2997_v63  ;;  %v2007_v48 = vperm.slane %v4181_v1, 4  ;;  %v2023_v42 = vperm.slane %v4163_v32, 4  ;;  %v2025_v63 = vperm.slane %v4163_v32, 6 }
 0x375   : > { %2553 = vst [vmem:[#allocation1 + $0x1] ss:$9 sm:$0xff] %v1988_v44  ;;  %v2003_v44 = vperm.slane %v4181_v1, 0 }
 0x376   : > { %2554 = vst [vmem:[#allocation1 + $0x2] ss:$9 sm:$0xff] %v1989_v45 }
 0x377   : > { %2555 = vst [vmem:[#allocation1 + $0x3] ss:$9 sm:$0xff] %v1990_v10  ;;  %v2008_v10 = vperm.slane %v4181_v1, 5 }
 0x378   : > { %2556 = vst [vmem:[#allocation1 + $0x4] ss:$9 sm:$0xff] %v1991_v55  ;;  %v2010_v55 = vperm.slane %v4181_v1, 7  ;;  %v2014_v1 = vperm.slane %v4190_v49, 3 }
 0x379   : > { %2557 = vst [vmem:[#allocation1 + $0x5] ss:$9 sm:$0xff] %v1992_v60  ;;  %v2812_v60 = vpop.permute.xlu1 %2811 }
 0x37a   : > { %2558 = vst [vmem:[#allocation1 + $0x6] ss:$9 sm:$0xff] %v1993_v62  ;;  %v2011_v62 = vperm.slane %v4190_v49, 0  ;;  %v3000_v27 = vperm.slane %v2812_v60, %v4229_v34  ;;  %v2035_v60 = vperm.slane %v4199_v38, 0 }
 0x37b   : > { %2559 = vst [vmem:[#allocation1 + $0x7] ss:$9 sm:$0xff] %v1994_v6  ;;  %v2012_v6 = vperm.slane %v4190_v49, 1 }
 0x382   : > { %v2560_v16 = vld [vmem:[#allocation1] sm:$0xff] }
 0x383   : > { %2561 = vst [vmem:[#allocation1] ss:$9 sm:$0xff] %v1995_v12  ;;  %2853 = vperm.xlu2 %3264, %v2560_v16   ;;  %v2815_v12 = vpop.permute.xlu0 %2814  ;;  %v2015_v16 = vperm.slane %v4190_v49, 4 }
 0x384   : > { %2562 = vst [vmem:[#allocation1 + $0x1] ss:$9 sm:$0xff] %v1996_v59  ;;  %v2013_v59 = vperm.slane %v4190_v49, 2 }
 0x385   : > { %2563 = vst [vmem:[#allocation1 + $0x2] ss:$9 sm:$0xff] %v1997_v14  ;;  %v3001_v14 = vperm.slane %v2815_v12, %v4238_v40  ;;  %v2037_v12 = vperm.slane %v4199_v38, 2 }
 0x386   : > { %2564 = vst [vmem:[#allocation1 + $0x3] ss:$9 sm:$0xff] %v1998_v17 }
 0x387   : > { %2565 = vst [vmem:[#allocation1 + $0x4] ss:$9 sm:$0xff] %v1999_v9  ;;  %v4464_v9 = vsel %vm2911_vm0, %v3001_v14, %v3000_v27  ;;  %v3062_v27 = vrot.slane %v4446_v56, 7  ;;  %v2040_v14 = vperm.slane %v4199_v38, 5  ;;  %v2043_v56 = vperm.slane %v4174_v41, 0 }
 0x388   : > { %2566 = vst [vmem:[#allocation1 + $0x5] ss:$9 sm:$0xff] %v2000_v18  ;;  %v2017_v18 = vperm.slane %v4190_v49, 6 }
 0x389   : > { %2567 = vst [vmem:[#allocation1 + $0x6] ss:$9 sm:$0xff] %v2001_v20  ;;  %v2018_v20 = vperm.slane %v4190_v49, 7  ;;  %v2024_v49 = vperm.slane %v4163_v32, 5 }
 0x38a   : > { %2568 = vst [vmem:[#allocation1 + $0x7] ss:$9 sm:$0xff] %v2002_v13  ;;  %v2021_v13 = vperm.slane %v4163_v32, 2 }
 0x391   : > { %v2569_v45 = vld [vmem:[#allocation1] sm:$0xff] }
 0x392   : > { %2570 = vst [vmem:[#allocation1] ss:$9 sm:$0xff] %v2003_v44  ;;  %2856 = vperm.xlu1 %3263, %v2569_v45   ;;  %v2026_v44 = vperm.slane %v4163_v32, 7  ;;  %v2029_v45 = vperm.slane %v4192_v50, 2  ;;  %v2032_v32 = vperm.slane %v4192_v50, 5 }
 0x393   : > { %2571 = vst [vmem:[#allocation1 + $0x1] ss:$9 sm:$0xff] %v2004_v33  ;;  %v2027_v33 = vperm.slane %v4192_v50, 0 }
 0x394   : > { %2572 = vst [vmem:[#allocation1 + $0x2] ss:$9 sm:$0xff] %v2005_v24  ;;  %v2028_v24 = vperm.slane %v4192_v50, 1 }
 0x395   : > { %2573 = vst [vmem:[#allocation1 + $0x3] ss:$9 sm:$0xff] %v2006_v36 }
 0x396   : > { %2574 = vst [vmem:[#allocation1 + $0x4] ss:$9 sm:$0xff] %v2007_v48  ;;  %v2030_v48 = vperm.slane %v4192_v50, 3 }
 0x397   : > { %2575 = vst [vmem:[#allocation1 + $0x5] ss:$9 sm:$0xff] %v2008_v10  ;;  %v2031_v10 = vperm.slane %v4192_v50, 4 }
 0x398   : > { %2576 = vst [vmem:[#allocation1 + $0x6] ss:$9 sm:$0xff] %v2009_v25  ;;  %v2033_v25 = vperm.slane %v4192_v50, 6 }
 0x399   : > { %2577 = vst [vmem:[#allocation1 + $0x7] ss:$9 sm:$0xff] %v2010_v55  ;;  %v2034_v55 = vperm.slane %v4192_v50, 7  ;;  %v2039_v50 = vperm.slane %v4199_v38, 4 }
 0x3a0   : > { %v2578_v17 = vld [vmem:[#allocation1] sm:$0xff] }
 0x3a1   : > { %2579 = vst [vmem:[#allocation1] ss:$9 sm:$0xff] %v2011_v62  ;;  %2859 = vperm.xlu0 %3265, %v2578_v17   ;;  %v2041_v17 = vperm.slane %v4199_v38, 6 }
 0x3a2   : > { %2580 = vst [vmem:[#allocation1 + $0x1] ss:$9 sm:$0xff] %v2012_v6  ;;  %v2036_v6 = vperm.slane %v4199_v38, 1 }
 0x3a3   : > { %2581 = vst [vmem:[#allocation1 + $0x2] ss:$9 sm:$0xff] %v2013_v59  ;;  %v2038_v59 = vperm.slane %v4199_v38, 3 }
 0x3a4   : > { %2582 = vst [vmem:[#allocation1 + $0x3] ss:$9 sm:$0xff] %v2014_v1  ;;  %v2042_v1 = vperm.slane %v4199_v38, 7  ;;  %v2048_v38 = vperm.slane %v4174_v41, 5 }
 0x3a5   : > { %2583 = vst [vmem:[#allocation1 + $0x4] ss:$9 sm:$0xff] %v2015_v16  ;;  %v4495_v16 = vsel %vm3065_vm15, %v4349_v11, %v3062_v27  ;;  %v2049_v11 = vperm.slane %v4174_v41, 6  ;;  %v2070_v27 = vperm.slane %v4188_v30, 3 }
 0x3a6   : > { %2584 = vst [vmem:[#allocation1 + $0x5] ss:$9 sm:$0xff] %v2016_v37  ;;  %v2044_v37 = vperm.slane %v4174_v41, 1 }
 0x3a7   : > { %2585 = vst [vmem:[#allocation1 + $0x6] ss:$9 sm:$0xff] %v2017_v18  ;;  %v2045_v18 = vperm.slane %v4174_v41, 2 }
 0x3a8   : > { %2586 = vst [vmem:[#allocation1 + $0x7] ss:$9 sm:$0xff] %v2018_v20  ;;  %v2046_v20 = vperm.slane %v4174_v41, 3 }
 0x3af   : > { %v2587_v43 = vld [vmem:[#allocation1] sm:$0xff] }
 0x3b0   : > { %2588 = vst [vmem:[#allocation1] ss:$9 sm:$0xff] %v2019_v21  ;;  %2862 = vperm.xlu2 %3264, %v2587_v43   ;;  %v2052_v43 = vperm.slane %v4206_v3, 1 }
 0x3b1   : > { %2589 = vst [vmem:[#allocation1 + $0x1] ss:$9 sm:$0xff] %v2020_v23  ;;  %v2047_v23 = vperm.slane %v4174_v41, 4 }
 0x3b2   : > { %2590 = vst [vmem:[#allocation1 + $0x2] ss:$9 sm:$0xff] %v2021_v13  ;;  %v2050_v13 = vperm.slane %v4174_v41, 7  ;;  %v2056_v41 = vperm.slane %v4206_v3, 5 }
 0x3b3   : > { %2591 = vst [vmem:[#allocation1 + $0x3] ss:$9 sm:$0xff] %v2022_v26  ;;  %v2051_v26 = vperm.slane %v4206_v3, 0 }
 0x3b4   : > { %2592 = vst [vmem:[#allocation1 + $0x4] ss:$9 sm:$0xff] %v2023_v42  ;;  %v2053_v42 = vperm.slane %v4206_v3, 2 }
 0x3b5   : > { %2593 = vst [vmem:[#allocation1 + $0x5] ss:$9 sm:$0xff] %v2024_v49  ;;  %v2054_v49 = vperm.slane %v4206_v3, 3 }
 0x3b6   : > { %2594 = vst [vmem:[#allocation1 + $0x6] ss:$9 sm:$0xff] %v2025_v63 }
 0x3b7   : > { %2595 = vst [vmem:[#allocation1 + $0x7] ss:$9 sm:$0xff] %v2026_v44  ;;  %v2055_v44 = vperm.slane %v4206_v3, 4 }
 0x3be   : > { %v2596_v36 = vld [vmem:[#allocation1] sm:$0xff] }
 0x3bf   : > { %2597 = vst [vmem:[#allocation1] ss:$9 sm:$0xff] %v2027_v33  ;;  %2865 = vperm.xlu1 %3263, %v2596_v36   ;;  %v2057_v33 = vperm.slane %v4206_v3, 6  ;;  %v2060_v36 = vperm.slane %v4210_v5, 1 }
 0x3c0   : > { %2598 = vst [vmem:[#allocation1 + $0x1] ss:$9 sm:$0xff] %v2028_v24  ;;  %v2058_v24 = vperm.slane %v4206_v3, 7  ;;  %v2064_v3 = vperm.slane %v4210_v5, 5 }
 0x3c1   : > { %2599 = vst [vmem:[#allocation1 + $0x2] ss:$9 sm:$0xff] %v2029_v45  ;;  %v2059_v45 = vperm.slane %v4210_v5, 0 }
 0x3c2   : > { %2600 = vst [vmem:[#allocation1 + $0x3] ss:$9 sm:$0xff] %v2030_v48 }
 0x3c3   : > { %2601 = vst [vmem:[#allocation1 + $0x4] ss:$9 sm:$0xff] %v2031_v10  ;;  %v2061_v10 = vperm.slane %v4210_v5, 2 }
 0x3c4   : > { %2602 = vst [vmem:[#allocation1 + $0x5] ss:$9 sm:$0xff] %v2032_v32  ;;  %v2062_v32 = vperm.slane %v4210_v5, 3 }
 0x3c5   : > { %2603 = vst [vmem:[#allocation1 + $0x6] ss:$9 sm:$0xff] %v2033_v25  ;;  %v2063_v25 = vperm.slane %v4210_v5, 4 }
 0x3c6   : > { %2604 = vst [vmem:[#allocation1 + $0x7] ss:$9 sm:$0xff] %v2034_v55  ;;  %v2065_v55 = vperm.slane %v4210_v5, 6 }
 0x3cd   : > { %v2605_v62 = vld [vmem:[#allocation1] sm:$0xff] }
 0x3ce   : > { %2606 = vst [vmem:[#allocation1] ss:$9 sm:$0xff] %v2035_v60  ;;  %2868 = vperm.xlu0 %3265, %v2605_v62   ;;  %v2066_v60 = vperm.slane %v4210_v5, 7  ;;  %v2067_v62 = vperm.slane %v4188_v30, 0  ;;  %v2072_v5 = vperm.slane %v4188_v30, 5 }
 0x3cf   : > { %2607 = vst [vmem:[#allocation1 + $0x1] ss:$9 sm:$0xff] %v2036_v6  ;;  %v2068_v6 = vperm.slane %v4188_v30, 1 }
 0x3d0   : > { %2608 = vst [vmem:[#allocation1 + $0x2] ss:$9 sm:$0xff] %v2037_v12 }
 0x3d1   : > { %2609 = vst [vmem:[#allocation1 + $0x3] ss:$9 sm:$0xff] %v2038_v59  ;;  %v2069_v59 = vperm.slane %v4188_v30, 2 }
 0x3d2   : > { %2610 = vst [vmem:[#allocation1 + $0x4] ss:$9 sm:$0xff] %v2039_v50  ;;  %v2071_v50 = vperm.slane %v4188_v30, 4 }
 0x3d3   : > { %2611 = vst [vmem:[#allocation1 + $0x5] ss:$9 sm:$0xff] %v2040_v14  ;;  %v2073_v14 = vperm.slane %v4188_v30, 6 }
 0x3d4   : > { %2612 = vst [vmem:[#allocation1 + $0x6] ss:$9 sm:$0xff] %v2041_v17  ;;  %v2074_v17 = vperm.slane %v4188_v30, 7  ;;  %v2080_v30 = vperm.slane %v4213_v7, 5 }
 0x3d5   : > { %2613 = vst [vmem:[#allocation1 + $0x7] ss:$9 sm:$0xff] %v2042_v1  ;;  %v2075_v1 = vperm.slane %v4213_v7, 0 }
 0x3dc   : > { %v2614_v21 = vld [vmem:[#allocation1] sm:$0xff] }
 0x3dd   : > { %2615 = vst [vmem:[#allocation1] ss:$9 sm:$0xff] %v2043_v56  ;;  %2871 = vperm.xlu2 %3264, %v2614_v21   ;;  %v2076_v56 = vperm.slane %v4213_v7, 1  ;;  %v2079_v21 = vperm.slane %v4213_v7, 4 }
 0x3de   : > { %2616 = vst [vmem:[#allocation1 + $0x1] ss:$9 sm:$0xff] %v2044_v37 }
 0x3df   : > { %2617 = vst [vmem:[#allocation1 + $0x2] ss:$9 sm:$0xff] %v2045_v18  ;;  %v2077_v18 = vperm.slane %v4213_v7, 2 }
 0x3e0   : > { %2618 = vst [vmem:[#allocation1 + $0x3] ss:$9 sm:$0xff] %v2046_v20  ;;  %v2078_v20 = vperm.slane %v4213_v7, 3 }
 0x3e1   : > { %2619 = vst [vmem:[#allocation1 + $0x4] ss:$9 sm:$0xff] %v2047_v23  ;;  %v2081_v23 = vperm.slane %v4213_v7, 6 }
 0x3e2   : > { %2620 = vst [vmem:[#allocation1 + $0x5] ss:$9 sm:$0xff] %v2048_v38  ;;  %v2082_v38 = vperm.slane %v4213_v7, 7  ;;  %v2088_v7 = vperm.slane %v4220_v19, 5 }
 0x3e3   : > { %2621 = vst [vmem:[#allocation1 + $0x6] ss:$9 sm:$0xff] %v2049_v11  ;;  %v2083_v11 = vperm.slane %v4220_v19, 0 }
 0x3e4   : > { %2622 = vst [vmem:[#allocation1 + $0x7] ss:$9 sm:$0xff] %v2050_v13  ;;  %v2084_v13 = vperm.slane %v4220_v19, 1 }
 0x3eb   : > { %v2623_v63 = vld [vmem:[#allocation1] sm:$0xff] }
 0x3ec   : > { %2874 = vperm.xlu1 %3263, %v2623_v63   ;;  %2624 = vst [vmem:[#allocation1] ss:$9 sm:$0xff] %v2051_v26  ;;  %v2089_v63 = vperm.slane %v4220_v19, 6 }
 0x3ed   : > { %2625 = vst [vmem:[#allocation1 + $0x1] ss:$9 sm:$0xff] %v2052_v43  ;;  %v2085_v43 = vperm.slane %v4220_v19, 2 }
 0x3ee   : > { %2626 = vst [vmem:[#allocation1 + $0x2] ss:$9 sm:$0xff] %v2053_v42  ;;  %v2086_v42 = vperm.slane %v4220_v19, 3 }
 0x3ef   : > { %2627 = vst [vmem:[#allocation1 + $0x3] ss:$9 sm:$0xff] %v2054_v49  ;;  %v2087_v49 = vperm.slane %v4220_v19, 4 }
 0x3f0   : > { %2628 = vst [vmem:[#allocation1 + $0x4] ss:$9 sm:$0xff] %v2055_v44  ;;  %v2090_v44 = vperm.slane %v4220_v19, 7  ;;  %v2096_v19 = vperm.slane %v4197_v54, 5 }
 0x3f1   : > { %2629 = vst [vmem:[#allocation1 + $0x5] ss:$9 sm:$0xff] %v2056_v41  ;;  %v2091_v41 = vperm.slane %v4197_v54, 0 }
 0x3f2   : > { %2630 = vst [vmem:[#allocation1 + $0x6] ss:$9 sm:$0xff] %v2057_v33  ;;  %v2092_v33 = vperm.slane %v4197_v54, 1 }
 0x3f3   : > { %2631 = vst [vmem:[#allocation1 + $0x7] ss:$9 sm:$0xff] %v2058_v24 }
 0x3fa   : > { %v2632_v48 = vld [vmem:[#allocation1] sm:$0xff] }
 0x3fb   : > { %2877 = vperm.xlu0 %3265, %v2632_v48   ;;  %2633 = vst [vmem:[#allocation1] ss:$9 sm:$0xff] %v2059_v45  ;;  %v2093_v45 = vperm.slane %v4197_v54, 2  ;;  %v2095_v48 = vperm.slane %v4197_v54, 4 }
 0x3fc   : > { %2634 = vst [vmem:[#allocation1 + $0x1] ss:$9 sm:$0xff] %v2060_v36  ;;  %v2094_v36 = vperm.slane %v4197_v54, 3 }
 0x3fd   : > { %2635 = vst [vmem:[#allocation1 + $0x2] ss:$9 sm:$0xff] %v2061_v10  ;;  %v2097_v10 = vperm.slane %v4197_v54, 6 }
 0x3fe   : > { %2636 = vst [vmem:[#allocation1 + $0x3] ss:$9 sm:$0xff] %v2062_v32  ;;  %v2098_v32 = vperm.slane %v4197_v54, 7  ;;  %v2104_v54 = vperm.slane %v4224_v28, 5 }
 0x3ff   : > { %2637 = vst [vmem:[#allocation1 + $0x4] ss:$9 sm:$0xff] %v2063_v25  ;;  %v2099_v25 = vperm.slane %v4224_v28, 0 }
 0x400   : > { %2638 = vst [vmem:[#allocation1 + $0x5] ss:$9 sm:$0xff] %v2064_v3  ;;  %v2100_v3 = vperm.slane %v4224_v28, 1 }
 0x401   : > { %2639 = vst [vmem:[#allocation1 + $0x6] ss:$9 sm:$0xff] %v2065_v55 }
 0x402   : > { %2640 = vst [vmem:[#allocation1 + $0x7] ss:$9 sm:$0xff] %v2066_v60  ;;  %v2101_v60 = vperm.slane %v4224_v28, 2 }
 0x409   : > { %v2641_v12 = vld [vmem:[#allocation1] sm:$0xff] }
 0x40a   : > { %2880 = vperm.xlu2 %3264, %v2641_v12   ;;  %2642 = vst [vmem:[#allocation1] ss:$9 sm:$0xff] %v2067_v62  ;;  %v2102_v62 = vperm.slane %v4224_v28, 3  ;;  %v2105_v12 = vperm.slane %v4224_v28, 6 }
 0x40b   : > { %2643 = vst [vmem:[#allocation1 + $0x1] ss:$9 sm:$0xff] %v2068_v6  ;;  %v2103_v6 = vperm.slane %v4224_v28, 4 }
 0x40c   : > { %2644 = vst [vmem:[#allocation1 + $0x2] ss:$9 sm:$0xff] %v2069_v59  ;;  %v2106_v59 = vperm.slane %v4224_v28, 7  ;;  %v2112_v28 = vperm.slane %v4226_v31, 5 }
 0x40d   : > { %2645 = vst [vmem:[#allocation1 + $0x3] ss:$9 sm:$0xff] %v2070_v27  ;;  %v2107_v27 = vperm.slane %v4226_v31, 0 }
 0x40e   : > { %2646 = vst [vmem:[#allocation1 + $0x4] ss:$9 sm:$0xff] %v2071_v50  ;;  %v2108_v50 = vperm.slane %v4226_v31, 1 }
 0x40f   : > { %2647 = vst [vmem:[#allocation1 + $0x5] ss:$9 sm:$0xff] %v2072_v5 }
 0x410   : > { %2648 = vst [vmem:[#allocation1 + $0x6] ss:$9 sm:$0xff] %v2073_v14  ;;  %v2109_v14 = vperm.slane %v4226_v31, 2 }
 0x411   : > { %2649 = vst [vmem:[#allocation1 + $0x7] ss:$9 sm:$0xff] %v2074_v17  ;;  %v2110_v17 = vperm.slane %v4226_v31, 3 }
 0x418   : > { %v2650_v37 = vld [vmem:[#allocation1] sm:$0xff] }
 0x419   : > { %2883 = vperm.xlu1 %3263, %v2650_v37   ;;  %2651 = vst [vmem:[#allocation1] ss:$9 sm:$0xff] %v2075_v1  ;;  %v2111_v1 = vperm.slane %v4226_v31, 4  ;;  %v2114_v37 = vperm.slane %v4226_v31, 7 }
 0x41a   : > { %2652 = vst [vmem:[#allocation1 + $0x1] ss:$9 sm:$0xff] %v2076_v56  ;;  %v2113_v56 = vperm.slane %v4226_v31, 6  ;;  %v2120_v31 = vperm.slane %v4208_v4, 5 }
 0x41b   : > { %2653 = vst [vmem:[#allocation1 + $0x2] ss:$9 sm:$0xff] %v2077_v18  ;;  %v2115_v18 = vperm.slane %v4208_v4, 0 }
 0x41c   : > { %2654 = vst [vmem:[#allocation1 + $0x3] ss:$9 sm:$0xff] %v2078_v20  ;;  %v2116_v20 = vperm.slane %v4208_v4, 1 }
 0x41d   : > { %2655 = vst [vmem:[#allocation1 + $0x4] ss:$9 sm:$0xff] %v2079_v21 }
 0x41e   : > { %2656 = vst [vmem:[#allocation1 + $0x5] ss:$9 sm:$0xff] %v2080_v30  ;;  %v2117_v30 = vperm.slane %v4208_v4, 2 }
 0x41f   : > { %2657 = vst [vmem:[#allocation1 + $0x6] ss:$9 sm:$0xff] %v2081_v23  ;;  %v2118_v23 = vperm.slane %v4208_v4, 3 }
 0x420   : > { %2658 = vst [vmem:[#allocation1 + $0x7] ss:$9 sm:$0xff] %v2082_v38  ;;  %v2119_v38 = vperm.slane %v4208_v4, 4 }
 0x427   : > { %v2659_v26 = vld [vmem:[#allocation1] sm:$0xff] }
 0x428   : > { %2886 = vperm.xlu0 %3265, %v2659_v26   ;;  %2660 = vst [vmem:[#allocation1] ss:$9 sm:$0xff] %v2083_v11  ;;  %v2121_v11 = vperm.slane %v4208_v4, 6  ;;  %v2123_v26 = vperm.slane %v4233_v35, 0 }
 0x429   : > { %2661 = vst [vmem:[#allocation1 + $0x1] ss:$9 sm:$0xff] %v2084_v13  ;;  %v2122_v13 = vperm.slane %v4208_v4, 7  ;;  %v2128_v4 = vperm.slane %v4233_v35, 5 }
 0x42a   : > { %2662 = vst [vmem:[#allocation1 + $0x2] ss:$9 sm:$0xff] %v2085_v43  ;;  %v2124_v43 = vperm.slane %v4233_v35, 1 }
 0x42b   : > { %2663 = vst [vmem:[#allocation1 + $0x3] ss:$9 sm:$0xff] %v2086_v42 }
 0x42c   : > { %2664 = vst [vmem:[#allocation1 + $0x4] ss:$9 sm:$0xff] %v2087_v49  ;;  %v2125_v49 = vperm.slane %v4233_v35, 2 }
 0x42d   : > { %2665 = vst [vmem:[#allocation1 + $0x5] ss:$9 sm:$0xff] %v2088_v7  ;;  %v2126_v7 = vperm.slane %v4233_v35, 3 }
 0x42e   : > { %2666 = vst [vmem:[#allocation1 + $0x6] ss:$9 sm:$0xff] %v2089_v63  ;;  %v2127_v63 = vperm.slane %v4233_v35, 4 }
 0x42f   : > { %2667 = vst [vmem:[#allocation1 + $0x7] ss:$9 sm:$0xff] %v2090_v44  ;;  %v2129_v44 = vperm.slane %v4233_v35, 6 }
 0x436   : > { %v2668_v24 = vld [vmem:[#allocation1] sm:$0xff] }
 0x437   : > { %2889 = vperm.xlu2 %3264, %v2668_v24   ;;  %2669 = vst [vmem:[#allocation1] ss:$9 sm:$0xff] %v2091_v41  ;;  %v2130_v41 = vperm.slane %v4233_v35, 7  ;;  %v2821_v24 = vpop.permute.xlu1 %2820 }
 0x438   : > { %2670 = vst [vmem:[#allocation1 + $0x1] ss:$9 sm:$0xff] %v2092_v33 }
 0x439   : > { %2671 = vst [vmem:[#allocation1 + $0x2] ss:$9 sm:$0xff] %v2093_v45  ;;  %v2818_v45 = vpop.permute.xlu2 %2817 }
 0x43a   : > { %2672 = vst [vmem:[#allocation1 + $0x3] ss:$9 sm:$0xff] %v2094_v36  ;;  %v2824_v36 = vpop.permute.xlu0 %2823 }
 0x43b   : > { %2673 = vst [vmem:[#allocation1 + $0x4] ss:$9 sm:$0xff] %v2095_v48 }
 0x43c   : > { %2674 = vst [vmem:[#allocation1 + $0x5] ss:$9 sm:$0xff] %v2096_v19 }
 0x43d   : > { %2675 = vst [vmem:[#allocation1 + $0x6] ss:$9 sm:$0xff] %v2097_v10 }
 0x43e   : > { %2676 = vst [vmem:[#allocation1 + $0x7] ss:$9 sm:$0xff] %v2098_v32 }
 0x43f   : > { %v2830_v48 = vpop.permute.xlu1 %2829 }
 0x441   : > { %v2827_v19 = vpop.permute.xlu2 %2826 }
 0x442   : > { %v2833_v10 = vpop.permute.xlu0 %2832 }
 0x445   : > { %v2677_v55 = vld [vmem:[#allocation1] sm:$0xff] }
 0x446   : > { %2892 = vperm.xlu1 %3263, %v2677_v55   ;;  %2678 = vst [vmem:[#allocation1] ss:$9 sm:$0xff] %v2099_v25 }
 0x447   : > { %2679 = vst [vmem:[#allocation1 + $0x1] ss:$9 sm:$0xff] %v2100_v3  ;;  %v2839_v32 = vpop.permute.xlu1 %2838 }
 0x448   : > { %2680 = vst [vmem:[#allocation1 + $0x2] ss:$9 sm:$0xff] %v2101_v60 }
 0x449   : > { %2681 = vst [vmem:[#allocation1 + $0x3] ss:$9 sm:$0xff] %v2102_v62  ;;  %v2836_v25 = vpop.permute.xlu2 %2835 }
 0x44a   : > { %2682 = vst [vmem:[#allocation1 + $0x4] ss:$9 sm:$0xff] %v2103_v6  ;;  %v2842_v3 = vpop.permute.xlu0 %2841 }
 0x44b   : > { %2683 = vst [vmem:[#allocation1 + $0x5] ss:$9 sm:$0xff] %v2104_v54 }
 0x44c   : > { %2684 = vst [vmem:[#allocation1 + $0x6] ss:$9 sm:$0xff] %v2105_v12 }
 0x44d   : > { %2685 = vst [vmem:[#allocation1 + $0x7] ss:$9 sm:$0xff] %v2106_v59 }
 0x44f   : > { %v4585_v55 = vpop.permute.xlu1 %2847 }
 0x451   : > { %v2845_v60 = vpop.permute.xlu2 %2844 }
 0x452   : > { %v4587_v62 = vpop.permute.xlu0 %2850 }
 0x454   : > { %v2686_v5 = vld [vmem:[#allocation1] sm:$0xff] }
 0x455   : > { %2895 = vperm.xlu0 %3265, %v2686_v5   ;;  %2687 = vst [vmem:[#allocation1] ss:$9 sm:$0xff] %v2107_v27 }
 0x456   : > { %2688 = vst [vmem:[#allocation1 + $0x1] ss:$9 sm:$0xff] %v2108_v50 }
 0x457   : > { %2689 = vst [vmem:[#allocation1 + $0x2] ss:$9 sm:$0xff] %v2109_v14  ;;  %v4589_v35 = vpop.permute.xlu1 %2856 }
 0x458   : > { %2690 = vst [vmem:[#allocation1 + $0x3] ss:$9 sm:$0xff] %v2110_v17  ;;  %v3005_v17 = vperm.slane %v2821_v24, %v4246_v15  ;;  %v3019_v24 = vperm.slane %v2842_v3, %v4293_v57  ;;  %v3023_v3 = vperm.slane %v4585_v55, %v4314_v47 }
 0x459   : > { %2691 = vst [vmem:[#allocation1 + $0x4] ss:$9 sm:$0xff] %v2111_v1  ;;  %v4591_v6 = vpop.permute.xlu2 %2853 }
 0x45a   : > { %2692 = vst [vmem:[#allocation1 + $0x5] ss:$9 sm:$0xff] %v2112_v28  ;;  %v2860_v54 = vpop.permute.xlu0 %2859  ;;  %v3003_v28 = vperm.slane %v2818_v45, %v4250_v52 }
 0x45b   : > { %2693 = vst [vmem:[#allocation1 + $0x6] ss:$9 sm:$0xff] %v2113_v56  ;;  %v3031_v1 = vperm.slane %v2860_v54, %v4229_v34  ;;  %v3007_v56 = vperm.slane %v2824_v36, %v4260_v2 }
 0x45c   : > { %2694 = vst [vmem:[#allocation1 + $0x7] ss:$9 sm:$0xff] %v2114_v37 }
 0x45f   : > { %v2866_v12 = vpop.permute.xlu1 %2865 }
 0x460   : > { %v3034_v37 = vperm.slane %v2866_v12, %v4250_v52  ;;  %v3009_v52 = vperm.slane %v2827_v19, %v4256_v61 }
 0x461   : > { %v2863_v59 = vpop.permute.xlu2 %2862 }
 0x462   : > { %v2869_v27 = vpop.permute.xlu0 %2868 }
 0x463   : > { %v2695_v21 = vld [vmem:[#allocation1] sm:$0xff] }
 0x464   : > { %2898 = vperm.xlu2 %3264, %v2695_v21   ;;  %2696 = vst [vmem:[#allocation1] ss:$9 sm:$0xff] %v2115_v18  ;;  %v3032_v18 = vperm.slane %v2863_v59, %v4238_v40  ;;  %v3013_v40 = vperm.slane %v2833_v10, %v4274_v0 }
 0x465   : > { %2697 = vst [vmem:[#allocation1 + $0x1] ss:$9 sm:$0xff] %v2116_v20  ;;  %v3036_v20 = vperm.slane %v2869_v27, %v4246_v15 }
 0x466   : > { %2698 = vst [vmem:[#allocation1 + $0x2] ss:$9 sm:$0xff] %v2117_v30  ;;  %v3004_v30 = vsel %vm2915_vm1, %v3003_v28, %v4464_v9 }
 0x467   : > { %2699 = vst [vmem:[#allocation1 + $0x3] ss:$9 sm:$0xff] %v2118_v23  ;;  %v2875_v50 = vpop.permute.xlu1 %2874 }
 0x468   : > { %2700 = vst [vmem:[#allocation1 + $0x4] ss:$9 sm:$0xff] %v2119_v38  ;;  %v3006_v38 = vsel %vm2919_vm2, %v3005_v17, %v3004_v30 }
 0x469   : > { %2701 = vst [vmem:[#allocation1 + $0x5] ss:$9 sm:$0xff] %v2120_v31  ;;  %v2872_v5 = vpop.permute.xlu2 %2871  ;;  %v3033_v31 = vsel %vm2911_vm0, %v3032_v18, %v3031_v1  ;;  %v3008_v34 = vsel %vm2923_vm3, %v3007_v56, %v3006_v38  ;;  %vm3067_vm0 = vcmask 1042434  }
 0x46a   : > { %2702 = vst [vmem:[#allocation1 + $0x6] ss:$9 sm:$0xff] %v2121_v11  ;;  %v3011_v11 = vperm.slane %v2830_v48, %v4278_v58 }
 0x46b   : > { %2703 = vst [vmem:[#allocation1 + $0x7] ss:$9 sm:$0xff] %v2122_v13  ;;  %v3035_v13 = vsel %vm2915_vm1, %v3034_v37, %v3033_v31  ;;  %vm3069_vm1 = vcmask 1041408  }
 0x46c   : > { %v3037_v15 = vsel %vm2919_vm2, %v3036_v20, %v3035_v13  ;;  %vm3074_vm2 = vcmp.lt.s32.totalorder %v2906_v29, 512 }
 0x46d   : > { %v2878_v14 = vpop.permute.xlu0 %2877 }
 0x471   : > { %v2881_v23 = vpop.permute.xlu2 %2880 }
 0x472   : > { %v2704_v42 = vld [vmem:[#allocation1] sm:$0xff]  ;;  %v3044_v36 = vperm.slane %v2881_v23, %v4274_v0  ;;  %v3021_v0 = vperm.slane %v2845_v60, %v4309_v39 }
 0x473   : > { %2901 = vperm.xlu1 %3263, %v2704_v42   ;;  %2705 = vst [vmem:[#allocation1] ss:$9 sm:$0xff] %v2123_v26  ;;  %v3040_v26 = vperm.slane %v2875_v50, %v4256_v61  ;;  %v3042_v42 = vperm.slane %v2878_v14, %v4278_v58  ;;  %v3015_v61 = vperm.slane %v2836_v25, %v4289_v8 }
 0x474   : > { %2706 = vst [vmem:[#allocation1 + $0x1] ss:$9 sm:$0xff] %v2124_v43  ;;  %v3038_v43 = vperm.slane %v2872_v5, %v4260_v2 }
 0x475   : > { %2707 = vst [vmem:[#allocation1 + $0x2] ss:$9 sm:$0xff] %v2125_v49  ;;  %v3010_v49 = vsel %vm2927_vm4, %v3009_v52, %v3008_v34 }
 0x476   : > { %2708 = vst [vmem:[#allocation1 + $0x3] ss:$9 sm:$0xff] %v2126_v7  ;;  %v3012_v7 = vsel %vm2931_vm5, %v3011_v11, %v3010_v49 }
 0x477   : > { %2709 = vst [vmem:[#allocation1 + $0x4] ss:$9 sm:$0xff] %v2127_v63  ;;  %v3039_v63 = vsel %vm2923_vm3, %v3038_v43, %v3037_v15 }
 0x478   : > { %2710 = vst [vmem:[#allocation1 + $0x5] ss:$9 sm:$0xff] %v2128_v4  ;;  %v3014_v4 = vsel %vm2935_vm6, %v3013_v40, %v3012_v7 }
 0x479   : > { %2711 = vst [vmem:[#allocation1 + $0x6] ss:$9 sm:$0xff] %v2129_v44  ;;  %v3017_v44 = vperm.slane %v2839_v32, %v4286_v53  ;;  %v3016_v19 = vsel %vm2939_vm7, %v3015_v61, %v3014_v4 }
 0x47a   : > { %2712 = vst [vmem:[#allocation1 + $0x7] ss:$9 sm:$0xff] %v2130_v41  ;;  %v3041_v41 = vsel %vm2927_vm4, %v3040_v26, %v3039_v63 }
 0x47b   : > { %v3043_v2 = vsel %vm2931_vm5, %v3042_v42, %v3041_v41  ;;  %v3018_v10 = vsel %vm2943_vm8, %v3017_v44, %v3016_v19 }
 0x47c   : > { %v3045_v32 = vsel %vm2935_vm6, %v3044_v36, %v3043_v2  ;;  %v3020_v25 = vsel %vm2947_vm9, %v3019_v24, %v3018_v10 }
 0x47d   : > { %v3022_v5 = vsel %vm2951_vm10, %v3021_v0, %v3020_v25 }
 0x47e   : > { %v3024_v14 = vsel %vm2955_vm11, %v3023_v3, %v3022_v5 }
 0x481   : > { %v2713_v33 = vld [vmem:[#allocation1] sm:$0xff] }
 0x482   : > { %2904 = vperm.xlu0 %3265, %v2713_v33  }
 0x48b   : > { %v2884_v21 = vpop.permute.xlu1 %2883 }
 0x48c   : > { %v3046_v45 = vperm.slane %v2884_v21, %v4289_v8 }
 0x48e   : > { %v3047_v12 = vsel %vm2939_vm7, %v3046_v45, %v3045_v32 }
 0x491   : > { %v2890_v58 = vpop.permute.xlu2 %2889 }
 0x492   : > { %v3050_v27 = vperm.slane %v2890_v58, %v4293_v57  ;;  %v3027_v57 = vperm.slane %v4591_v6, %v4332_v22 }
 0x49a   : > { %v2887_v9 = vpop.permute.xlu0 %2886 }
 0x49b   : > { %v3048_v48 = vperm.slane %v2887_v9, %v4286_v53  ;;  %v3025_v53 = vperm.slane %v4587_v62, %v4318_v51  ;;  %v3029_v62 = vperm.slane %v4589_v35, %v4344_v46 }
 0x49d   : > { %v3049_v8 = vsel %vm2943_vm8, %v3048_v48, %v3047_v12  ;;  %v3026_v60 = vsel %vm2959_vm12, %v3025_v53, %v3024_v14 }
 0x49e   : > { %v3051_v1 = vsel %vm2947_vm9, %v3050_v27, %v3049_v8  ;;  %v3028_v37 = vsel %vm2963_vm13, %v3027_v57, %v3026_v60 }
 0x49f   : > { %v3030_v35 = vsel %vm2967_vm14, %v3029_v62, %v3028_v37 }
 0x4b8   : > { %v2893_v33 = vpop.permute.xlu1 %2892 }
 0x4b9   : > { %v3052_v59 = vperm.slane %v2893_v33, %v4309_v39 }
 0x4bb   : > { %v3053_v28 = vsel %vm2951_vm10, %v3052_v59, %v3051_v1 }
 0x4be   : > { %v2899_v17 = vpop.permute.xlu2 %2898 }
 0x4bf   : > { %v3056_v56 = vperm.slane %v2899_v17, %v4318_v51  ;;  %v3063_v51 = vrot.slane %v3030_v35, 6 }
 0x4c7   : > { %v2896_v54 = vpop.permute.xlu0 %2895 }
 0x4c8   : > { %v3054_v50 = vperm.slane %v2896_v54, %v4314_v47 }
 0x4ca   : > { %v3055_v39 = vsel %vm2955_vm11, %v3054_v50, %v3053_v28 }
 0x4cb   : > { %v3057_v20 = vsel %vm2959_vm12, %v3056_v56, %v3055_v39 }
 0x4e5   : > { %v2902_v55 = vpop.permute.xlu1 %2901 }
 0x4e6   : > { %v3058_v47 = vperm.slane %v2902_v55, %v4332_v22 }
 0x4e8   : > { %v3059_v6 = vsel %vm2963_vm13, %v3058_v47, %v3057_v20 }
 0x4f4   : > { %v2905_v18 = vpop.permute.xlu0 %2904 }
 0x4f5   : > { %v3060_v21 = vperm.slane %v2905_v18, %v4344_v46 }
 0x4f7   : > { %v3061_v22 = vsel %vm2967_vm14, %v3060_v21, %v3059_v6 }
 0x4f8   : > { %v3064_v30 = vrot.slane %v3061_v22, 5 }
 0x4fa   : > { %v3068_v23 = vsel %vm3067_vm0, %v3063_v51, %v3064_v30 }
 0x4fb   : > { %v3070_v46 = vsel %vm3069_vm1, %v4495_v16, %v3068_v23 }
 0x4fc   : > { %3076 = vst.msk [vmem:[%s207_s13] sm:$0xf] %vm3074_vm2, %v3070_v46 }
 0x4fd   : > { %3353 = shalt.err (!%p3350_p13)
}
 0x4fe   : > { %3213 = dma.vmem_to_hbm [thread:$0]  (%p3465_p10), %s3091_s17, 64, %s3093_s19, %s3078_s29  }
 0x4ff PF: > { %p3227_p0 = scmp.ge.s32.totalorder %s3396_s12, 2  ;;  %s3104_s23 = sand.u32 1, %s3384_s9  }
 0x500   : > { %s3105_s14 = scalar_lea.sflag [#allocation4], %s3104_s23 }
 0x501   : > { %p3223_p4 = pnand %p3227_p0, %p3469_p11 }
 0x503   : > { %p3224_p5 = pneg %p3223_p4 }
 0x505   : > { %3379 = dma.done.wait (%p3224_p5), %s3105_s14, 64  }
 0x506   : > { %3381 = vsyncadd (%p3224_p5), %s3105_s14, 4294967232  ;;  %p18_p7 = scmp.ge.s32.totalorder %s3441_s15, 6   ;;  %s4701_s9 = smov %s3388_s10 }
 0x507   : > { %s4702_s10 = smov %s3392_s11  ;;  %s4703_s11 = smov %s3453_s18 }
 0x508   : > { %s4704_s12 = smov %s3441_s15  ;;  %20 = sbr.rel (!%p18_p7) target bundleno = 7 (0x7), region = 93 }
 0x50d   :  { %3111 = vsyncpa [#allocation3], 1 }
 0x50e   :  { %3113 = vsyncpa [#allocation3 + $0x1], 1 }
 0x50f   :  { %3114 = vsyncpa [#allocation6], 1 }
 0x510   :  { %3116 = vsyncpa [#allocation6 + $0x1], 1 }
 0x511   :  { %3117 = vsyncpa [#allocation4], 1 }
 0x512   :  { %3119 = vsyncpa [#allocation4 + $0x1], 1 }

</bundles_post_ra>
